<compile_context>
chip_gen: v7x
topology: tpu7x:2x2x1
jax: 0.10.0
libtpu: 0.0.40
codegen_flags: <defaults>
</compile_context>

<pallas_src>
import numpy as np
import jax
import jax.numpy as jnp
from jax.experimental import pallas as pl
from jax.experimental.pallas import tpu as pltpu

BATCH_TILE = 128          # images per grid step (multiple of 16 keeps bf16 slices aligned)
IN_H = 12
IN_W = 12
IN_CH = 20
ROW_W = IN_W * IN_CH      # 240  (flattened input row: col = w_in*20 + ci)
C_OUT = 50
C_PAD = 64                # conv channels padded for lane density
CONV_COLS = 2 * 4 * C_PAD # 512  (col = dw*256 + pw*64 + co)
POOL_COLS = 4 * C_PAD     # 256  (col = pw*64 + co)
HIDDEN = 500
H_PAD = 512
N_CLASSES = 10


# ---------------------------------------------------------------------------
# Fused kernel: conv + bias + ReLU + 2x2 max-pool + fc1 + ReLU + fc2 + log_softmax
# ---------------------------------------------------------------------------
def net2_fused_kernel(x_ref, wb_ref, bc_ref, w1_ref, b1_ref, w2_ref, b2_ref, out_ref):
    # x_ref:  (12*B, 240) bf16, row = input_row*B + image, col = w_in*20 + ci
    # wb_ref: (5, 240, 512) bf16, banded conv weight per kernel row kh
    # bc_ref: (1, 256) f32, conv bias replicated per pw block (padded co -> 0)
    # w1_ref: (4, 256, 512) bf16, fc1 weight regrouped per pooled row ph
    # b1_ref: (1, 512) f32, w2_ref: (512, 10) bf16, b2_ref: (1, 10) f32
    # out_ref: (B, 10) f32 log-softmax
    b_tile = out_ref.shape[0]
    rows8 = 8 * b_tile

    # conv: 5 banded matmuls over kernel row kh (LHS = input rows kh..kh+7 per image)
    conv = jnp.dot(x_ref[0:rows8, :], wb_ref[0], preferred_element_type=jnp.float32)
    for kh in range(1, 5):
        conv = conv + jnp.dot(x_ref[kh * b_tile:kh * b_tile + rows8, :], wb_ref[kh],
                              preferred_element_type=jnp.float32)
    # conv: (8B, 512) f32, row = oh*B + b, col = dw*256 + pw*64 + co

    # max-pool over ow (= max over dw): two aligned 256-lane halves
    mw = jnp.maximum(conv[:, 0:POOL_COLS], conv[:, POOL_COLS:CONV_COLS])   # (8B, 256)

    bc = bc_ref[...]
    b1 = b1_ref[...]
    # max-pool over oh (aligned sublane blocks) + bias + ReLU (commute with the max),
    # single bf16 cast, then fc1 accumulation initialized from the fc1 bias.
    z1 = b1                                                  # (1, 512) f32, broadcasts
    for ph in range(4):
        a = jnp.maximum(mw[(2 * ph) * b_tile:(2 * ph + 1) * b_tile, :],
                        mw[(2 * ph + 1) * b_tile:(2 * ph + 2) * b_tile, :])
        a = jnp.maximum(a + bc, 0.0).astype(w1_ref.dtype)    # (B, 256) bf16
        z1 = z1 + jnp.dot(a, w1_ref[ph], preferred_element_type=jnp.float32)
    z1 = jnp.maximum(z1, 0.0)                                # (B, 512) f32

    # fc2 + log_softmax (only 10 real classes; no class padding => denominator exact)
    z2 = jnp.dot(z1.astype(w2_ref.dtype), w2_ref[...],
                 preferred_element_type=jnp.float32) + b2_ref[...]
    s = z2 - jnp.max(z2, axis=1, keepdims=True)
    out_ref[...] = s - jnp.log(jnp.sum(jnp.exp(s), axis=1, keepdims=True))


# ---------------------------------------------------------------------------
# Weight prep (done once per call in XLA; tiny)
# ---------------------------------------------------------------------------
def _prep_weights(params):
    f32, bf16 = jnp.float32, jnp.bfloat16

    # Banded conv weight: wb[kh, w_in*20+ci, dw*256+pw*64+co] = conv_w[co,ci,kh,kw]
    # with kw = w_in - (2*pw + dw), zero outside 0..4 and for padded co.
    S = np.zeros((12, 5, 2, 4), np.float32)
    for pw in range(4):
        for dw in range(2):
            for kw in range(5):
                S[2 * pw + dw + kw, kw, dw, pw] = 1.0
    wct = jnp.transpose(params["conv_w"], (2, 3, 1, 0))                 # (kh,kw,ci,co)
    wb = jnp.einsum("wkdp,hkco->hwcdpo", jnp.asarray(S), wct)           # (5,12,20,2,4,50)
    wb = jnp.pad(wb, ((0, 0),) * 5 + ((0, C_PAD - C_OUT),))
    wb = wb.reshape(5, ROW_W, CONV_COLS).astype(bf16)                   # (5,240,512)

    bc = jnp.tile(jnp.pad(params["conv_b"], (0, C_PAD - C_OUT)), 4)
    bc = bc.reshape(1, POOL_COLS).astype(f32)                           # (1,256)

    # fc1 regrouped per pooled row ph: w1[ph][pw*64+co, h] = fc1_w[h, co*16+ph*4+pw]
    w1 = params["fc1_w"].reshape(HIDDEN, C_OUT, 4, 4)                   # (h,co,ph,pw)
    w1 = jnp.transpose(w1, (2, 3, 1, 0))                                # (ph,pw,co,h)
    w1 = jnp.pad(w1, ((0, 0), (0, 0), (0, C_PAD - C_OUT), (0, H_PAD - HIDDEN)))
    w1 = w1.reshape(4, POOL_COLS, H_PAD).astype(bf16)                   # (4,256,512)

    b1 = jnp.pad(params["fc1_b"], (0, H_PAD - HIDDEN)).reshape(1, H_PAD).astype(f32)
    w2 = jnp.pad(params["fc2_w"].T, ((0, H_PAD - HIDDEN), (0, 0))).astype(bf16)  # (512,10)
    b2 = params["fc2_b"].reshape(1, N_CLASSES).astype(f32)
    return wb, bc, w1, b1, w2, b2


def _round_up(n, m):
    return ((n + m - 1) // m) * m


# ---------------------------------------------------------------------------
# Wrapper: raw-tile layout (no im2col expansion) + pallas_call
# ---------------------------------------------------------------------------
def net2_forward(x_nchw, params):
    n = x_nchw.shape[0]
    b_tile = min(BATCH_TILE, _round_up(n, 16))     # multiple of 16 => aligned bf16 slices
    n_tiles = pl.cdiv(n, b_tile)
    n_pad = n_tiles * b_tile

    # bf16 cast BEFORE the transposes (halves wrapper HBM traffic)
    x = x_nchw.astype(jnp.bfloat16)
    if n_pad != n:
        x = jnp.pad(x, ((0, n_pad - n), (0, 0), (0, 0), (0, 0)))
    x = jnp.transpose(x, (0, 2, 3, 1))                        # (n_pad, 12, 12, 20)
    x = x.reshape(n_tiles, b_tile, IN_H, ROW_W)               # (T, B, 12, 240)
    x = jnp.transpose(x, (0, 2, 1, 3))                        # (T, 12, B, 240)
    x_tiles = x.reshape(n_tiles, IN_H * b_tile, ROW_W)        # rows = r*B + b

    wb, bc, w1, b1, w2, b2 = _prep_weights(params)

    out = pl.pallas_call(
        net2_fused_kernel,
        out_shape=jax.ShapeDtypeStruct((n_pad, N_CLASSES), jnp.float32),
        grid=(n_tiles,),
        in_specs=[
            pl.BlockSpec((None, IN_H * b_tile, ROW_W), lambda i: (i, 0, 0)),  # streamed
            pl.BlockSpec((5, ROW_W, CONV_COLS), lambda i: (0, 0, 0)),         # resident
            pl.BlockSpec((1, POOL_COLS), lambda i: (0, 0)),
            pl.BlockSpec((4, POOL_COLS, H_PAD), lambda i: (0, 0, 0)),
            pl.BlockSpec((1, H_PAD), lambda i: (0, 0)),
            pl.BlockSpec((H_PAD, N_CLASSES), lambda i: (0, 0)),
            pl.BlockSpec((1, N_CLASSES), lambda i: (0, 0)),
        ],
        out_specs=pl.BlockSpec((b_tile, N_CLASSES), lambda i: (i, 0)),
        compiler_params=pltpu.CompilerParams(
            dimension_semantics=("parallel",),
            vmem_limit_bytes=40 * 1024 * 1024),
    )(x_tiles, wb, bc, w1, b1, w2, b2)
    return out[:n]


# ---------------------------------------------------------------------------
# Pure-JAX reference of the PyTorch forward (NCHW / OIHW, f32 HIGHEST precision)
# ---------------------------------------------------------------------------
def net2_reference(x_nchw, params):
    hp = jax.lax.Precision.HIGHEST
    conv = jax.lax.conv_general_dilated(
        x_nchw, params["conv_w"], window_strides=(1, 1), padding="VALID",
        dimension_numbers=("NCHW", "OIHW", "NCHW"), precision=hp)
    conv = jax.nn.relu(conv + params["conv_b"][None, :, None, None])
    pooled = jax.lax.reduce_window(conv, -jnp.inf, jax.lax.max,
                                   (1, 1, 2, 2), (1, 1, 2, 2), "VALID")
    flat = pooled.reshape(x_nchw.shape[0], -1)
    z1 = jax.nn.relu(jnp.dot(flat, params["fc1_w"].T, precision=hp) + params["fc1_b"])
    z2 = jnp.dot(z1, params["fc2_w"].T, precision=hp) + params["fc2_b"]
    return jax.nn.log_softmax(z2, axis=1)


if __name__ == "__main__":
    key = jax.random.PRNGKey(0)
    ks = jax.random.split(key, 9)
    params = {
        "conv_w": jax.random.normal(ks[0], (50, 20, 5, 5), jnp.float32) * 0.05,
        "conv_b": jax.random.normal(ks[1], (50,), jnp.float32) * 0.05,
        "fc1_w": jax.random.normal(ks[2], (500, 800), jnp.float32) * 0.02,
        "fc1_b": jax.random.normal(ks[3], (500,), jnp.float32) * 0.02,
        "fc2_w": jax.random.normal(ks[4], (10, 500), jnp.float32) * 0.05,
        "fc2_b": jax.random.normal(ks[5], (10,), jnp.float32) * 0.05,
    }
    fwd = jax.jit(net2_forward)
    # forward() implies 12x12 spatial input: conv(5) -> 8x8, pool(2) -> 4x4, view 4*4*50.
    # n=2: batch padding path; n=16: one small tile; n=200: full 128-image tiles, 2-step grid.
    for n, k in ((2, ks[6]), (16, ks[7]), (200, ks[8])):
        x = jax.random.normal(k, (n, 20, 12, 12), jnp.float32)
        out = jax.block_until_ready(fwd(x, params))
        ref = jax.block_until_ready(net2_reference(x, params))
        np.testing.assert_allclose(np.asarray(out), np.asarray(ref), rtol=5e-2, atol=5e-2)
        assert out.shape == (n, 10)
    print("KERNEL_OK")
</pallas_src>

<mosaic_0001>
module attributes {stable_mosaic.version = 11 : i64} {
  func.func @net2_fused_kernel(%arg0: i32, %arg1: memref<1x192x240xbf16, #tpu.memory_space<vmem>>, %arg2: memref<5x240x512xbf16, #tpu.memory_space<vmem>>, %arg3: memref<1x256xf32, #tpu.memory_space<vmem>>, %arg4: memref<4x256x512xbf16, #tpu.memory_space<vmem>>, %arg5: memref<1x512xf32, #tpu.memory_space<vmem>>, %arg6: memref<512x10xbf16, #tpu.memory_space<vmem>>, %arg7: memref<1x10xf32, #tpu.memory_space<vmem>>, %arg8: memref<16x10xf32, #tpu.memory_space<vmem>>) attributes {dimension_semantics = [#tpu.dimension_semantics<parallel>], iteration_bounds = array<i64: 1>, scalar_prefetch = 0 : i64, scratch_operands = 0 : i64, tpu.core_type = #tpu.core_type<tc>, window_params = [{transform_indices = @transform_0, window_bounds = array<i64: 1, 192, 240>}, {pipeline_mode = #tpu.pipeline_mode<synchronous>, transform_indices = @transform_1, window_bounds = array<i64: 5, 240, 512>}, {pipeline_mode = #tpu.pipeline_mode<synchronous>, transform_indices = @transform_2, window_bounds = array<i64: 1, 256>}, {pipeline_mode = #tpu.pipeline_mode<synchronous>, transform_indices = @transform_3, window_bounds = array<i64: 4, 256, 512>}, {pipeline_mode = #tpu.pipeline_mode<synchronous>, transform_indices = @transform_4, window_bounds = array<i64: 1, 512>}, {pipeline_mode = #tpu.pipeline_mode<synchronous>, transform_indices = @transform_5, window_bounds = array<i64: 512, 10>}, {pipeline_mode = #tpu.pipeline_mode<synchronous>, transform_indices = @transform_6, window_bounds = array<i64: 1, 10>}, {transform_indices = @transform_7, window_bounds = array<i64: 16, 10>}]} {
    %c0 = arith.constant 0 : index
    %c0_0 = arith.constant 0 : index
    %c0_1 = arith.constant 0 : index
    %0 = vector.load %arg1[%c0, %c0_0, %c0_1] : memref<1x192x240xbf16, #tpu.memory_space<vmem>>, vector<1x128x240xbf16>
    %1 = vector.shape_cast %0 : vector<1x128x240xbf16> to vector<128x240xbf16>
    %c0_2 = arith.constant 0 : index
    %c0_3 = arith.constant 0 : index
    %c0_4 = arith.constant 0 : index
    %2 = vector.load %arg2[%c0_2, %c0_3, %c0_4] : memref<5x240x512xbf16, #tpu.memory_space<vmem>>, vector<1x240x512xbf16>
    %3 = vector.shape_cast %2 : vector<1x240x512xbf16> to vector<240x512xbf16>
    %cst = arith.constant dense<0.000000e+00> : vector<128x512xf32>
    %4 = tpu.matmul %1, %3, %cst {dimension_numbers = #tpu.dot_dimension_numbers<[1], [0], [0], [1], [0, 0, 1, 1], [], []>} : vector<128x240xbf16>, vector<240x512xbf16>, vector<128x512xf32> -> vector<128x512xf32>
    %c0_5 = arith.constant 0 : index
    %c16 = arith.constant 16 : index
    %c0_6 = arith.constant 0 : index
    %5 = vector.load %arg1[%c0_5, %c16, %c0_6] : memref<1x192x240xbf16, #tpu.memory_space<vmem>>, vector<1x128x240xbf16>
    %6 = vector.shape_cast %5 : vector<1x128x240xbf16> to vector<128x240xbf16>
    %c1 = arith.constant 1 : index
    %c0_7 = arith.constant 0 : index
    %c0_8 = arith.constant 0 : index
    %7 = vector.load %arg2[%c1, %c0_7, %c0_8] : memref<5x240x512xbf16, #tpu.memory_space<vmem>>, vector<1x240x512xbf16>
    %8 = vector.shape_cast %7 : vector<1x240x512xbf16> to vector<240x512xbf16>
    %cst_9 = arith.constant dense<0.000000e+00> : vector<128x512xf32>
    %9 = tpu.matmul %6, %8, %cst_9 {dimension_numbers = #tpu.dot_dimension_numbers<[1], [0], [0], [1], [0, 0, 1, 1], [], []>} : vector<128x240xbf16>, vector<240x512xbf16>, vector<128x512xf32> -> vector<128x512xf32>
    %10 = arith.addf %4, %9 : vector<128x512xf32>
    %c0_10 = arith.constant 0 : index
    %c32 = arith.constant 32 : index
    %c0_11 = arith.constant 0 : index
    %11 = vector.load %arg1[%c0_10, %c32, %c0_11] : memref<1x192x240xbf16, #tpu.memory_space<vmem>>, vector<1x128x240xbf16>
    %12 = vector.shape_cast %11 : vector<1x128x240xbf16> to vector<128x240xbf16>
    %c2 = arith.constant 2 : index
    %c0_12 = arith.constant 0 : index
    %c0_13 = arith.constant 0 : index
    %13 = vector.load %arg2[%c2, %c0_12, %c0_13] : memref<5x240x512xbf16, #tpu.memory_space<vmem>>, vector<1x240x512xbf16>
    %14 = vector.shape_cast %13 : vector<1x240x512xbf16> to vector<240x512xbf16>
    %cst_14 = arith.constant dense<0.000000e+00> : vector<128x512xf32>
    %15 = tpu.matmul %12, %14, %cst_14 {dimension_numbers = #tpu.dot_dimension_numbers<[1], [0], [0], [1], [0, 0, 1, 1], [], []>} : vector<128x240xbf16>, vector<240x512xbf16>, vector<128x512xf32> -> vector<128x512xf32>
    %16 = arith.addf %10, %15 : vector<128x512xf32>
    %c0_15 = arith.constant 0 : index
    %c48 = arith.constant 48 : index
    %c0_16 = arith.constant 0 : index
    %17 = vector.load %arg1[%c0_15, %c48, %c0_16] : memref<1x192x240xbf16, #tpu.memory_space<vmem>>, vector<1x128x240xbf16>
    %18 = vector.shape_cast %17 : vector<1x128x240xbf16> to vector<128x240xbf16>
    %c3 = arith.constant 3 : index
    %c0_17 = arith.constant 0 : index
    %c0_18 = arith.constant 0 : index
    %19 = vector.load %arg2[%c3, %c0_17, %c0_18] : memref<5x240x512xbf16, #tpu.memory_space<vmem>>, vector<1x240x512xbf16>
    %20 = vector.shape_cast %19 : vector<1x240x512xbf16> to vector<240x512xbf16>
    %cst_19 = arith.constant dense<0.000000e+00> : vector<128x512xf32>
    %21 = tpu.matmul %18, %20, %cst_19 {dimension_numbers = #tpu.dot_dimension_numbers<[1], [0], [0], [1], [0, 0, 1, 1], [], []>} : vector<128x240xbf16>, vector<240x512xbf16>, vector<128x512xf32> -> vector<128x512xf32>
    %22 = arith.addf %16, %21 : vector<128x512xf32>
    %c0_20 = arith.constant 0 : index
    %c64 = arith.constant 64 : index
    %c0_21 = arith.constant 0 : index
    %23 = vector.load %arg1[%c0_20, %c64, %c0_21] : memref<1x192x240xbf16, #tpu.memory_space<vmem>>, vector<1x128x240xbf16>
    %24 = vector.shape_cast %23 : vector<1x128x240xbf16> to vector<128x240xbf16>
    %c4 = arith.constant 4 : index
    %c0_22 = arith.constant 0 : index
    %c0_23 = arith.constant 0 : index
    %25 = vector.load %arg2[%c4, %c0_22, %c0_23] : memref<5x240x512xbf16, #tpu.memory_space<vmem>>, vector<1x240x512xbf16>
    %26 = vector.shape_cast %25 : vector<1x240x512xbf16> to vector<240x512xbf16>
    %cst_24 = arith.constant dense<0.000000e+00> : vector<128x512xf32>
    %27 = tpu.matmul %24, %26, %cst_24 {dimension_numbers = #tpu.dot_dimension_numbers<[1], [0], [0], [1], [0, 0, 1, 1], [], []>} : vector<128x240xbf16>, vector<240x512xbf16>, vector<128x512xf32> -> vector<128x512xf32>
    %28 = arith.addf %22, %27 : vector<128x512xf32>
    %29 = vector.extract_strided_slice %28 {offsets = [0, 0], sizes = [128, 256], strides = [1, 1]} : vector<128x512xf32> to vector<128x256xf32>
    %30 = vector.extract_strided_slice %28 {offsets = [0, 256], sizes = [128, 256], strides = [1, 1]} : vector<128x512xf32> to vector<128x256xf32>
    %31 = arith.maximumf %29, %30 : vector<128x256xf32>
    %c0_25 = arith.constant 0 : index
    %c0_26 = arith.constant 0 : index
    %32 = vector.load %arg3[%c0_25, %c0_26] : memref<1x256xf32, #tpu.memory_space<vmem>>, vector<1x256xf32>
    %c0_27 = arith.constant 0 : index
    %c0_28 = arith.constant 0 : index
    %33 = vector.load %arg5[%c0_27, %c0_28] : memref<1x512xf32, #tpu.memory_space<vmem>>, vector<1x512xf32>
    %34 = vector.extract_strided_slice %31 {offsets = [0, 0], sizes = [16, 256], strides = [1, 1]} : vector<128x256xf32> to vector<16x256xf32>
    %35 = vector.extract_strided_slice %31 {offsets = [16, 0], sizes = [16, 256], strides = [1, 1]} : vector<128x256xf32> to vector<16x256xf32>
    %36 = arith.maximumf %34, %35 : vector<16x256xf32>
    %37 = vector.broadcast %32 : vector<1x256xf32> to vector<16x256xf32>
    %38 = arith.addf %36, %37 : vector<16x256xf32>
    %cst_29 = arith.constant 0.000000e+00 : f32
    %39 = vector.broadcast %cst_29 : f32 to vector<16x256xf32>
    %40 = arith.maximumf %38, %39 : vector<16x256xf32>
    %41 = arith.truncf %40 : vector<16x256xf32> to vector<16x256xbf16>
    %c0_30 = arith.constant 0 : index
    %c0_31 = arith.constant 0 : index
    %c0_32 = arith.constant 0 : index
    %42 = vector.load %arg4[%c0_30, %c0_31, %c0_32] : memref<4x256x512xbf16, #tpu.memory_space<vmem>>, vector<1x256x512xbf16>
    %43 = vector.shape_cast %42 : vector<1x256x512xbf16> to vector<256x512xbf16>
    %cst_33 = arith.constant dense<0.000000e+00> : vector<16x512xf32>
    %44 = tpu.matmul %41, %43, %cst_33 {dimension_numbers = #tpu.dot_dimension_numbers<[1], [0], [0], [1], [0, 0, 1, 1], [], []>} : vector<16x256xbf16>, vector<256x512xbf16>, vector<16x512xf32> -> vector<16x512xf32>
    %45 = vector.broadcast %33 : vector<1x512xf32> to vector<16x512xf32>
    %46 = arith.addf %45, %44 : vector<16x512xf32>
    %47 = vector.extract_strided_slice %31 {offsets = [32, 0], sizes = [16, 256], strides = [1, 1]} : vector<128x256xf32> to vector<16x256xf32>
    %48 = vector.extract_strided_slice %31 {offsets = [48, 0], sizes = [16, 256], strides = [1, 1]} : vector<128x256xf32> to vector<16x256xf32>
    %49 = arith.maximumf %47, %48 : vector<16x256xf32>
    %50 = vector.broadcast %32 : vector<1x256xf32> to vector<16x256xf32>
    %51 = arith.addf %49, %50 : vector<16x256xf32>
    %cst_34 = arith.constant 0.000000e+00 : f32
    %52 = vector.broadcast %cst_34 : f32 to vector<16x256xf32>
    %53 = arith.maximumf %51, %52 : vector<16x256xf32>
    %54 = arith.truncf %53 : vector<16x256xf32> to vector<16x256xbf16>
    %c1_35 = arith.constant 1 : index
    %c0_36 = arith.constant 0 : index
    %c0_37 = arith.constant 0 : index
    %55 = vector.load %arg4[%c1_35, %c0_36, %c0_37] : memref<4x256x512xbf16, #tpu.memory_space<vmem>>, vector<1x256x512xbf16>
    %56 = vector.shape_cast %55 : vector<1x256x512xbf16> to vector<256x512xbf16>
    %cst_38 = arith.constant dense<0.000000e+00> : vector<16x512xf32>
    %57 = tpu.matmul %54, %56, %cst_38 {dimension_numbers = #tpu.dot_dimension_numbers<[1], [0], [0], [1], [0, 0, 1, 1], [], []>} : vector<16x256xbf16>, vector<256x512xbf16>, vector<16x512xf32> -> vector<16x512xf32>
    %58 = arith.addf %46, %57 : vector<16x512xf32>
    %59 = vector.extract_strided_slice %31 {offsets = [64, 0], sizes = [16, 256], strides = [1, 1]} : vector<128x256xf32> to vector<16x256xf32>
    %60 = vector.extract_strided_slice %31 {offsets = [80, 0], sizes = [16, 256], strides = [1, 1]} : vector<128x256xf32> to vector<16x256xf32>
    %61 = arith.maximumf %59, %60 : vector<16x256xf32>
    %62 = vector.broadcast %32 : vector<1x256xf32> to vector<16x256xf32>
    %63 = arith.addf %61, %62 : vector<16x256xf32>
    %cst_39 = arith.constant 0.000000e+00 : f32
    %64 = vector.broadcast %cst_39 : f32 to vector<16x256xf32>
    %65 = arith.maximumf %63, %64 : vector<16x256xf32>
    %66 = arith.truncf %65 : vector<16x256xf32> to vector<16x256xbf16>
    %c2_40 = arith.constant 2 : index
    %c0_41 = arith.constant 0 : index
    %c0_42 = arith.constant 0 : index
    %67 = vector.load %arg4[%c2_40, %c0_41, %c0_42] : memref<4x256x512xbf16, #tpu.memory_space<vmem>>, vector<1x256x512xbf16>
    %68 = vector.shape_cast %67 : vector<1x256x512xbf16> to vector<256x512xbf16>
    %cst_43 = arith.constant dense<0.000000e+00> : vector<16x512xf32>
    %69 = tpu.matmul %66, %68, %cst_43 {dimension_numbers = #tpu.dot_dimension_numbers<[1], [0], [0], [1], [0, 0, 1, 1], [], []>} : vector<16x256xbf16>, vector<256x512xbf16>, vector<16x512xf32> -> vector<16x512xf32>
    %70 = arith.addf %58, %69 : vector<16x512xf32>
    %71 = vector.extract_strided_slice %31 {offsets = [96, 0], sizes = [16, 256], strides = [1, 1]} : vector<128x256xf32> to vector<16x256xf32>
    %72 = vector.extract_strided_slice %31 {offsets = [112, 0], sizes = [16, 256], strides = [1, 1]} : vector<128x256xf32> to vector<16x256xf32>
    %73 = arith.maximumf %71, %72 : vector<16x256xf32>
    %74 = vector.broadcast %32 : vector<1x256xf32> to vector<16x256xf32>
    %75 = arith.addf %73, %74 : vector<16x256xf32>
    %cst_44 = arith.constant 0.000000e+00 : f32
    %76 = vector.broadcast %cst_44 : f32 to vector<16x256xf32>
    %77 = arith.maximumf %75, %76 : vector<16x256xf32>
    %78 = arith.truncf %77 : vector<16x256xf32> to vector<16x256xbf16>
    %c3_45 = arith.constant 3 : index
    %c0_46 = arith.constant 0 : index
    %c0_47 = arith.constant 0 : index
    %79 = vector.load %arg4[%c3_45, %c0_46, %c0_47] : memref<4x256x512xbf16, #tpu.memory_space<vmem>>, vector<1x256x512xbf16>
    %80 = vector.shape_cast %79 : vector<1x256x512xbf16> to vector<256x512xbf16>
    %cst_48 = arith.constant dense<0.000000e+00> : vector<16x512xf32>
    %81 = tpu.matmul %78, %80, %cst_48 {dimension_numbers = #tpu.dot_dimension_numbers<[1], [0], [0], [1], [0, 0, 1, 1], [], []>} : vector<16x256xbf16>, vector<256x512xbf16>, vector<16x512xf32> -> vector<16x512xf32>
    %82 = arith.addf %70, %81 : vector<16x512xf32>
    %cst_49 = arith.constant 0.000000e+00 : f32
    %83 = vector.broadcast %cst_49 : f32 to vector<16x512xf32>
    %84 = arith.maximumf %82, %83 : vector<16x512xf32>
    %85 = arith.truncf %84 : vector<16x512xf32> to vector<16x512xbf16>
    %c0_50 = arith.constant 0 : index
    %c0_51 = arith.constant 0 : index
    %86 = vector.load %arg6[%c0_50, %c0_51] : memref<512x10xbf16, #tpu.memory_space<vmem>>, vector<512x10xbf16>
    %cst_52 = arith.constant dense<0.000000e+00> : vector<16x10xf32>
    %87 = tpu.matmul %85, %86, %cst_52 {dimension_numbers = #tpu.dot_dimension_numbers<[1], [0], [0], [1], [0, 0, 1, 1], [], []>} : vector<16x512xbf16>, vector<512x10xbf16>, vector<16x10xf32> -> vector<16x10xf32>
    %c0_53 = arith.constant 0 : index
    %c0_54 = arith.constant 0 : index
    %88 = vector.load %arg7[%c0_53, %c0_54] : memref<1x10xf32, #tpu.memory_space<vmem>>, vector<1x10xf32>
    %89 = vector.broadcast %88 : vector<1x10xf32> to vector<16x10xf32>
    %90 = arith.addf %87, %89 : vector<16x10xf32>
    %cst_55 = arith.constant dense<0xFF800000> : vector<16xf32>
    %91 = vector.multi_reduction <maximumf>, %90, %cst_55 [1] : vector<16x10xf32> to vector<16xf32>
    %92 = vector.shape_cast %91 : vector<16xf32> to vector<16x1xf32>
    %93 = vector.broadcast %92 : vector<16x1xf32> to vector<16x10xf32>
    %94 = arith.subf %90, %93 : vector<16x10xf32>
    %95 = math.exp %94 : vector<16x10xf32>
    %cst_56 = arith.constant dense<0.000000e+00> : vector<16xf32>
    %96 = vector.multi_reduction <add>, %95, %cst_56 [1] : vector<16x10xf32> to vector<16xf32>
    %97 = vector.shape_cast %96 : vector<16xf32> to vector<16x1xf32>
    %98 = math.log %97 : vector<16x1xf32>
    %99 = vector.broadcast %98 : vector<16x1xf32> to vector<16x10xf32>
    %100 = arith.subf %94, %99 : vector<16x10xf32>
    %c0_57 = arith.constant 0 : index
    %c0_58 = arith.constant 0 : index
    %101 = vector.load %arg8[%c0_57, %c0_58] : memref<16x10xf32, #tpu.memory_space<vmem>>, vector<16x10xf32>
    tpu.vector_store %arg8[%c0_57, %c0_58], %100 {strides = array<i32>} : memref<16x10xf32, #tpu.memory_space<vmem>>, vector<16x10xf32>,
    return
  }
  func.func @transform_0(%arg0: i32) -> (i32, i32, i32) {
    %c0_i32 = arith.constant 0 : i32
    %c0_i32_0 = arith.constant 0 : i32
    %c0_i32_1 = arith.constant 0 : i32
    return %arg0, %c0_i32, %c0_i32_0 : i32, i32, i32
  }
  func.func @transform_1(%arg0: i32) -> (i32, i32, i32) {
    %c0_i32 = arith.constant 0 : i32
    %c0_i32_0 = arith.constant 0 : i32
    %c0_i32_1 = arith.constant 0 : i32
    %c0_i32_2 = arith.constant 0 : i32
    return %c0_i32, %c0_i32_0, %c0_i32_1 : i32, i32, i32
  }
  func.func @transform_2(%arg0: i32) -> (i32, i32) {
    %c0_i32 = arith.constant 0 : i32
    %c0_i32_0 = arith.constant 0 : i32
    %c0_i32_1 = arith.constant 0 : i32
    return %c0_i32, %c0_i32_0 : i32, i32
  }
  func.func @transform_3(%arg0: i32) -> (i32, i32, i32) {
    %c0_i32 = arith.constant 0 : i32
    %c0_i32_0 = arith.constant 0 : i32
    %c0_i32_1 = arith.constant 0 : i32
    %c0_i32_2 = arith.constant 0 : i32
    return %c0_i32, %c0_i32_0, %c0_i32_1 : i32, i32, i32
  }
  func.func @transform_4(%arg0: i32) -> (i32, i32) {
    %c0_i32 = arith.constant 0 : i32
    %c0_i32_0 = arith.constant 0 : i32
    %c0_i32_1 = arith.constant 0 : i32
    return %c0_i32, %c0_i32_0 : i32, i32
  }
  func.func @transform_5(%arg0: i32) -> (i32, i32) {
    %c0_i32 = arith.constant 0 : i32
    %c0_i32_0 = arith.constant 0 : i32
    %c0_i32_1 = arith.constant 0 : i32
    return %c0_i32, %c0_i32_0 : i32, i32
  }
  func.func @transform_6(%arg0: i32) -> (i32, i32) {
    %c0_i32 = arith.constant 0 : i32
    %c0_i32_0 = arith.constant 0 : i32
    %c0_i32_1 = arith.constant 0 : i32
    return %c0_i32, %c0_i32_0 : i32, i32
  }
  func.func @transform_7(%arg0: i32) -> (i32, i32) {
    %c0_i32 = arith.constant 0 : i32
    %c0_i32_0 = arith.constant 0 : i32
    return %arg0, %c0_i32 : i32, i32
  }
}

</mosaic_0001>

<bundles_post_ra>
// kernel: tile.8
= control target key start
LH: loop header
LB: loop body
LE: loop exit
PB: predicated region body
PF: predicated region fallthrough
CT: control target
= control target key end

     0   :  { %s22_s0 = inlined_call_operand.vmem [shape: f32[64], index: 0, kind: input, shape index: {}]   ;;  %s23_s1 = inlined_call_operand.vmem [shape: f32[4,64], index: 1, kind: output, shape index: {}]  }
   0x1   :  { %v4_v0 = vld [vmem:[%s22_s0] ss:$0 sm:$0xff] }
   0x2   :  { %5 = vst [vmem:[%s23_s1] sm:$0xf] %v4_v0 }

// kernel: tile.9
= control target key start
LH: loop header
LB: loop body
LE: loop exit
PB: predicated region body
PF: predicated region fallthrough
CT: control target
= control target key end

     0   :  { %s6_s8 = smov 3  ;;  %vm8_vm0 = vcmask 523264   ;;  %s30_s9 = smov 64   ;;  %vm15_vm1 = vcmask 1048064   ;;  %s50_s0 = inlined_call_operand.vmem [shape: f32[4,64], index: 0, kind: input, shape index: {}]   ;;  %s51_s1 = inlined_call_operand.vmem [shape: f32[1,256], index: 1, kind: output, shape index: {}]  }
   0x1   :  { %v4_v0 = vld [vmem:[%s50_s0] sm:$0xf]  ;;  %s11_s0 = smov 3 }
   0x2   :  { %5 = vst [vmem:[#allocation1] sm:$0xf] %v4_v0 }
   0x9   :  { %v12_v1 = vld [vmem:[#allocation1 + $0x1] ss:$2 sm:%s11_s0]   ;;  %v7_v2 = vld [vmem:[#allocation1] ss:$2 sm:%s6_s8]  }
   0xa   :  { %13 = vrot.lane.b32.xlu0 %v12_v1, %s30_s9  ;;  %9 = vst.msk [vmem:[#allocation0] ss:$8 sm:$0x3] %vm8_vm0, %v7_v2  }
  0x7c   :  { %v14_v3 = vpop.permute.xlu0 %13  }
  0x7d   :  { %16 = vst.msk [vmem:[#allocation0] ss:$8 sm:$0x3] %vm15_vm1, %v14_v3  }
  0x84   :  { %v20_v4 = vld [vmem:[#allocation0] sm:$0x1]  ;;  %v24_v5 = vld [vmem:[#allocation0 + $0x8] sm:$0x1] }
  0x85   :  { %22 = vst [vmem:[%s51_s1] sm:$0x1] %v20_v4  ;;  %28 = vst [vmem:[%s51_s1 + $0x1] sm:$0x1] %v24_v5 }

// kernel: net2_forward.1
= control target key start
LH: loop header
LB: loop body
LE: loop exit
PB: predicated region body
PF: predicated region fallthrough
CT: control target
= control target key end

     0   :  { %vm538_vm0 = vcmask 916480   ;;  %vm6010_vm1 = vcmask 80896   ;;  %s10747_s1 = inlined_call_operand.vmem [shape: bf16[5,240,512], index: 1, kind: input, shape index: {}]   ;;  %s10748_s0 = inlined_call_operand.vmem [shape: bf16[1,192,240], index: 0, kind: input, shape index: {}]   ;;  %s10749_s3 = inlined_call_operand.vmem [shape: bf16[4,256,512], index: 3, kind: input, shape index: {}]   ;;  %s10750_s2 = inlined_call_operand.vmem [shape: f32[1,256], index: 2, kind: input, shape index: {}]   ;;  %s10751_s5 = inlined_call_operand.vmem [shape: bf16[512,10], index: 5, kind: input, shape index: {}]   ;;  %s10752_s4 = inlined_call_operand.vmem [shape: f32[1,512], index: 4, kind: input, shape index: {}]   ;;  %s10753_s6 = inlined_call_operand.vmem [shape: f32[1,10], index: 6, kind: input, shape index: {}]   ;;  %s10754_s7 = inlined_call_operand.vmem [shape: f32[16,10], index: 7, kind: output, shape index: {}]  }
   0x1   :  { %v7540_v0 = vld [vmem:[%s10747_s1 + $0x1e4] ss:$16 sps:$4 sm:$0xff]   ;;  %v7542_v1 = vld [vmem:[%s10747_s1 + $0x1ec] ss:$16 sps:$4 sm:$0xff]   ;;  %v7544_v2 = vld [vmem:[%s10747_s1 + $0x1e0] ss:$16 sps:$4 sm:$0xff]  }
   0x2   :  { %563 = vmatprep.subr.bf16.mxu0 %v7540_v0  ;;  %v7545_v3 = vld [vmem:[%s10747_s1 + $0x1e8] ss:$16 sps:$4 sm:$0xff]   ;;  %676 = vmatprep.subr.bf16.mxu1 %v7542_v1  ;;  %v7546_v4 = vld [vmem:[%s10747_s1 + $0x204] ss:$16 sps:$4 sm:$0xff]   ;;  %v7548_v5 = vld [vmem:[%s10747_s1 + $0x20c] ss:$16 sps:$4 sm:$0xff]  }
   0x3   :  { %564 = vmatpush1.bf16.msra.mxu0 %v7544_v2  ;;  %677 = vmatpush1.bf16.msra.mxu1 %v7545_v3  ;;  %v7550_v6 = vld [vmem:[%s10747_s1 + $0x200] ss:$16 sps:$4 sm:$0xff]   ;;  %v7551_v7 = vld [vmem:[%s10747_s1 + $0x208] ss:$16 sps:$4 sm:$0xff]   ;;  %v7552_v8 = vld [vmem:[%s10747_s1 + $0x224] ss:$16 sps:$4 sm:$0xff]  }
   0x4   :  { %565 = vmatprep.subr.bf16.mxu0 %v7546_v4  ;;  %678 = vmatprep.subr.bf16.mxu1 %v7548_v5  ;;  %v7554_v9 = vld [vmem:[%s10747_s1 + $0x22c] ss:$16 sps:$4 sm:$0xff]   ;;  %v7556_v10 = vld [vmem:[%s10747_s1 + $0x220] ss:$16 sps:$4 sm:$0xff]   ;;  %v7557_v11 = vld [vmem:[%s10747_s1 + $0x228] ss:$16 sps:$4 sm:$0xff]  }
   0x5   :  { %v7558_v12 = vld [vmem:[%s10747_s1 + $0x244] ss:$16 sps:$4 sm:$0xff]   ;;  %v7560_v13 = vld [vmem:[%s10747_s1 + $0x24c] ss:$16 sps:$4 sm:$0xff]   ;;  %v7562_v14 = vld [vmem:[%s10747_s1 + $0x240] ss:$16 sps:$4 sm:$0xff]  }
   0x6   :  { %v7563_v15 = vld [vmem:[%s10747_s1 + $0x248] ss:$16 sps:$4 sm:$0xff]   ;;  %v7564_v16 = vld [vmem:[%s10747_s1 + $0x264] ss:$16 sps:$4 sm:$0xff]   ;;  %v7566_v17 = vld [vmem:[%s10747_s1 + $0x26c] ss:$16 sps:$4 sm:$0xff]  }
   0x7   :  { %566 = vmatpush1.bf16.msra.mxu0 %v7550_v6  ;;  %679 = vmatpush1.bf16.msra.mxu1 %v7551_v7  ;;  %v7568_v18 = vld [vmem:[%s10747_s1 + $0x260] ss:$16 sps:$4 sm:$0xff]   ;;  %v7569_v19 = vld [vmem:[%s10747_s1 + $0x268] ss:$16 sps:$4 sm:$0xff]   ;;  %v7570_v20 = vld [vmem:[%s10747_s1 + $0x284] ss:$16 sps:$4 sm:$0xff]  }
   0x8   :  { %567 = vmatprep.subr.bf16.mxu0 %v7552_v8  ;;  %680 = vmatprep.subr.bf16.mxu1 %v7554_v9  ;;  %v7572_v21 = vld [vmem:[%s10747_s1 + $0x28c] ss:$16 sps:$4 sm:$0xff]   ;;  %v7574_v22 = vld [vmem:[%s10747_s1 + $0x280] ss:$16 sps:$4 sm:$0xff]   ;;  %v7575_v23 = vld [vmem:[%s10747_s1 + $0x288] ss:$16 sps:$4 sm:$0xff]  }
   0x9   :  { %v7576_v24 = vld [vmem:[%s10747_s1 + $0x2a4] ss:$16 sps:$4 sm:$0xff]   ;;  %v7578_v25 = vld [vmem:[%s10747_s1 + $0x2ac] ss:$16 sps:$4 sm:$0xff]   ;;  %v7580_v26 = vld [vmem:[%s10747_s1 + $0x2a0] ss:$16 sps:$4 sm:$0xff]  }
   0xa   :  { %v7581_v27 = vld [vmem:[%s10747_s1 + $0x2a8] ss:$16 sps:$4 sm:$0xff]   ;;  %v7582_v28 = vld [vmem:[%s10747_s1 + $0x2c4] ss:$16 sps:$4 sm:$0xff]   ;;  %v7584_v29 = vld [vmem:[%s10747_s1 + $0x2cc] ss:$16 sps:$4 sm:$0xff]  }
   0xb   :  { %568 = vmatpush1.bf16.msra.mxu0 %v7556_v10  ;;  %681 = vmatpush1.bf16.msra.mxu1 %v7557_v11  ;;  %v7586_v30 = vld [vmem:[%s10747_s1 + $0x2c0] ss:$16 sps:$4 sm:$0xff]   ;;  %v7587_v31 = vld [vmem:[%s10747_s1 + $0x2c8] ss:$16 sps:$4 sm:$0xff]   ;;  %v7588_v32 = vld [vmem:[%s10747_s1 + $0x2e4] ss:$16 sps:$4 sm:$0xff]  }
   0xc   :  { %569 = vmatprep.subr.bf16.mxu0 %v7558_v12  ;;  %682 = vmatprep.subr.bf16.mxu1 %v7560_v13  ;;  %v7590_v33 = vld [vmem:[%s10747_s1 + $0x2ec] ss:$16 sps:$4 sm:$0xff]   ;;  %v7592_v34 = vld [vmem:[%s10747_s1 + $0x2e0] ss:$16 sps:$4 sm:$0xff]   ;;  %v7593_v35 = vld [vmem:[%s10747_s1 + $0x2e8] ss:$16 sps:$4 sm:$0xff]  }
   0xd   :  { %v7594_v36 = vld [vmem:[%s10747_s1 + $0x304] ss:$16 sps:$4 sm:$0xff]   ;;  %v7596_v37 = vld [vmem:[%s10747_s1 + $0x30c] ss:$16 sps:$4 sm:$0xff]   ;;  %v7598_v38 = vld [vmem:[%s10747_s1 + $0x300] ss:$16 sps:$4 sm:$0xff]  }
   0xe   :  { %v7599_v39 = vld [vmem:[%s10747_s1 + $0x308] ss:$16 sps:$4 sm:$0xff]   ;;  %v7600_v40 = vld [vmem:[%s10747_s1 + $0x324] ss:$16 sps:$4 sm:$0xff]   ;;  %v7602_v41 = vld [vmem:[%s10747_s1 + $0x32c] ss:$16 sps:$4 sm:$0xff]  }
   0xf   :  { %570 = vmatpush1.bf16.msra.mxu0 %v7562_v14  ;;  %683 = vmatpush1.bf16.msra.mxu1 %v7563_v15  ;;  %v7604_v42 = vld [vmem:[%s10747_s1 + $0x320] ss:$16 sps:$4 sm:$0xff]   ;;  %v7605_v43 = vld [vmem:[%s10747_s1 + $0x328] ss:$16 sps:$4 sm:$0xff]   ;;  %v7606_v44 = vld [vmem:[%s10747_s1 + $0x344] ss:$16 sps:$4 sm:$0xff]  }
  0x10   :  { %571 = vmatprep.subr.bf16.mxu0 %v7564_v16  ;;  %684 = vmatprep.subr.bf16.mxu1 %v7566_v17  ;;  %v8648_v45 = vld [vmem:[%s10748_s0 + $0x14] ss:$8 sps:$4 sm:$0xff]   ;;  %v7610_v47 = vld [vmem:[%s10747_s1 + $0x340] ss:$16 sps:$4 sm:$0xff]   ;;  %v7611_v48 = vld [vmem:[%s10747_s1 + $0x348] ss:$16 sps:$4 sm:$0xff]  }
  0x11   :  { %v7608_v46 = vld [vmem:[%s10747_s1 + $0x34c] ss:$16 sps:$4 sm:$0xff]   ;;  %6177 = vmatprep.mubr.msk.bf16.mxu0 %vm538_vm0, %v8648_v45  ;;  %6185 = vmatprep.mubr.msk.bf16.mxu1 %vm538_vm0, %v8648_v45  ;;  %v7612_v49 = vld [vmem:[%s10747_s1 + $0x364] ss:$16 sps:$4 sm:$0xff]   ;;  %v7616_v51 = vld [vmem:[%s10747_s1 + $0x360] ss:$16 sps:$4 sm:$0xff]  }
  0x12   :  { %v7614_v50 = vld [vmem:[%s10747_s1 + $0x36c] ss:$16 sps:$4 sm:$0xff]   ;;  %v7617_v52 = vld [vmem:[%s10747_s1 + $0x368] ss:$16 sps:$4 sm:$0xff]   ;;  %v7618_v53 = vld [vmem:[%s10747_s1 + $0x384] ss:$16 sps:$4 sm:$0xff]  }
  0x13   :  { %572 = vmatpush1.bf16.msra.mxu0 %v7568_v18  ;;  %685 = vmatpush1.bf16.msra.mxu1 %v7569_v19  ;;  %v7620_v54 = vld [vmem:[%s10747_s1 + $0x38c] ss:$16 sps:$4 sm:$0xff]   ;;  %v7622_v55 = vld [vmem:[%s10747_s1 + $0x380] ss:$16 sps:$4 sm:$0xff]   ;;  %v7623_v56 = vld [vmem:[%s10747_s1 + $0x388] ss:$16 sps:$4 sm:$0xff]  }
  0x14   :  { %573 = vmatprep.subr.bf16.mxu0 %v7570_v20  ;;  %686 = vmatprep.subr.bf16.mxu1 %v7572_v21  ;;  %v7624_v57 = vld [vmem:[%s10747_s1 + $0x3a4] ss:$16 sps:$4 sm:$0xff]   ;;  %v7626_v58 = vld [vmem:[%s10747_s1 + $0x3ac] ss:$16 sps:$4 sm:$0xff]   ;;  %v7628_v59 = vld [vmem:[%s10747_s1 + $0x3a0] ss:$16 sps:$4 sm:$0xff]  }
  0x15   :  { %v7629_v60 = vld [vmem:[%s10747_s1 + $0x3a8] ss:$16 sps:$4 sm:$0xff]   ;;  %v7635_v61 = vld [vmem:[%s10747_s1 + $0x4] ss:$16 sps:$4 sm:$0xff]   ;;  %v7638_v62 = vld [vmem:[%s10747_s1 + $0xc] ss:$16 sps:$4 sm:$0xff]  }
  0x16   :  { %v8708_v63 = vld [vmem:[%s10748_s0 + $0x10] ss:$8 sps:$4 sm:$0xff]   ;;  %v7641_v2 = vld [vmem:[%s10747_s1 + $0x24] ss:$16 sps:$4 sm:$0xff]   ;;  %v7644_v3 = vld [vmem:[%s10747_s1 + $0x2c] ss:$16 sps:$4 sm:$0xff]  }
  0x17   :  { %574 = vmatpush1.bf16.msra.mxu0 %v7574_v22  ;;  %687 = vmatpush1.bf16.msra.mxu1 %v7575_v23  ;;  %v7633_v0 = vld [vmem:[%s10747_s1] ss:$16 sps:$4 sm:$0xff]   ;;  %v7636_v1 = vld [vmem:[%s10747_s1 + $0x8] ss:$16 sps:$4 sm:$0xff]   ;;  %v8725_v4 = vld [vmem:[%s10748_s0 + $0x24] ss:$8 sps:$4 sm:$0xff]  }
  0x18   :  { %575 = vmatprep.subr.bf16.mxu0 %v7576_v24  ;;  %688 = vmatprep.subr.bf16.mxu1 %v7578_v25  ;;  %v7639_v5 = vld [vmem:[%s10747_s1 + $0x20] ss:$16 sps:$4 sm:$0xff]   ;;  %v7642_v6 = vld [vmem:[%s10747_s1 + $0x28] ss:$16 sps:$4 sm:$0xff]   ;;  %v7650_v7 = vld [vmem:[%s10747_s1 + $0x44] ss:$16 sps:$4 sm:$0xff]  }
  0x19   :  { %v7653_v8 = vld [vmem:[%s10747_s1 + $0x4c] ss:$16 sps:$4 sm:$0xff]   ;;  %v8748_v9 = vld [vmem:[%s10748_s0 + $0x20] ss:$8 sps:$4 sm:$0xff]   ;;  %v7656_v12 = vld [vmem:[%s10747_s1 + $0x64] ss:$16 sps:$4 sm:$0xff]  }
  0x1a   :  { %v7648_v10 = vld [vmem:[%s10747_s1 + $0x40] ss:$16 sps:$4 sm:$0xff]   ;;  %v7651_v11 = vld [vmem:[%s10747_s1 + $0x48] ss:$16 sps:$4 sm:$0xff]   ;;  %v7659_v13 = vld [vmem:[%s10747_s1 + $0x6c] ss:$16 sps:$4 sm:$0xff]  }
  0x1b   :  { %576 = vmatpush1.bf16.msra.mxu0 %v7580_v26  ;;  %689 = vmatpush1.bf16.msra.mxu1 %v7581_v27  ;;  %v8765_v14 = vld [vmem:[%s10748_s0 + $0x34] ss:$8 sps:$4 sm:$0xff]   ;;  %v7654_v15 = vld [vmem:[%s10747_s1 + $0x60] ss:$16 sps:$4 sm:$0xff]   ;;  %v7657_v16 = vld [vmem:[%s10747_s1 + $0x68] ss:$16 sps:$4 sm:$0xff]  }
  0x1c   :  { %577 = vmatprep.subr.bf16.mxu0 %v7582_v28  ;;  %690 = vmatprep.subr.bf16.mxu1 %v7584_v29  ;;  %v7665_v17 = vld [vmem:[%s10747_s1 + $0x84] ss:$16 sps:$4 sm:$0xff]   ;;  %v7668_v18 = vld [vmem:[%s10747_s1 + $0x8c] ss:$16 sps:$4 sm:$0xff]   ;;  %v8788_v19 = vld [vmem:[%s10748_s0 + $0x30] ss:$8 sps:$4 sm:$0xff]  }
  0x1d   :  { %v7663_v20 = vld [vmem:[%s10747_s1 + $0x80] ss:$16 sps:$4 sm:$0xff]   ;;  %v7666_v21 = vld [vmem:[%s10747_s1 + $0x88] ss:$16 sps:$4 sm:$0xff]   ;;  %v7671_v22 = vld [vmem:[%s10747_s1 + $0xa4] ss:$16 sps:$4 sm:$0xff]  }
  0x1e   :  { %v7674_v23 = vld [vmem:[%s10747_s1 + $0xac] ss:$16 sps:$4 sm:$0xff]   ;;  %v7669_v25 = vld [vmem:[%s10747_s1 + $0xa0] ss:$16 sps:$4 sm:$0xff]   ;;  %v7672_v26 = vld [vmem:[%s10747_s1 + $0xa8] ss:$16 sps:$4 sm:$0xff]  }
  0x1f   :  { %578 = vmatpush1.bf16.msra.mxu0 %v7586_v30  ;;  %691 = vmatpush1.bf16.msra.mxu1 %v7587_v31  ;;  %v8805_v24 = vld [vmem:[%s10748_s0 + $0x44] ss:$8 sps:$4 sm:$0xff]   ;;  %v8828_v29 = vld [vmem:[%s10748_s0 + $0x40] ss:$8 sps:$4 sm:$0xff]  }
  0x20   :  { %579 = vmatprep.subr.bf16.mxu0 %v7588_v32  ;;  %692 = vmatprep.subr.bf16.mxu1 %v7590_v33  ;;  %v7680_v27 = vld [vmem:[%s10747_s1 + $0xc4] ss:$16 sps:$4 sm:$0xff]   ;;  %v7683_v28 = vld [vmem:[%s10747_s1 + $0xcc] ss:$16 sps:$4 sm:$0xff]   ;;  %v7678_v30 = vld [vmem:[%s10747_s1 + $0xc0] ss:$16 sps:$4 sm:$0xff]  }
  0x21   :  { %v7681_v31 = vld [vmem:[%s10747_s1 + $0xc8] ss:$16 sps:$4 sm:$0xff]   ;;  %v7686_v32 = vld [vmem:[%s10747_s1 + $0xe4] ss:$16 sps:$4 sm:$0xff]   ;;  %v7689_v33 = vld [vmem:[%s10747_s1 + $0xec] ss:$16 sps:$4 sm:$0xff]  }
  0x23   :  { %580 = vmatpush1.bf16.msra.mxu0 %v7592_v34  ;;  %693 = vmatpush1.bf16.msra.mxu1 %v7593_v35  ;;  %v8845_v34 = vld [vmem:[%s10748_s0 + $0x54] ss:$8 sps:$4 sm:$0xff]   ;;  %v7684_v35 = vld [vmem:[%s10747_s1 + $0xe0] ss:$16 sps:$4 sm:$0xff]  }
  0x24   :  { %581 = vmatprep.subr.bf16.mxu0 %v7594_v36  ;;  %694 = vmatprep.subr.bf16.mxu1 %v7596_v37  ;;  %v7687_v36 = vld [vmem:[%s10747_s1 + $0xe8] ss:$16 sps:$4 sm:$0xff]   ;;  %v7695_v37 = vld [vmem:[%s10747_s1 + $0x104] ss:$16 sps:$4 sm:$0xff]  }
  0x27   :  { %582 = vmatpush1.bf16.msra.mxu0 %v7598_v38  ;;  %695 = vmatpush1.bf16.msra.mxu1 %v7599_v39  ;;  %v7698_v38 = vld [vmem:[%s10747_s1 + $0x10c] ss:$16 sps:$4 sm:$0xff]   ;;  %v8868_v39 = vld [vmem:[%s10748_s0 + $0x50] ss:$8 sps:$4 sm:$0xff]  }
  0x28   :  { %583 = vmatprep.subr.bf16.mxu0 %v7600_v40  ;;  %696 = vmatprep.subr.bf16.mxu1 %v7602_v41  ;;  %v7693_v40 = vld [vmem:[%s10747_s1 + $0x100] ss:$16 sps:$4 sm:$0xff]   ;;  %v7696_v41 = vld [vmem:[%s10747_s1 + $0x108] ss:$16 sps:$4 sm:$0xff]  }
  0x2b   :  { %584 = vmatpush1.bf16.msra.mxu0 %v7604_v42  ;;  %697 = vmatpush1.bf16.msra.mxu1 %v7605_v43  ;;  %v8879_v42 = vld [vmem:[%s10748_s0 + $0x64] ss:$8 sps:$4 sm:$0xff]  }
  0x2c   :  { %585 = vmatprep.subr.bf16.mxu0 %v7606_v44  ;;  %698 = vmatprep.subr.bf16.mxu1 %v7608_v46  ;;  %v7703_v43 = vld [vmem:[%s10747_s1 + $0x124] ss:$16 sps:$4 sm:$0xff]   ;;  %v7706_v44 = vld [vmem:[%s10747_s1 + $0x12c] ss:$16 sps:$4 sm:$0xff]   ;;  %v7701_v46 = vld [vmem:[%s10747_s1 + $0x120] ss:$16 sps:$4 sm:$0xff]  }
  0x2f   :  { %586 = vmatpush1.bf16.msra.mxu0 %v7610_v47  ;;  %699 = vmatpush1.bf16.msra.mxu1 %v7611_v48  ;;  %v7704_v47 = vld [vmem:[%s10747_s1 + $0x128] ss:$16 sps:$4 sm:$0xff]   ;;  %v7710_v48 = vld [vmem:[%s10747_s1 + $0x144] ss:$16 sps:$4 sm:$0xff]  }
  0x30   :  { %587 = vmatprep.subr.bf16.mxu0 %v7612_v49  ;;  %700 = vmatprep.subr.bf16.mxu1 %v7614_v50  ;;  %v7713_v49 = vld [vmem:[%s10747_s1 + $0x14c] ss:$16 sps:$4 sm:$0xff]   ;;  %v8908_v50 = vld [vmem:[%s10748_s0 + $0x60] ss:$8 sps:$4 sm:$0xff]  }
  0x33   :  { %588 = vmatpush1.bf16.msra.mxu0 %v7616_v51  ;;  %701 = vmatpush1.bf16.msra.mxu1 %v7617_v52  ;;  %v7708_v51 = vld [vmem:[%s10747_s1 + $0x140] ss:$16 sps:$4 sm:$0xff]   ;;  %v7711_v52 = vld [vmem:[%s10747_s1 + $0x148] ss:$16 sps:$4 sm:$0xff]  }
  0x34   :  { %589 = vmatprep.subr.bf16.mxu0 %v7618_v53  ;;  %702 = vmatprep.subr.bf16.mxu1 %v7620_v54  ;;  %v8919_v53 = vld [vmem:[%s10748_s0 + $0x74] ss:$8 sps:$4 sm:$0xff]  }
  0x35   :  { %v7718_v54 = vld [vmem:[%s10747_s1 + $0x164] ss:$16 sps:$4 sm:$0xff]  }
  0x37   :  { %590 = vmatpush1.bf16.msra.mxu0 %v7622_v55  ;;  %703 = vmatpush1.bf16.msra.mxu1 %v7623_v56  ;;  %v7721_v55 = vld [vmem:[%s10747_s1 + $0x16c] ss:$16 sps:$4 sm:$0xff]   ;;  %v7716_v56 = vld [vmem:[%s10747_s1 + $0x160] ss:$16 sps:$4 sm:$0xff]  }
  0x38   :  { %591 = vmatprep.subr.bf16.mxu0 %v7624_v57  ;;  %704 = vmatprep.subr.bf16.mxu1 %v7626_v58  ;;  %v7719_v57 = vld [vmem:[%s10747_s1 + $0x168] ss:$16 sps:$4 sm:$0xff]   ;;  %v7725_v58 = vld [vmem:[%s10747_s1 + $0x184] ss:$16 sps:$4 sm:$0xff]  }
  0x3b   :  { %592 = vmatpush1.bf16.msra.mxu0 %v7628_v59  ;;  %705 = vmatpush1.bf16.msra.mxu1 %v7629_v60  ;;  %v7728_v59 = vld [vmem:[%s10747_s1 + $0x18c] ss:$16 sps:$4 sm:$0xff]   ;;  %v8948_v60 = vld [vmem:[%s10748_s0 + $0x70] ss:$8 sps:$4 sm:$0xff]  }
  0x3c   :  { %1101 = vmatprep.subr.bf16.mxu0 %v7635_v61  ;;  %1214 = vmatprep.subr.bf16.mxu1 %v7638_v62  ;;  %v7723_v61 = vld [vmem:[%s10747_s1 + $0x180] ss:$16 sps:$4 sm:$0xff]   ;;  %v7726_v62 = vld [vmem:[%s10747_s1 + $0x188] ss:$16 sps:$4 sm:$0xff]  }
  0x3e   :  { %596 = vmatmul.mubr.bf16.vlgmr.msra.gmra.mrb[0].mxu0 %v8708_v63  ;;  %709 = vmatmul.mubr.bf16.vlgmr.msra.gmra.mrb[0].mxu1 %v8708_v63 }
  0x3f   :  { %1102 = vmatpush1.bf16.msra.mxu0 %v7633_v0  ;;  %1215 = vmatpush1.bf16.msra.mxu1 %v7636_v1  ;;  %v8959_v0 = vld [vmem:[%s10748_s0 + $0x84] ss:$8 sps:$4 sm:$0xff]  }
  0x40   :  { %1103 = vmatprep.subr.bf16.mxu0 %v7641_v2  ;;  %1216 = vmatprep.subr.bf16.mxu1 %v7644_v3  ;;  %v7734_v1 = vld [vmem:[%s10747_s1 + $0x1a4] ss:$16 sps:$4 sm:$0xff]   ;;  %v7737_v2 = vld [vmem:[%s10747_s1 + $0x1ac] ss:$16 sps:$4 sm:$0xff]   ;;  %v7732_v3 = vld [vmem:[%s10747_s1 + $0x1a0] ss:$16 sps:$4 sm:$0xff]  }
  0x41   :  { %6178 = vmatprep.mubr.msk.bf16.mxu0 %vm538_vm0, %v8725_v4  ;;  %6186 = vmatprep.mubr.msk.bf16.mxu1 %vm538_vm0, %v8725_v4 }
  0x43   :  { %1104 = vmatpush1.bf16.msra.mxu0 %v7639_v5  ;;  %1217 = vmatpush1.bf16.msra.mxu1 %v7642_v6  ;;  %v7735_v5 = vld [vmem:[%s10747_s1 + $0x1a8] ss:$16 sps:$4 sm:$0xff]   ;;  %v7740_v6 = vld [vmem:[%s10747_s1 + $0x1c4] ss:$16 sps:$4 sm:$0xff]  }
  0x44   :  { %1105 = vmatprep.subr.bf16.mxu0 %v7650_v7  ;;  %1218 = vmatprep.subr.bf16.mxu1 %v7653_v8  ;;  %v7743_v7 = vld [vmem:[%s10747_s1 + $0x1cc] ss:$16 sps:$4 sm:$0xff]   ;;  %v8988_v8 = vld [vmem:[%s10748_s0 + $0x80] ss:$8 sps:$4 sm:$0xff]  }
  0x46   :  { %606 = vmatmul.mubr.bf16.gmra.mrb[4].mxu0 %v8748_v9  ;;  %719 = vmatmul.mubr.bf16.gmra.mrb[4].mxu1 %v8748_v9 }
  0x47   :  { %1106 = vmatpush1.bf16.msra.mxu0 %v7648_v10  ;;  %1219 = vmatpush1.bf16.msra.mxu1 %v7651_v11  ;;  %v7738_v10 = vld [vmem:[%s10747_s1 + $0x1c0] ss:$16 sps:$4 sm:$0xff]   ;;  %v7741_v11 = vld [vmem:[%s10747_s1 + $0x1c8] ss:$16 sps:$4 sm:$0xff]  }
  0x48   :  { %1107 = vmatprep.subr.bf16.mxu0 %v7656_v12  ;;  %1220 = vmatprep.subr.bf16.mxu1 %v7659_v13  ;;  %v7746_v12 = vld [vmem:[%s10748_s0 + $0x4] ss:$8 sps:$4 sm:$0xff]  }
  0x49   :  { %6179 = vmatprep.mubr.msk.bf16.mxu0 %vm538_vm0, %v8765_v14  ;;  %6187 = vmatprep.mubr.msk.bf16.mxu1 %vm538_vm0, %v8765_v14  ;;  %v7749_v13 = vld [vmem:[%s10747_s1 + $0x3c4] ss:$16 sps:$4 sm:$0xff]  }
  0x4b   :  { %1108 = vmatpush1.bf16.msra.mxu0 %v7654_v15  ;;  %1221 = vmatpush1.bf16.msra.mxu1 %v7657_v16  ;;  %v7752_v15 = vld [vmem:[%s10747_s1 + $0x3cc] ss:$16 sps:$4 sm:$0xff]   ;;  %v7744_v16 = vld [vmem:[%s10748_s0] ss:$8 sps:$4 sm:$0xff]  }
  0x4c   :  { %1109 = vmatprep.subr.bf16.mxu0 %v7665_v17  ;;  %1222 = vmatprep.subr.bf16.mxu1 %v7668_v18  ;;  %v7747_v17 = vld [vmem:[%s10747_s1 + $0x3c0] ss:$16 sps:$4 sm:$0xff]   ;;  %v7750_v18 = vld [vmem:[%s10747_s1 + $0x3c8] ss:$16 sps:$4 sm:$0xff]  }
  0x4e   :  { %616 = vmatmul.mubr.bf16.gmra.mrb[8].mxu0 %v8788_v19  ;;  %729 = vmatmul.mubr.bf16.gmra.mrb[8].mxu1 %v8788_v19 }
  0x4f   :  { %1110 = vmatpush1.bf16.msra.mxu0 %v7663_v20  ;;  %1223 = vmatpush1.bf16.msra.mxu1 %v7666_v21  ;;  %v7755_v20 = vld [vmem:[%s10747_s1 + $0x3e4] ss:$16 sps:$4 sm:$0xff]   ;;  %v7758_v21 = vld [vmem:[%s10747_s1 + $0x3ec] ss:$16 sps:$4 sm:$0xff]  }
  0x50   :  { %1111 = vmatprep.subr.bf16.mxu0 %v7671_v22  ;;  %1224 = vmatprep.subr.bf16.mxu1 %v7674_v23  ;;  %v7753_v22 = vld [vmem:[%s10747_s1 + $0x3e0] ss:$16 sps:$4 sm:$0xff]   ;;  %v7756_v23 = vld [vmem:[%s10747_s1 + $0x3e8] ss:$16 sps:$4 sm:$0xff]  }
  0x51   :  { %6180 = vmatprep.mubr.msk.bf16.mxu0 %vm538_vm0, %v8805_v24  ;;  %6188 = vmatprep.mubr.msk.bf16.mxu1 %vm538_vm0, %v8805_v24 }
  0x53   :  { %1112 = vmatpush1.bf16.msra.mxu0 %v7669_v25  ;;  %1225 = vmatpush1.bf16.msra.mxu1 %v7672_v26  ;;  %v7761_v25 = vld [vmem:[%s10747_s1 + $0x404] ss:$16 sps:$4 sm:$0xff]   ;;  %v7764_v26 = vld [vmem:[%s10747_s1 + $0x40c] ss:$16 sps:$4 sm:$0xff]  }
  0x54   :  { %1113 = vmatprep.subr.bf16.mxu0 %v7680_v27  ;;  %1226 = vmatprep.subr.bf16.mxu1 %v7683_v28  ;;  %v7759_v27 = vld [vmem:[%s10747_s1 + $0x400] ss:$16 sps:$4 sm:$0xff]   ;;  %v7762_v28 = vld [vmem:[%s10747_s1 + $0x408] ss:$16 sps:$4 sm:$0xff]  }
  0x56   :  { %626 = vmatmul.mubr.bf16.gmra.mrb[12].mxu0 %v8828_v29  ;;  %739 = vmatmul.mubr.bf16.gmra.mrb[12].mxu1 %v8828_v29 }
  0x57   :  { %1114 = vmatpush1.bf16.msra.mxu0 %v7678_v30  ;;  %1227 = vmatpush1.bf16.msra.mxu1 %v7681_v31  ;;  %v7767_v30 = vld [vmem:[%s10747_s1 + $0x424] ss:$16 sps:$4 sm:$0xff]   ;;  %v7765_v31 = vld [vmem:[%s10747_s1 + $0x420] ss:$16 sps:$4 sm:$0xff]  }
  0x58   :  { %1115 = vmatprep.subr.bf16.mxu0 %v7686_v32  ;;  %1228 = vmatprep.subr.bf16.mxu1 %v7689_v33  ;;  %v7768_v32 = vld [vmem:[%s10747_s1 + $0x428] ss:$16 sps:$4 sm:$0xff]   ;;  %v7773_v33 = vld [vmem:[%s10747_s1 + $0x444] ss:$16 sps:$4 sm:$0xff]  }
  0x59   :  { %6181 = vmatprep.mubr.msk.bf16.mxu0 %vm538_vm0, %v8845_v34  ;;  %6189 = vmatprep.mubr.msk.bf16.mxu1 %vm538_vm0, %v8845_v34 }
  0x5b   :  { %1116 = vmatpush1.bf16.msra.mxu0 %v7684_v35  ;;  %1229 = vmatpush1.bf16.msra.mxu1 %v7687_v36  ;;  %v7771_v35 = vld [vmem:[%s10747_s1 + $0x440] ss:$16 sps:$4 sm:$0xff]   ;;  %v7774_v36 = vld [vmem:[%s10747_s1 + $0x448] ss:$16 sps:$4 sm:$0xff]  }
  0x5c   :  { %1117 = vmatprep.subr.bf16.mxu0 %v7695_v37  ;;  %1230 = vmatprep.subr.bf16.mxu1 %v7698_v38  ;;  %v7779_v37 = vld [vmem:[%s10747_s1 + $0x464] ss:$16 sps:$4 sm:$0xff]   ;;  %v7782_v38 = vld [vmem:[%s10747_s1 + $0x46c] ss:$16 sps:$4 sm:$0xff]  }
  0x5e   :  { %636 = vmatmul.mubr.bf16.gmra.mrb[16].mxu0 %v8868_v39  ;;  %749 = vmatmul.mubr.bf16.gmra.mrb[16].mxu1 %v8868_v39 }
  0x5f   :  { %1118 = vmatpush1.bf16.msra.mxu0 %v7693_v40  ;;  %1231 = vmatpush1.bf16.msra.mxu1 %v7696_v41  ;;  %v7777_v40 = vld [vmem:[%s10747_s1 + $0x460] ss:$16 sps:$4 sm:$0xff]   ;;  %v7780_v41 = vld [vmem:[%s10747_s1 + $0x468] ss:$16 sps:$4 sm:$0xff]  }
  0x60   :  { %6182 = vmatprep.mubr.msk.bf16.mxu0 %vm538_vm0, %v8879_v42  ;;  %6190 = vmatprep.mubr.msk.bf16.mxu1 %vm538_vm0, %v8879_v42 }
  0x61   :  { %1119 = vmatprep.subr.bf16.mxu0 %v7703_v43  ;;  %1232 = vmatprep.subr.bf16.mxu1 %v7706_v44  ;;  %v7785_v43 = vld [vmem:[%s10747_s1 + $0x484] ss:$16 sps:$4 sm:$0xff]   ;;  %v7788_v44 = vld [vmem:[%s10747_s1 + $0x48c] ss:$16 sps:$4 sm:$0xff]  }
  0x63   :  { %1120 = vmatpush1.bf16.msra.mxu0 %v7701_v46  ;;  %1233 = vmatpush1.bf16.msra.mxu1 %v7704_v47  ;;  %v7783_v46 = vld [vmem:[%s10747_s1 + $0x480] ss:$16 sps:$4 sm:$0xff]   ;;  %v7786_v47 = vld [vmem:[%s10747_s1 + $0x488] ss:$16 sps:$4 sm:$0xff]  }
  0x64   :  { %1121 = vmatprep.subr.bf16.mxu0 %v7710_v48  ;;  %1234 = vmatprep.subr.bf16.mxu1 %v7713_v49  ;;  %v7791_v48 = vld [vmem:[%s10747_s1 + $0x4a4] ss:$16 sps:$4 sm:$0xff]   ;;  %v7794_v49 = vld [vmem:[%s10747_s1 + $0x4ac] ss:$16 sps:$4 sm:$0xff]  }
  0x66   :  { %646 = vmatmul.mubr.bf16.gmra.mrb[20].mxu0 %v8908_v50  ;;  %759 = vmatmul.mubr.bf16.gmra.mrb[20].mxu1 %v8908_v50 }
  0x67   :  { %1122 = vmatpush1.bf16.msra.mxu0 %v7708_v51  ;;  %1235 = vmatpush1.bf16.msra.mxu1 %v7711_v52  ;;  %v7789_v51 = vld [vmem:[%s10747_s1 + $0x4a0] ss:$16 sps:$4 sm:$0xff]   ;;  %v7792_v52 = vld [vmem:[%s10747_s1 + $0x4a8] ss:$16 sps:$4 sm:$0xff]  }
  0x68   :  { %6183 = vmatprep.mubr.msk.bf16.mxu0 %vm538_vm0, %v8919_v53  ;;  %6191 = vmatprep.mubr.msk.bf16.mxu1 %vm538_vm0, %v8919_v53 }
  0x69   :  { %1123 = vmatprep.subr.bf16.mxu0 %v7718_v54  ;;  %1236 = vmatprep.subr.bf16.mxu1 %v7721_v55  ;;  %v7797_v54 = vld [vmem:[%s10747_s1 + $0x4c4] ss:$16 sps:$4 sm:$0xff]   ;;  %v7800_v55 = vld [vmem:[%s10747_s1 + $0x4cc] ss:$16 sps:$4 sm:$0xff]  }
  0x6b   :  { %1124 = vmatpush1.bf16.msra.mxu0 %v7716_v56  ;;  %1237 = vmatpush1.bf16.msra.mxu1 %v7719_v57  ;;  %v7795_v56 = vld [vmem:[%s10747_s1 + $0x4c0] ss:$16 sps:$4 sm:$0xff]   ;;  %v7798_v57 = vld [vmem:[%s10747_s1 + $0x4c8] ss:$16 sps:$4 sm:$0xff]  }
  0x6c   :  { %1125 = vmatprep.subr.bf16.mxu0 %v7725_v58  ;;  %1238 = vmatprep.subr.bf16.mxu1 %v7728_v59  ;;  %v7803_v58 = vld [vmem:[%s10747_s1 + $0x4e4] ss:$16 sps:$4 sm:$0xff]   ;;  %v7806_v59 = vld [vmem:[%s10747_s1 + $0x4ec] ss:$16 sps:$4 sm:$0xff]  }
  0x6e   :  { %656 = vmatmul.mubr.bf16.gmra.mrb[24].mxu0 %v8948_v60  ;;  %769 = vmatmul.mubr.bf16.gmra.mrb[24].mxu1 %v8948_v60 }
  0x6f   :  { %1126 = vmatpush1.bf16.msra.mxu0 %v7723_v61  ;;  %1239 = vmatpush1.bf16.msra.mxu1 %v7726_v62  ;;  %v7801_v61 = vld [vmem:[%s10747_s1 + $0x4e0] ss:$16 sps:$4 sm:$0xff]   ;;  %v7804_v62 = vld [vmem:[%s10747_s1 + $0x4e8] ss:$16 sps:$4 sm:$0xff]  }
  0x70   :  { %6184 = vmatprep.mubr.msk.bf16.mxu0 %vm538_vm0, %v8959_v0  ;;  %6192 = vmatprep.mubr.msk.bf16.mxu1 %vm538_vm0, %v8959_v0 }
  0x71   :  { %1127 = vmatprep.subr.bf16.mxu0 %v7734_v1  ;;  %1240 = vmatprep.subr.bf16.mxu1 %v7737_v2  ;;  %v7809_v1 = vld [vmem:[%s10747_s1 + $0x504] ss:$16 sps:$4 sm:$0xff]   ;;  %v7812_v2 = vld [vmem:[%s10747_s1 + $0x50c] ss:$16 sps:$4 sm:$0xff]  }
  0x73   :  { %1128 = vmatpush1.bf16.msra.mxu0 %v7732_v3  ;;  %1241 = vmatpush1.bf16.msra.mxu1 %v7735_v5  ;;  %v7807_v3 = vld [vmem:[%s10747_s1 + $0x500] ss:$16 sps:$4 sm:$0xff]   ;;  %v7810_v5 = vld [vmem:[%s10747_s1 + $0x508] ss:$16 sps:$4 sm:$0xff]  }
  0x74   :  { %1129 = vmatprep.subr.bf16.mxu0 %v7740_v6  ;;  %1242 = vmatprep.subr.bf16.mxu1 %v7743_v7  ;;  %v7815_v6 = vld [vmem:[%s10747_s1 + $0x524] ss:$16 sps:$4 sm:$0xff]   ;;  %v7818_v7 = vld [vmem:[%s10747_s1 + $0x52c] ss:$16 sps:$4 sm:$0xff]  }
  0x76   :  { %666 = vmatmul.mubr.bf16.gmra.mrb[28].mxu0 %v8988_v8  ;;  %779 = vmatmul.mubr.bf16.gmra.mrb[28].mxu1 %v8988_v8 }
  0x77   :  { %1130 = vmatpush1.bf16.msra.mxu0 %v7738_v10  ;;  %1243 = vmatpush1.bf16.msra.mxu1 %v7741_v11  ;;  %v7813_v10 = vld [vmem:[%s10747_s1 + $0x520] ss:$16 sps:$4 sm:$0xff]   ;;  %v7816_v11 = vld [vmem:[%s10747_s1 + $0x528] ss:$16 sps:$4 sm:$0xff]  }
  0x78   :  { %6255 = vmatprep.mubr.msk.bf16.mxu0 %vm538_vm0, %v7746_v12  ;;  %6263 = vmatprep.mubr.msk.bf16.mxu1 %vm538_vm0, %v7746_v12  ;;  %v7821_v12 = vld [vmem:[%s10747_s1 + $0x544] ss:$16 sps:$4 sm:$0xff]  }
  0x79   :  { %1800 = vmatprep.subr.bf16.mxu0 %v7749_v13  ;;  %1913 = vmatprep.subr.bf16.mxu1 %v7752_v15  ;;  %v7824_v13 = vld [vmem:[%s10747_s1 + $0x54c] ss:$16 sps:$4 sm:$0xff]   ;;  %v7819_v15 = vld [vmem:[%s10747_s1 + $0x540] ss:$16 sps:$4 sm:$0xff]  }
  0x7e   :  { %1134 = vmatmul.mubr.bf16.vlgmr.msra.gmra.mrb[0].mxu0 %v7744_v16  ;;  %1247 = vmatmul.mubr.bf16.vlgmr.msra.gmra.mrb[0].mxu1 %v7744_v16  ;;  %v7822_v16 = vld [vmem:[%s10747_s1 + $0x548] ss:$16 sps:$4 sm:$0xff]  }
  0x7f   :  { %1801 = vmatpush1.bf16.msra.mxu0 %v7747_v17  ;;  %1914 = vmatpush1.bf16.msra.mxu1 %v7750_v18  ;;  %v7827_v17 = vld [vmem:[%s10747_s1 + $0x564] ss:$16 sps:$4 sm:$0xff]   ;;  %v7830_v18 = vld [vmem:[%s10747_s1 + $0x56c] ss:$16 sps:$4 sm:$0xff]  }
  0x80   :  { %1802 = vmatprep.subr.bf16.mxu0 %v7755_v20  ;;  %1915 = vmatprep.subr.bf16.mxu1 %v7758_v21  ;;  %v7825_v20 = vld [vmem:[%s10747_s1 + $0x560] ss:$16 sps:$4 sm:$0xff]   ;;  %v7828_v21 = vld [vmem:[%s10747_s1 + $0x568] ss:$16 sps:$4 sm:$0xff]  }
  0x81   :  { %6256 = vmatprep.mubr.msk.bf16.mxu0 %vm538_vm0, %v8648_v45  ;;  %6264 = vmatprep.mubr.msk.bf16.mxu1 %vm538_vm0, %v8648_v45  ;;  %v7770_v45 = vld [vmem:[%s10747_s1 + $0x42c] ss:$16 sps:$4 sm:$0xff]  }
  0x83   :  { %1803 = vmatpush1.bf16.msra.mxu0 %v7753_v22  ;;  %1916 = vmatpush1.bf16.msra.mxu1 %v7756_v23  ;;  %v7833_v22 = vld [vmem:[%s10747_s1 + $0x584] ss:$16 sps:$4 sm:$0xff]   ;;  %v7836_v23 = vld [vmem:[%s10747_s1 + $0x58c] ss:$16 sps:$4 sm:$0xff]  }
  0x84   :  { %1804 = vmatprep.subr.bf16.mxu0 %v7761_v25  ;;  %1917 = vmatprep.subr.bf16.mxu1 %v7764_v26  ;;  %v7831_v25 = vld [vmem:[%s10747_s1 + $0x580] ss:$16 sps:$4 sm:$0xff]   ;;  %v7834_v26 = vld [vmem:[%s10747_s1 + $0x588] ss:$16 sps:$4 sm:$0xff]  }
  0x86   :  { %1144 = vmatmul.mubr.bf16.gmra.mrb[4].mxu0 %v8708_v63  ;;  %1257 = vmatmul.mubr.bf16.gmra.mrb[4].mxu1 %v8708_v63  ;;  %v7776_v63 = vld [vmem:[%s10747_s1 + $0x44c] ss:$16 sps:$4 sm:$0xff]  }
  0x87   :  { %1805 = vmatpush1.bf16.msra.mxu0 %v7759_v27  ;;  %1918 = vmatpush1.bf16.msra.mxu1 %v7762_v28  ;;  %v7839_v27 = vld [vmem:[%s10747_s1 + $0x5a4] ss:$16 sps:$4 sm:$0xff]   ;;  %v7842_v28 = vld [vmem:[%s10747_s1 + $0x5ac] ss:$16 sps:$4 sm:$0xff]  }
  0x88   :  { %1806 = vmatprep.subr.bf16.mxu0 %v7767_v30  ;;  %1919 = vmatprep.subr.bf16.mxu1 %v7770_v45  ;;  %v7837_v30 = vld [vmem:[%s10747_s1 + $0x5a0] ss:$16 sps:$4 sm:$0xff]   ;;  %v7840_v45 = vld [vmem:[%s10747_s1 + $0x5a8] ss:$16 sps:$4 sm:$0xff]  }
  0x89   :  { %6257 = vmatprep.mubr.msk.bf16.mxu0 %vm538_vm0, %v8725_v4  ;;  %6265 = vmatprep.mubr.msk.bf16.mxu1 %vm538_vm0, %v8725_v4 }
  0x8b   :  { %1807 = vmatpush1.bf16.msra.mxu0 %v7765_v31  ;;  %1920 = vmatpush1.bf16.msra.mxu1 %v7768_v32  ;;  %v7845_v31 = vld [vmem:[%s10747_s1 + $0x5c4] ss:$16 sps:$4 sm:$0xff]   ;;  %v7848_v32 = vld [vmem:[%s10747_s1 + $0x5cc] ss:$16 sps:$4 sm:$0xff]  }
  0x8c   :  { %1808 = vmatprep.subr.bf16.mxu0 %v7773_v33  ;;  %1921 = vmatprep.subr.bf16.mxu1 %v7776_v63  ;;  %v7846_v33 = vld [vmem:[%s10747_s1 + $0x5c8] ss:$16 sps:$4 sm:$0xff]   ;;  %v7851_v63 = vld [vmem:[%s10747_s1 + $0x5e4] ss:$16 sps:$4 sm:$0xff]  }
  0x8e   :  { %1154 = vmatmul.mubr.bf16.gmra.mrb[8].mxu0 %v8748_v9  ;;  %1267 = vmatmul.mubr.bf16.gmra.mrb[8].mxu1 %v8748_v9 }
  0x8f   :  { %1809 = vmatpush1.bf16.msra.mxu0 %v7771_v35  ;;  %1922 = vmatpush1.bf16.msra.mxu1 %v7774_v36  ;;  %v7849_v35 = vld [vmem:[%s10747_s1 + $0x5e0] ss:$16 sps:$4 sm:$0xff]   ;;  %v7852_v36 = vld [vmem:[%s10747_s1 + $0x5e8] ss:$16 sps:$4 sm:$0xff]  }
  0x90   :  { %1810 = vmatprep.subr.bf16.mxu0 %v7779_v37  ;;  %1923 = vmatprep.subr.bf16.mxu1 %v7782_v38  ;;  %v7857_v37 = vld [vmem:[%s10747_s1 + $0x604] ss:$16 sps:$4 sm:$0xff]   ;;  %v7855_v38 = vld [vmem:[%s10747_s1 + $0x600] ss:$16 sps:$4 sm:$0xff]  }
  0x91   :  { %6258 = vmatprep.mubr.msk.bf16.mxu0 %vm538_vm0, %v8765_v14  ;;  %6266 = vmatprep.mubr.msk.bf16.mxu1 %vm538_vm0, %v8765_v14 }
  0x93   :  { %1811 = vmatpush1.bf16.msra.mxu0 %v7777_v40  ;;  %1924 = vmatpush1.bf16.msra.mxu1 %v7780_v41  ;;  %v7858_v40 = vld [vmem:[%s10747_s1 + $0x608] ss:$16 sps:$4 sm:$0xff]   ;;  %v7863_v41 = vld [vmem:[%s10747_s1 + $0x624] ss:$16 sps:$4 sm:$0xff]  }
  0x94   :  { %1812 = vmatprep.subr.bf16.mxu0 %v7785_v43  ;;  %1925 = vmatprep.subr.bf16.mxu1 %v7788_v44  ;;  %v7861_v43 = vld [vmem:[%s10747_s1 + $0x620] ss:$16 sps:$4 sm:$0xff]   ;;  %v7864_v44 = vld [vmem:[%s10747_s1 + $0x628] ss:$16 sps:$4 sm:$0xff]  }
  0x96   :  { %1164 = vmatmul.mubr.bf16.gmra.mrb[12].mxu0 %v8788_v19  ;;  %1277 = vmatmul.mubr.bf16.gmra.mrb[12].mxu1 %v8788_v19 }
  0x97   :  { %1813 = vmatpush1.bf16.msra.mxu0 %v7783_v46  ;;  %1926 = vmatpush1.bf16.msra.mxu1 %v7786_v47  ;;  %v7869_v46 = vld [vmem:[%s10747_s1 + $0x644] ss:$16 sps:$4 sm:$0xff]   ;;  %v7867_v47 = vld [vmem:[%s10747_s1 + $0x640] ss:$16 sps:$4 sm:$0xff]  }
  0x98   :  { %1814 = vmatprep.subr.bf16.mxu0 %v7791_v48  ;;  %1927 = vmatprep.subr.bf16.mxu1 %v7794_v49  ;;  %v7870_v48 = vld [vmem:[%s10747_s1 + $0x648] ss:$16 sps:$4 sm:$0xff]   ;;  %v7875_v49 = vld [vmem:[%s10747_s1 + $0x664] ss:$16 sps:$4 sm:$0xff]  }
  0x99   :  { %6259 = vmatprep.mubr.msk.bf16.mxu0 %vm538_vm0, %v8805_v24  ;;  %6267 = vmatprep.mubr.msk.bf16.mxu1 %vm538_vm0, %v8805_v24 }
  0x9b   :  { %1815 = vmatpush1.bf16.msra.mxu0 %v7789_v51  ;;  %1928 = vmatpush1.bf16.msra.mxu1 %v7792_v52  ;;  %v7873_v51 = vld [vmem:[%s10747_s1 + $0x660] ss:$16 sps:$4 sm:$0xff]   ;;  %v7876_v52 = vld [vmem:[%s10747_s1 + $0x668] ss:$16 sps:$4 sm:$0xff]  }
  0x9c   :  { %1816 = vmatprep.subr.bf16.mxu0 %v7797_v54  ;;  %1929 = vmatprep.subr.bf16.mxu1 %v7800_v55  ;;  %v7881_v54 = vld [vmem:[%s10747_s1 + $0x684] ss:$16 sps:$4 sm:$0xff]   ;;  %v7879_v55 = vld [vmem:[%s10747_s1 + $0x680] ss:$16 sps:$4 sm:$0xff]  }
  0x9e   :  { %1174 = vmatmul.mubr.bf16.gmra.mrb[16].mxu0 %v8828_v29  ;;  %1287 = vmatmul.mubr.bf16.gmra.mrb[16].mxu1 %v8828_v29 }
  0x9f   :  { %1817 = vmatpush1.bf16.msra.mxu0 %v7795_v56  ;;  %1930 = vmatpush1.bf16.msra.mxu1 %v7798_v57  ;;  %v7882_v56 = vld [vmem:[%s10747_s1 + $0x688] ss:$16 sps:$4 sm:$0xff]   ;;  %v7887_v57 = vld [vmem:[%s10747_s1 + $0x6a4] ss:$16 sps:$4 sm:$0xff]  }
  0xa0   :  { %6260 = vmatprep.mubr.msk.bf16.mxu0 %vm538_vm0, %v8845_v34  ;;  %6268 = vmatprep.mubr.msk.bf16.mxu1 %vm538_vm0, %v8845_v34 }
  0xa1   :  { %1818 = vmatprep.subr.bf16.mxu0 %v7803_v58  ;;  %1931 = vmatprep.subr.bf16.mxu1 %v7806_v59  ;;  %v7885_v58 = vld [vmem:[%s10747_s1 + $0x6a0] ss:$16 sps:$4 sm:$0xff]   ;;  %v7888_v59 = vld [vmem:[%s10747_s1 + $0x6a8] ss:$16 sps:$4 sm:$0xff]  }
  0xa3   :  { %1819 = vmatpush1.bf16.msra.mxu0 %v7801_v61  ;;  %1932 = vmatpush1.bf16.msra.mxu1 %v7804_v62  ;;  %v7893_v61 = vld [vmem:[%s10747_s1 + $0x6c4] ss:$16 sps:$4 sm:$0xff]   ;;  %v7891_v62 = vld [vmem:[%s10747_s1 + $0x6c0] ss:$16 sps:$4 sm:$0xff]  }
  0xa4   :  { %1820 = vmatprep.subr.bf16.mxu0 %v7809_v1  ;;  %1933 = vmatprep.subr.bf16.mxu1 %v7812_v2  ;;  %v7894_v1 = vld [vmem:[%s10747_s1 + $0x6c8] ss:$16 sps:$4 sm:$0xff]   ;;  %v7902_v2 = vld [vmem:[%s10747_s1 + $0x6ec] ss:$16 sps:$4 sm:$0xff]  }
  0xa6   :  { %1184 = vmatmul.mubr.bf16.gmra.mrb[20].mxu0 %v8868_v39  ;;  %1297 = vmatmul.mubr.bf16.gmra.mrb[20].mxu1 %v8868_v39 }
  0xa7   :  { %1821 = vmatpush1.bf16.msra.mxu0 %v7807_v3  ;;  %1934 = vmatpush1.bf16.msra.mxu1 %v7810_v5  ;;  %v7897_v3 = vld [vmem:[%s10747_s1 + $0x6e0] ss:$16 sps:$4 sm:$0xff]   ;;  %v7905_v5 = vld [vmem:[%s10747_s1 + $0x704] ss:$16 sps:$4 sm:$0xff]  }
  0xa8   :  { %6261 = vmatprep.mubr.msk.bf16.mxu0 %vm538_vm0, %v8879_v42  ;;  %6269 = vmatprep.mubr.msk.bf16.mxu1 %vm538_vm0, %v8879_v42 }
  0xa9   :  { %1822 = vmatprep.subr.bf16.mxu0 %v7815_v6  ;;  %1935 = vmatprep.subr.bf16.mxu1 %v7818_v7  ;;  %v7908_v6 = vld [vmem:[%s10747_s1 + $0x70c] ss:$16 sps:$4 sm:$0xff]   ;;  %v7903_v7 = vld [vmem:[%s10747_s1 + $0x700] ss:$16 sps:$4 sm:$0xff]  }
  0xab   :  { %1823 = vmatpush1.bf16.msra.mxu0 %v7813_v10  ;;  %1936 = vmatpush1.bf16.msra.mxu1 %v7816_v11  ;;  %v7906_v10 = vld [vmem:[%s10747_s1 + $0x708] ss:$16 sps:$4 sm:$0xff]   ;;  %v7914_v11 = vld [vmem:[%s10747_s1 + $0x72c] ss:$16 sps:$4 sm:$0xff]  }
  0xac   :  { %1824 = vmatprep.subr.bf16.mxu0 %v7821_v12  ;;  %1937 = vmatprep.subr.bf16.mxu1 %v7824_v13  ;;  %v7909_v12 = vld [vmem:[%s10747_s1 + $0x720] ss:$16 sps:$4 sm:$0xff]   ;;  %v9427_v13 = vld [vmem:[%s10748_s0 + $0x94] ss:$8 sps:$4 sm:$0xff]  }
  0xae   :  { %1194 = vmatmul.mubr.bf16.gmra.mrb[24].mxu0 %v8908_v50  ;;  %1307 = vmatmul.mubr.bf16.gmra.mrb[24].mxu1 %v8908_v50 }
  0xaf   :  { %1825 = vmatpush1.bf16.msra.mxu0 %v7819_v15  ;;  %1938 = vmatpush1.bf16.msra.mxu1 %v7822_v16  ;;  %v7920_v15 = vld [vmem:[%s10747_s1 + $0x744] ss:$16 sps:$4 sm:$0xff]   ;;  %v7923_v16 = vld [vmem:[%s10747_s1 + $0x74c] ss:$16 sps:$4 sm:$0xff]  }
  0xb0   :  { %6262 = vmatprep.mubr.msk.bf16.mxu0 %vm538_vm0, %v8919_v53  ;;  %6270 = vmatprep.mubr.msk.bf16.mxu1 %vm538_vm0, %v8919_v53 }
  0xb1   :  { %1826 = vmatprep.subr.bf16.mxu0 %v7827_v17  ;;  %1939 = vmatprep.subr.bf16.mxu1 %v7830_v18  ;;  %v7918_v17 = vld [vmem:[%s10747_s1 + $0x740] ss:$16 sps:$4 sm:$0xff]   ;;  %v7921_v18 = vld [vmem:[%s10747_s1 + $0x748] ss:$16 sps:$4 sm:$0xff]  }
  0xb3   :  { %1827 = vmatpush1.bf16.msra.mxu0 %v7825_v20  ;;  %1940 = vmatpush1.bf16.msra.mxu1 %v7828_v21  ;;  %v7929_v20 = vld [vmem:[%s10747_s1 + $0x76c] ss:$16 sps:$4 sm:$0xff]   ;;  %v9456_v21 = vld [vmem:[%s10748_s0 + $0x90] ss:$8 sps:$4 sm:$0xff]  }
  0xb4   :  { %1828 = vmatprep.subr.bf16.mxu0 %v7833_v22  ;;  %1941 = vmatprep.subr.bf16.mxu1 %v7836_v23  ;;  %v7924_v22 = vld [vmem:[%s10747_s1 + $0x760] ss:$16 sps:$4 sm:$0xff]   ;;  %v7927_v23 = vld [vmem:[%s10747_s1 + $0x768] ss:$16 sps:$4 sm:$0xff]  }
  0xb6   :  { %1204 = vmatmul.mubr.bf16.gmra.mrb[28].mxu0 %v8948_v60  ;;  %1317 = vmatmul.mubr.bf16.gmra.mrb[28].mxu1 %v8948_v60 }
  0xb7   :  { %1829 = vmatpush1.bf16.msra.mxu0 %v7831_v25  ;;  %1942 = vmatpush1.bf16.msra.mxu1 %v7834_v26  ;;  %v7932_v25 = vld [vmem:[%s10748_s0 + $0x34] ss:$8 sps:$4 sm:$0xff]  }
  0xb8   :  { %6407 = vmatprep.mubr.msk.bf16.mxu0 %vm538_vm0, %v8725_v4  ;;  %6415 = vmatprep.mubr.msk.bf16.mxu1 %vm538_vm0, %v8725_v4  ;;  %v7843_v4 = vld [vmem:[%s10747_s1 + $0x5c0] ss:$16 sps:$4 sm:$0xff]   ;;  %v7935_v26 = vld [vmem:[%s10747_s1 + $0x784] ss:$16 sps:$4 sm:$0xff]  }
  0xb9   :  { %2563 = vmatprep.subr.bf16.mxu0 %v7839_v27  ;;  %2676 = vmatprep.subr.bf16.mxu1 %v7842_v28  ;;  %v7938_v27 = vld [vmem:[%s10747_s1 + $0x78c] ss:$16 sps:$4 sm:$0xff]   ;;  %v7930_v28 = vld [vmem:[%s10748_s0 + $0x30] ss:$8 sps:$4 sm:$0xff]  }
  0xbe   :  { %1833 = vmatmul.mubr.bf16.vlgmr.msra.gmra.mrb[0].mxu0 %v8748_v9  ;;  %1946 = vmatmul.mubr.bf16.vlgmr.msra.gmra.mrb[0].mxu1 %v8748_v9  ;;  %v7854_v9 = vld [vmem:[%s10747_s1 + $0x5ec] ss:$16 sps:$4 sm:$0xff]  }
  0xbf   :  { %2564 = vmatpush1.bf16.msra.mxu0 %v7837_v30  ;;  %2677 = vmatpush1.bf16.msra.mxu1 %v7840_v45  ;;  %v7933_v30 = vld [vmem:[%s10747_s1 + $0x780] ss:$16 sps:$4 sm:$0xff]   ;;  %v7936_v45 = vld [vmem:[%s10747_s1 + $0x788] ss:$16 sps:$4 sm:$0xff]  }
  0xc0   :  { %2565 = vmatprep.subr.bf16.mxu0 %v7845_v31  ;;  %2678 = vmatprep.subr.bf16.mxu1 %v7848_v32  ;;  %v7941_v31 = vld [vmem:[%s10747_s1 + $0x7a4] ss:$16 sps:$4 sm:$0xff]   ;;  %v7944_v32 = vld [vmem:[%s10747_s1 + $0x7ac] ss:$16 sps:$4 sm:$0xff]  }
  0xc1   :  { %6408 = vmatprep.mubr.msk.bf16.mxu0 %vm538_vm0, %v8765_v14  ;;  %6416 = vmatprep.mubr.msk.bf16.mxu1 %vm538_vm0, %v8765_v14  ;;  %v7860_v14 = vld [vmem:[%s10747_s1 + $0x60c] ss:$16 sps:$4 sm:$0xff]  }
  0xc3   :  { %2566 = vmatpush1.bf16.msra.mxu0 %v7843_v4  ;;  %2679 = vmatpush1.bf16.msra.mxu1 %v7846_v33  ;;  %v9495_v4 = vld [vmem:[%s10748_s0 + $0x44] ss:$8 sps:$4 sm:$0xff]   ;;  %v7939_v33 = vld [vmem:[%s10747_s1 + $0x7a0] ss:$16 sps:$4 sm:$0xff]  }
  0xc4   :  { %2567 = vmatprep.subr.bf16.mxu0 %v7851_v63  ;;  %2680 = vmatprep.subr.bf16.mxu1 %v7854_v9  ;;  %v7942_v63 = vld [vmem:[%s10747_s1 + $0x7a8] ss:$16 sps:$4 sm:$0xff]   ;;  %v7950_v9 = vld [vmem:[%s10747_s1 + $0x7c4] ss:$16 sps:$4 sm:$0xff]  }
  0xc6   :  { %1843 = vmatmul.mubr.bf16.gmra.mrb[4].mxu0 %v8788_v19  ;;  %1956 = vmatmul.mubr.bf16.gmra.mrb[4].mxu1 %v8788_v19  ;;  %v7866_v19 = vld [vmem:[%s10747_s1 + $0x62c] ss:$16 sps:$4 sm:$0xff]  }
  0xc7   :  { %2568 = vmatpush1.bf16.msra.mxu0 %v7849_v35  ;;  %2681 = vmatpush1.bf16.msra.mxu1 %v7852_v36  ;;  %v7953_v35 = vld [vmem:[%s10747_s1 + $0x7cc] ss:$16 sps:$4 sm:$0xff]   ;;  %v9516_v36 = vld [vmem:[%s10748_s0 + $0x40] ss:$8 sps:$4 sm:$0xff]  }
  0xc8   :  { %2569 = vmatprep.subr.bf16.mxu0 %v7857_v37  ;;  %2682 = vmatprep.subr.bf16.mxu1 %v7860_v14  ;;  %v7948_v37 = vld [vmem:[%s10747_s1 + $0x7c0] ss:$16 sps:$4 sm:$0xff]   ;;  %v7951_v14 = vld [vmem:[%s10747_s1 + $0x7c8] ss:$16 sps:$4 sm:$0xff]  }
  0xc9   :  { %6409 = vmatprep.mubr.msk.bf16.mxu0 %vm538_vm0, %v8805_v24  ;;  %6417 = vmatprep.mubr.msk.bf16.mxu1 %vm538_vm0, %v8805_v24  ;;  %v7872_v24 = vld [vmem:[%s10747_s1 + $0x64c] ss:$16 sps:$4 sm:$0xff]  }
  0xcb   :  { %2570 = vmatpush1.bf16.msra.mxu0 %v7855_v38  ;;  %2683 = vmatpush1.bf16.msra.mxu1 %v7858_v40  ;;  %v7956_v38 = vld [vmem:[%s10747_s1 + $0x7e4] ss:$16 sps:$4 sm:$0xff]   ;;  %v7959_v40 = vld [vmem:[%s10747_s1 + $0x7ec] ss:$16 sps:$4 sm:$0xff]  }
  0xcc   :  { %2571 = vmatprep.subr.bf16.mxu0 %v7863_v41  ;;  %2684 = vmatprep.subr.bf16.mxu1 %v7866_v19  ;;  %v9533_v41 = vld [vmem:[%s10748_s0 + $0x54] ss:$8 sps:$4 sm:$0xff]   ;;  %v7954_v19 = vld [vmem:[%s10747_s1 + $0x7e0] ss:$16 sps:$4 sm:$0xff]  }
  0xce   :  { %1853 = vmatmul.mubr.bf16.gmra.mrb[8].mxu0 %v8828_v29  ;;  %1966 = vmatmul.mubr.bf16.gmra.mrb[8].mxu1 %v8828_v29  ;;  %v7878_v29 = vld [vmem:[%s10747_s1 + $0x66c] ss:$16 sps:$4 sm:$0xff]  }
  0xcf   :  { %2572 = vmatpush1.bf16.msra.mxu0 %v7861_v43  ;;  %2685 = vmatpush1.bf16.msra.mxu1 %v7864_v44  ;;  %v7957_v43 = vld [vmem:[%s10747_s1 + $0x7e8] ss:$16 sps:$4 sm:$0xff]   ;;  %v7965_v44 = vld [vmem:[%s10747_s1 + $0x804] ss:$16 sps:$4 sm:$0xff]  }
  0xd0   :  { %2573 = vmatprep.subr.bf16.mxu0 %v7869_v46  ;;  %2686 = vmatprep.subr.bf16.mxu1 %v7872_v24  ;;  %v7968_v46 = vld [vmem:[%s10747_s1 + $0x80c] ss:$16 sps:$4 sm:$0xff]   ;;  %v9556_v24 = vld [vmem:[%s10748_s0 + $0x50] ss:$8 sps:$4 sm:$0xff]  }
  0xd1   :  { %6410 = vmatprep.mubr.msk.bf16.mxu0 %vm538_vm0, %v8845_v34  ;;  %6418 = vmatprep.mubr.msk.bf16.mxu1 %vm538_vm0, %v8845_v34  ;;  %v7884_v34 = vld [vmem:[%s10747_s1 + $0x68c] ss:$16 sps:$4 sm:$0xff]  }
  0xd3   :  { %2574 = vmatpush1.bf16.msra.mxu0 %v7867_v47  ;;  %2687 = vmatpush1.bf16.msra.mxu1 %v7870_v48  ;;  %v7963_v47 = vld [vmem:[%s10747_s1 + $0x800] ss:$16 sps:$4 sm:$0xff]   ;;  %v7966_v48 = vld [vmem:[%s10747_s1 + $0x808] ss:$16 sps:$4 sm:$0xff]  }
  0xd4   :  { %2575 = vmatprep.subr.bf16.mxu0 %v7875_v49  ;;  %2688 = vmatprep.subr.bf16.mxu1 %v7878_v29  ;;  %v7971_v49 = vld [vmem:[%s10747_s1 + $0x824] ss:$16 sps:$4 sm:$0xff]   ;;  %v7974_v29 = vld [vmem:[%s10747_s1 + $0x82c] ss:$16 sps:$4 sm:$0xff]  }
  0xd6   :  { %1863 = vmatmul.mubr.bf16.gmra.mrb[12].mxu0 %v8868_v39  ;;  %1976 = vmatmul.mubr.bf16.gmra.mrb[12].mxu1 %v8868_v39  ;;  %v7890_v39 = vld [vmem:[%s10747_s1 + $0x6ac] ss:$16 sps:$4 sm:$0xff]  }
  0xd7   :  { %2576 = vmatpush1.bf16.msra.mxu0 %v7873_v51  ;;  %2689 = vmatpush1.bf16.msra.mxu1 %v7876_v52  ;;  %v9573_v51 = vld [vmem:[%s10748_s0 + $0x64] ss:$8 sps:$4 sm:$0xff]   ;;  %v7969_v52 = vld [vmem:[%s10747_s1 + $0x820] ss:$16 sps:$4 sm:$0xff]  }
  0xd8   :  { %2577 = vmatprep.subr.bf16.mxu0 %v7881_v54  ;;  %2690 = vmatprep.subr.bf16.mxu1 %v7884_v34  ;;  %v7972_v54 = vld [vmem:[%s10747_s1 + $0x828] ss:$16 sps:$4 sm:$0xff]   ;;  %v7980_v34 = vld [vmem:[%s10747_s1 + $0x844] ss:$16 sps:$4 sm:$0xff]  }
  0xd9   :  { %6411 = vmatprep.mubr.msk.bf16.mxu0 %vm538_vm0, %v8879_v42  ;;  %6419 = vmatprep.mubr.msk.bf16.mxu1 %vm538_vm0, %v8879_v42  ;;  %v7896_v42 = vld [vmem:[%s10747_s1 + $0x6cc] ss:$16 sps:$4 sm:$0xff]  }
  0xdb   :  { %2578 = vmatpush1.bf16.msra.mxu0 %v7879_v55  ;;  %2691 = vmatpush1.bf16.msra.mxu1 %v7882_v56  ;;  %v7983_v55 = vld [vmem:[%s10747_s1 + $0x84c] ss:$16 sps:$4 sm:$0xff]   ;;  %v9596_v56 = vld [vmem:[%s10748_s0 + $0x60] ss:$8 sps:$4 sm:$0xff]  }
  0xdc   :  { %2579 = vmatprep.subr.bf16.mxu0 %v7887_v57  ;;  %2692 = vmatprep.subr.bf16.mxu1 %v7890_v39  ;;  %v7978_v57 = vld [vmem:[%s10747_s1 + $0x840] ss:$16 sps:$4 sm:$0xff]   ;;  %v7981_v39 = vld [vmem:[%s10747_s1 + $0x848] ss:$16 sps:$4 sm:$0xff]  }
  0xde   :  { %1873 = vmatmul.mubr.bf16.gmra.mrb[16].mxu0 %v8908_v50  ;;  %1986 = vmatmul.mubr.bf16.gmra.mrb[16].mxu1 %v8908_v50  ;;  %v7899_v50 = vld [vmem:[%s10747_s1 + $0x6e4] ss:$16 sps:$4 sm:$0xff]  }
  0xdf   :  { %2580 = vmatpush1.bf16.msra.mxu0 %v7885_v58  ;;  %2693 = vmatpush1.bf16.msra.mxu1 %v7888_v59  ;;  %v7986_v58 = vld [vmem:[%s10747_s1 + $0x864] ss:$16 sps:$4 sm:$0xff]   ;;  %v7989_v59 = vld [vmem:[%s10747_s1 + $0x86c] ss:$16 sps:$4 sm:$0xff]  }
  0xe0   :  { %6412 = vmatprep.mubr.msk.bf16.mxu0 %vm538_vm0, %v8919_v53  ;;  %6420 = vmatprep.mubr.msk.bf16.mxu1 %vm538_vm0, %v8919_v53  ;;  %v7900_v53 = vld [vmem:[%s10747_s1 + $0x6e8] ss:$16 sps:$4 sm:$0xff]  }
  0xe1   :  { %2581 = vmatprep.subr.bf16.mxu0 %v7893_v61  ;;  %2694 = vmatprep.subr.bf16.mxu1 %v7896_v42  ;;  %v9613_v61 = vld [vmem:[%s10748_s0 + $0x74] ss:$8 sps:$4 sm:$0xff]   ;;  %v7984_v42 = vld [vmem:[%s10747_s1 + $0x860] ss:$16 sps:$4 sm:$0xff]  }
  0xe3   :  { %2582 = vmatpush1.bf16.msra.mxu0 %v7891_v62  ;;  %2695 = vmatpush1.bf16.msra.mxu1 %v7894_v1  ;;  %v7987_v62 = vld [vmem:[%s10747_s1 + $0x868] ss:$16 sps:$4 sm:$0xff]   ;;  %v7995_v1 = vld [vmem:[%s10747_s1 + $0x884] ss:$16 sps:$4 sm:$0xff]  }
  0xe4   :  { %2583 = vmatprep.subr.bf16.mxu0 %v7899_v50  ;;  %2696 = vmatprep.subr.bf16.mxu1 %v7902_v2  ;;  %v7998_v50 = vld [vmem:[%s10747_s1 + $0x88c] ss:$16 sps:$4 sm:$0xff]   ;;  %v9632_v2 = vld [vmem:[%s10748_s0 + $0x70] ss:$8 sps:$4 sm:$0xff]  }
  0xe6   :  { %1883 = vmatmul.mubr.bf16.gmra.mrb[20].mxu0 %v8948_v60  ;;  %1996 = vmatmul.mubr.bf16.gmra.mrb[20].mxu1 %v8948_v60  ;;  %v7911_v60 = vld [vmem:[%s10747_s1 + $0x724] ss:$16 sps:$4 sm:$0xff]  }
  0xe7   :  { %2584 = vmatpush1.bf16.msra.mxu0 %v7897_v3  ;;  %2697 = vmatpush1.bf16.msra.mxu1 %v7900_v53  ;;  %v7993_v3 = vld [vmem:[%s10747_s1 + $0x880] ss:$16 sps:$4 sm:$0xff]   ;;  %v7996_v53 = vld [vmem:[%s10747_s1 + $0x888] ss:$16 sps:$4 sm:$0xff]  }
  0xe8   :  { %6413 = vmatprep.mubr.msk.bf16.mxu0 %vm538_vm0, %v8959_v0  ;;  %6421 = vmatprep.mubr.msk.bf16.mxu1 %vm538_vm0, %v8959_v0  ;;  %v7912_v0 = vld [vmem:[%s10747_s1 + $0x728] ss:$16 sps:$4 sm:$0xff]  }
  0xe9   :  { %2585 = vmatprep.subr.bf16.mxu0 %v7905_v5  ;;  %2698 = vmatprep.subr.bf16.mxu1 %v7908_v6  ;;  %v9647_v5 = vld [vmem:[%s10748_s0 + $0x84] ss:$8 sps:$4 sm:$0xff]  }
  0xea   :  { %v8003_v6 = vld [vmem:[%s10747_s1 + $0x8a4] ss:$16 sps:$4 sm:$0xff]  }
  0xeb   :  { %2586 = vmatpush1.bf16.msra.mxu0 %v7903_v7  ;;  %2699 = vmatpush1.bf16.msra.mxu1 %v7906_v10  ;;  %v8006_v7 = vld [vmem:[%s10747_s1 + $0x8ac] ss:$16 sps:$4 sm:$0xff]   ;;  %v8001_v10 = vld [vmem:[%s10747_s1 + $0x8a0] ss:$16 sps:$4 sm:$0xff]  }
  0xec   :  { %2587 = vmatprep.subr.bf16.mxu0 %v7911_v60  ;;  %2700 = vmatprep.subr.bf16.mxu1 %v7914_v11  ;;  %v8004_v60 = vld [vmem:[%s10747_s1 + $0x8a8] ss:$16 sps:$4 sm:$0xff]   ;;  %v8010_v11 = vld [vmem:[%s10747_s1 + $0x8c4] ss:$16 sps:$4 sm:$0xff]  }
  0xee   :  { %1893 = vmatmul.mubr.bf16.gmra.mrb[24].mxu0 %v8988_v8  ;;  %2006 = vmatmul.mubr.bf16.gmra.mrb[24].mxu1 %v8988_v8  ;;  %v7926_v8 = vld [vmem:[%s10747_s1 + $0x764] ss:$16 sps:$4 sm:$0xff]  }
  0xef   :  { %2588 = vmatpush1.bf16.msra.mxu0 %v7909_v12  ;;  %2701 = vmatpush1.bf16.msra.mxu1 %v7912_v0  ;;  %v8013_v12 = vld [vmem:[%s10747_s1 + $0x8cc] ss:$16 sps:$4 sm:$0xff]   ;;  %v9676_v0 = vld [vmem:[%s10748_s0 + $0x80] ss:$8 sps:$4 sm:$0xff]  }
  0xf0   :  { %6414 = vmatprep.mubr.msk.bf16.mxu0 %vm538_vm0, %v9427_v13  ;;  %6422 = vmatprep.mubr.msk.bf16.mxu1 %vm538_vm0, %v9427_v13 }
  0xf1   :  { %2589 = vmatprep.subr.bf16.mxu0 %v7920_v15  ;;  %2702 = vmatprep.subr.bf16.mxu1 %v7923_v16  ;;  %v8008_v15 = vld [vmem:[%s10747_s1 + $0x8c0] ss:$16 sps:$4 sm:$0xff]   ;;  %v8011_v16 = vld [vmem:[%s10747_s1 + $0x8c8] ss:$16 sps:$4 sm:$0xff]  }
  0xf3   :  { %2590 = vmatpush1.bf16.msra.mxu0 %v7918_v17  ;;  %2703 = vmatpush1.bf16.msra.mxu1 %v7921_v18  ;;  %v8016_v17 = vld [vmem:[%s10747_s1 + $0x8e4] ss:$16 sps:$4 sm:$0xff]   ;;  %v8019_v18 = vld [vmem:[%s10747_s1 + $0x8ec] ss:$16 sps:$4 sm:$0xff]  }
  0xf4   :  { %2591 = vmatprep.subr.bf16.mxu0 %v7926_v8  ;;  %2704 = vmatprep.subr.bf16.mxu1 %v7929_v20  ;;  %v8014_v8 = vld [vmem:[%s10747_s1 + $0x8e0] ss:$16 sps:$4 sm:$0xff]   ;;  %v8017_v20 = vld [vmem:[%s10747_s1 + $0x8e8] ss:$16 sps:$4 sm:$0xff]  }
  0xf6   :  { %1903 = vmatmul.mubr.bf16.gmra.mrb[28].mxu0 %v9456_v21  ;;  %2016 = vmatmul.mubr.bf16.gmra.mrb[28].mxu1 %v9456_v21 }
  0xf7   :  { %2592 = vmatpush1.bf16.msra.mxu0 %v7924_v22  ;;  %2705 = vmatpush1.bf16.msra.mxu1 %v7927_v23  ;;  %v8022_v22 = vld [vmem:[%s10747_s1 + $0x904] ss:$16 sps:$4 sm:$0xff]   ;;  %v8025_v23 = vld [vmem:[%s10747_s1 + $0x90c] ss:$16 sps:$4 sm:$0xff]  }
  0xf8   :  { %6559 = vmatprep.mubr.msk.bf16.mxu0 %vm538_vm0, %v7932_v25  ;;  %6567 = vmatprep.mubr.msk.bf16.mxu1 %vm538_vm0, %v7932_v25  ;;  %v8020_v25 = vld [vmem:[%s10747_s1 + $0x900] ss:$16 sps:$4 sm:$0xff]  }
  0xf9   :  { %3326 = vmatprep.subr.bf16.mxu0 %v7935_v26  ;;  %3439 = vmatprep.subr.bf16.mxu1 %v7938_v27  ;;  %v8023_v26 = vld [vmem:[%s10747_s1 + $0x908] ss:$16 sps:$4 sm:$0xff]   ;;  %v9717_v27 = vld [vmem:[%s10748_s0 + $0xa4] ss:$8 sps:$4 sm:$0xff]  }
  0xfe   :  { %2596 = vmatmul.mubr.bf16.vlgmr.msra.gmra.mrb[0].mxu0 %v7930_v28  ;;  %2709 = vmatmul.mubr.bf16.vlgmr.msra.gmra.mrb[0].mxu1 %v7930_v28  ;;  %v8034_v28 = vld [vmem:[%s10747_s1 + $0x92c] ss:$16 sps:$4 sm:$0xff]  }
  0xff   :  { %3327 = vmatpush1.bf16.msra.mxu0 %v7933_v30  ;;  %3440 = vmatpush1.bf16.msra.mxu1 %v7936_v45  ;;  %v8029_v30 = vld [vmem:[%s10747_s1 + $0x920] ss:$16 sps:$4 sm:$0xff]   ;;  %v8032_v45 = vld [vmem:[%s10747_s1 + $0x928] ss:$16 sps:$4 sm:$0xff]  }
 0x100   :  { %3328 = vmatprep.subr.bf16.mxu0 %v7941_v31  ;;  %3441 = vmatprep.subr.bf16.mxu1 %v7944_v32  ;;  %v8037_v31 = vld [vmem:[%s10747_s1 + $0x944] ss:$16 sps:$4 sm:$0xff]   ;;  %v8040_v32 = vld [vmem:[%s10747_s1 + $0x94c] ss:$16 sps:$4 sm:$0xff]  }
 0x101   :  { %6560 = vmatprep.mubr.msk.bf16.mxu0 %vm538_vm0, %v9495_v4  ;;  %6568 = vmatprep.mubr.msk.bf16.mxu1 %vm538_vm0, %v9495_v4 }
 0x103   :  { %3329 = vmatpush1.bf16.msra.mxu0 %v7939_v33  ;;  %3442 = vmatpush1.bf16.msra.mxu1 %v7942_v63  ;;  %v8035_v33 = vld [vmem:[%s10747_s1 + $0x940] ss:$16 sps:$4 sm:$0xff]   ;;  %v8038_v63 = vld [vmem:[%s10747_s1 + $0x948] ss:$16 sps:$4 sm:$0xff]  }
 0x104   :  { %3330 = vmatprep.subr.bf16.mxu0 %v7950_v9  ;;  %3443 = vmatprep.subr.bf16.mxu1 %v7953_v35  ;;  %v8046_v9 = vld [vmem:[%s10749_s3 + $0x4] ss:$16 sps:$4 sm:$0xff]   ;;  %v8049_v35 = vld [vmem:[%s10749_s3 + $0xc] ss:$16 sps:$4 sm:$0xff]  }
 0x106   :  { %2606 = vmatmul.mubr.bf16.gmra.mrb[4].mxu0 %v9516_v36  ;;  %2719 = vmatmul.mubr.bf16.gmra.mrb[4].mxu1 %v9516_v36 }
 0x107   :  { %3331 = vmatpush1.bf16.msra.mxu0 %v7948_v37  ;;  %3444 = vmatpush1.bf16.msra.mxu1 %v7951_v14  ;;  %v8044_v37 = vld [vmem:[%s10749_s3] ss:$16 sps:$4 sm:$0xff]   ;;  %v8047_v14 = vld [vmem:[%s10749_s3 + $0x8] ss:$16 sps:$4 sm:$0xff]  }
 0x108   :  { %3332 = vmatprep.subr.bf16.mxu0 %v7956_v38  ;;  %3445 = vmatprep.subr.bf16.mxu1 %v7959_v40  ;;  %v8052_v38 = vld [vmem:[%s10749_s3 + $0x24] ss:$16 sps:$4 sm:$0xff]   ;;  %v8055_v40 = vld [vmem:[%s10749_s3 + $0x2c] ss:$16 sps:$4 sm:$0xff]  }
 0x109   :  { %6561 = vmatprep.mubr.msk.bf16.mxu0 %vm538_vm0, %v9533_v41  ;;  %6569 = vmatprep.mubr.msk.bf16.mxu1 %vm538_vm0, %v9533_v41 }
 0x10b   :  { %3333 = vmatpush1.bf16.msra.mxu0 %v7954_v19  ;;  %3446 = vmatpush1.bf16.msra.mxu1 %v7957_v43  ;;  %v8053_v19 = vld [vmem:[%s10749_s3 + $0x28] ss:$16 sps:$4 sm:$0xff]   ;;  %v8058_v43 = vld [vmem:[%s10749_s3 + $0x44] ss:$16 sps:$4 sm:$0xff]  }
 0x10c   :  { %3334 = vmatprep.subr.bf16.mxu0 %v7965_v44  ;;  %3447 = vmatprep.subr.bf16.mxu1 %v7968_v46  ;;  %v8056_v44 = vld [vmem:[%s10749_s3 + $0x40] ss:$16 sps:$4 sm:$0xff]   ;;  %v8064_v46 = vld [vmem:[%s10749_s3 + $0x64] ss:$16 sps:$4 sm:$0xff]  }
 0x10e   :  { %2616 = vmatmul.mubr.bf16.gmra.mrb[8].mxu0 %v9556_v24  ;;  %2729 = vmatmul.mubr.bf16.gmra.mrb[8].mxu1 %v9556_v24 }
 0x10f   :  { %3335 = vmatpush1.bf16.msra.mxu0 %v7963_v47  ;;  %3448 = vmatpush1.bf16.msra.mxu1 %v7966_v48  ;;  %v8067_v47 = vld [vmem:[%s10749_s3 + $0x6c] ss:$16 sps:$4 sm:$0xff]   ;;  %v8062_v48 = vld [vmem:[%s10749_s3 + $0x60] ss:$16 sps:$4 sm:$0xff]  }
 0x110   :  { %3336 = vmatprep.subr.bf16.mxu0 %v7971_v49  ;;  %3449 = vmatprep.subr.bf16.mxu1 %v7974_v29  ;;  %v8065_v49 = vld [vmem:[%s10749_s3 + $0x68] ss:$16 sps:$4 sm:$0xff]   ;;  %v8070_v29 = vld [vmem:[%s10749_s3 + $0x84] ss:$16 sps:$4 sm:$0xff]  }
 0x111   :  { %6562 = vmatprep.mubr.msk.bf16.mxu0 %vm538_vm0, %v9573_v51  ;;  %6570 = vmatprep.mubr.msk.bf16.mxu1 %vm538_vm0, %v9573_v51 }
 0x113   :  { %3337 = vmatpush1.bf16.msra.mxu0 %v7969_v52  ;;  %3450 = vmatpush1.bf16.msra.mxu1 %v7972_v54  ;;  %v8068_v52 = vld [vmem:[%s10749_s3 + $0x80] ss:$16 sps:$4 sm:$0xff]   ;;  %v8076_v54 = vld [vmem:[%s10749_s3 + $0xa4] ss:$16 sps:$4 sm:$0xff]  }
 0x114   :  { %3338 = vmatprep.subr.bf16.mxu0 %v7980_v34  ;;  %3451 = vmatprep.subr.bf16.mxu1 %v7983_v55  ;;  %v8079_v34 = vld [vmem:[%s10749_s3 + $0xac] ss:$16 sps:$4 sm:$0xff]   ;;  %v8074_v55 = vld [vmem:[%s10749_s3 + $0xa0] ss:$16 sps:$4 sm:$0xff]  }
 0x116   :  { %2626 = vmatmul.mubr.bf16.gmra.mrb[12].mxu0 %v9596_v56  ;;  %2739 = vmatmul.mubr.bf16.gmra.mrb[12].mxu1 %v9596_v56 }
 0x117   :  { %3339 = vmatpush1.bf16.msra.mxu0 %v7978_v57  ;;  %3452 = vmatpush1.bf16.msra.mxu1 %v7981_v39  ;;  %v8077_v57 = vld [vmem:[%s10749_s3 + $0xa8] ss:$16 sps:$4 sm:$0xff]   ;;  %v8082_v39 = vld [vmem:[%s10749_s3 + $0xc4] ss:$16 sps:$4 sm:$0xff]  }
 0x118   :  { %3340 = vmatprep.subr.bf16.mxu0 %v7986_v58  ;;  %3453 = vmatprep.subr.bf16.mxu1 %v7989_v59  ;;  %v8080_v58 = vld [vmem:[%s10749_s3 + $0xc0] ss:$16 sps:$4 sm:$0xff]   ;;  %v8083_v59 = vld [vmem:[%s10749_s3 + $0xc8] ss:$16 sps:$4 sm:$0xff]  }
 0x119   :  { %6563 = vmatprep.mubr.msk.bf16.mxu0 %vm538_vm0, %v9613_v61  ;;  %6571 = vmatprep.mubr.msk.bf16.mxu1 %vm538_vm0, %v9613_v61 }
 0x11b   :  { %3341 = vmatpush1.bf16.msra.mxu0 %v7984_v42  ;;  %3454 = vmatpush1.bf16.msra.mxu1 %v7987_v62  ;;  %v8091_v42 = vld [vmem:[%s10749_s3 + $0xec] ss:$16 sps:$4 sm:$0xff]   ;;  %v8086_v62 = vld [vmem:[%s10749_s3 + $0xe0] ss:$16 sps:$4 sm:$0xff]  }
 0x11c   :  { %3342 = vmatprep.subr.bf16.mxu0 %v7995_v1  ;;  %3455 = vmatprep.subr.bf16.mxu1 %v7998_v50  ;;  %v8089_v1 = vld [vmem:[%s10749_s3 + $0xe8] ss:$16 sps:$4 sm:$0xff]   ;;  %v8094_v50 = vld [vmem:[%s10749_s3 + $0x104] ss:$16 sps:$4 sm:$0xff]  }
 0x11e   :  { %2636 = vmatmul.mubr.bf16.gmra.mrb[16].mxu0 %v9632_v2  ;;  %2749 = vmatmul.mubr.bf16.gmra.mrb[16].mxu1 %v9632_v2 }
 0x11f   :  { %3343 = vmatpush1.bf16.msra.mxu0 %v7993_v3  ;;  %3456 = vmatpush1.bf16.msra.mxu1 %v7996_v53  ;;  %v8092_v3 = vld [vmem:[%s10749_s3 + $0x100] ss:$16 sps:$4 sm:$0xff]   ;;  %v8095_v53 = vld [vmem:[%s10749_s3 + $0x108] ss:$16 sps:$4 sm:$0xff]  }
 0x120   :  { %6564 = vmatprep.mubr.msk.bf16.mxu0 %vm538_vm0, %v9647_v5  ;;  %6572 = vmatprep.mubr.msk.bf16.mxu1 %vm538_vm0, %v9647_v5 }
 0x121   :  { %3344 = vmatprep.subr.bf16.mxu0 %v8003_v6  ;;  %3457 = vmatprep.subr.bf16.mxu1 %v8006_v7  ;;  %v8103_v6 = vld [vmem:[%s10749_s3 + $0x12c] ss:$16 sps:$4 sm:$0xff]  }
 0x122   :  { %v8468_v7 = vld [vmem:[%s10748_s0 + $0x94] ss:$8 sps:$4 sm:$0xff]  }
 0x123   :  { %3345 = vmatpush1.bf16.msra.mxu0 %v8001_v10  ;;  %3458 = vmatpush1.bf16.msra.mxu1 %v8004_v60  ;;  %v8098_v10 = vld [vmem:[%s10749_s3 + $0x120] ss:$16 sps:$4 sm:$0xff]   ;;  %v8101_v60 = vld [vmem:[%s10749_s3 + $0x128] ss:$16 sps:$4 sm:$0xff]  }
 0x124   :  { %3346 = vmatprep.subr.bf16.mxu0 %v8010_v11  ;;  %3459 = vmatprep.subr.bf16.mxu1 %v8013_v12  ;;  %v8106_v11 = vld [vmem:[%s10749_s3 + $0x144] ss:$16 sps:$4 sm:$0xff]   ;;  %v8109_v12 = vld [vmem:[%s10749_s3 + $0x14c] ss:$16 sps:$4 sm:$0xff]  }
 0x126   :  { %2646 = vmatmul.mubr.bf16.gmra.mrb[20].mxu0 %v9676_v0  ;;  %2759 = vmatmul.mubr.bf16.gmra.mrb[20].mxu1 %v9676_v0 }
 0x127   :  { %3347 = vmatpush1.bf16.msra.mxu0 %v8008_v15  ;;  %3460 = vmatpush1.bf16.msra.mxu1 %v8011_v16  ;;  %v8107_v15 = vld [vmem:[%s10749_s3 + $0x148] ss:$16 sps:$4 sm:$0xff]  }
 0x128   :  { %6565 = vmatprep.mubr.msk.bf16.mxu0 %vm538_vm0, %v9427_v13  ;;  %6573 = vmatprep.mubr.msk.bf16.mxu1 %vm538_vm0, %v9427_v13  ;;  %v8031_v13 = vld [vmem:[%s10747_s1 + $0x924] ss:$16 sps:$4 sm:$0xff]   ;;  %v8469_v16 = vld [vmem:[%s10748_s0 + $0x90] ss:$8 sps:$4 sm:$0xff]  }
 0x129   :  { %3348 = vmatprep.subr.bf16.mxu0 %v8016_v17  ;;  %3461 = vmatprep.subr.bf16.mxu1 %v8019_v18  ;;  %v8041_v17 = vld [vmem:[%s10748_s0 + $0xb4] ss:$8 sps:$4 sm:$0xff]   ;;  %v8043_v18 = vld [vmem:[%s10748_s0 + $0xb0] ss:$8 sps:$4 sm:$0xff]  }
 0x12b   :  { %3349 = vmatpush1.bf16.msra.mxu0 %v8014_v8  ;;  %3462 = vmatpush1.bf16.msra.mxu1 %v8017_v20  ;;  %v8112_v8 = vld [vmem:[%s10749_s3 + $0x164] ss:$16 sps:$4 sm:$0xff]   ;;  %v8115_v20 = vld [vmem:[%s10749_s3 + $0x16c] ss:$16 sps:$4 sm:$0xff]  }
 0x12c   :  { %3350 = vmatprep.subr.bf16.mxu0 %v8022_v22  ;;  %3463 = vmatprep.subr.bf16.mxu1 %v8025_v23  ;;  %v8110_v22 = vld [vmem:[%s10749_s3 + $0x160] ss:$16 sps:$4 sm:$0xff]   ;;  %v8113_v23 = vld [vmem:[%s10749_s3 + $0x168] ss:$16 sps:$4 sm:$0xff]  }
 0x12e   :  { %2656 = vmatmul.mubr.bf16.gmra.mrb[24].mxu0 %v9456_v21  ;;  %2769 = vmatmul.mubr.bf16.gmra.mrb[24].mxu1 %v9456_v21  ;;  %v9746_v21 = vld [vmem:[%s10748_s0 + $0xa0] ss:$8 sps:$4 sm:$0xff]  }
 0x12f   :  { %3351 = vmatpush1.bf16.msra.mxu0 %v8020_v25  ;;  %3464 = vmatpush1.bf16.msra.mxu1 %v8023_v26  ;;  %v8116_v25 = vld [vmem:[%s10749_s3 + $0x180] ss:$16 sps:$4 sm:$0xff]   ;;  %v8118_v26 = vld [vmem:[%s10749_s3 + $0x184] ss:$16 sps:$4 sm:$0xff]  }
 0x130   :  { %6566 = vmatprep.mubr.msk.bf16.mxu0 %vm538_vm0, %v9717_v27  ;;  %6574 = vmatprep.mubr.msk.bf16.mxu1 %vm538_vm0, %v9717_v27 }
 0x131   :  { %3352 = vmatprep.subr.bf16.mxu0 %v8031_v13  ;;  %3465 = vmatprep.subr.bf16.mxu1 %v8034_v28  ;;  %v8121_v13 = vld [vmem:[%s10749_s3 + $0x18c] ss:$16 sps:$4 sm:$0xff]   ;;  %v8124_v28 = vld [vmem:[%s10749_s3 + $0x1a4] ss:$16 sps:$4 sm:$0xff]  }
 0x133   :  { %3353 = vmatpush1.bf16.msra.mxu0 %v8029_v30  ;;  %3466 = vmatpush1.bf16.msra.mxu1 %v8032_v45  ;;  %v8127_v30 = vld [vmem:[%s10749_s3 + $0x1ac] ss:$16 sps:$4 sm:$0xff]   ;;  %v8122_v45 = vld [vmem:[%s10749_s3 + $0x1a0] ss:$16 sps:$4 sm:$0xff]  }
 0x134   :  { %3354 = vmatprep.subr.bf16.mxu0 %v8037_v31  ;;  %3467 = vmatprep.subr.bf16.mxu1 %v8040_v32  ;;  %v8125_v31 = vld [vmem:[%s10749_s3 + $0x1a8] ss:$16 sps:$4 sm:$0xff]   ;;  %v8130_v32 = vld [vmem:[%s10749_s3 + $0x1c4] ss:$16 sps:$4 sm:$0xff]  }
 0x136   :  { %2666 = vmatmul.mubr.bf16.gmra.mrb[28].mxu0 %v9746_v21  ;;  %2779 = vmatmul.mubr.bf16.gmra.mrb[28].mxu1 %v9746_v21 }
 0x137   :  { %3355 = vmatpush1.bf16.msra.mxu0 %v8035_v33  ;;  %3468 = vmatpush1.bf16.msra.mxu1 %v8038_v63  ;;  %v8128_v33 = vld [vmem:[%s10749_s3 + $0x1c0] ss:$16 sps:$4 sm:$0xff]   ;;  %v8131_v63 = vld [vmem:[%s10749_s3 + $0x1c8] ss:$16 sps:$4 sm:$0xff]  }
 0x138   :  { %6711 = vmatprep.mubr.msk.bf16.mxu0 %vm538_vm0, %v9495_v4  ;;  %6719 = vmatprep.mubr.msk.bf16.mxu1 %vm538_vm0, %v9495_v4  ;;  %v8050_v4 = vld [vmem:[%s10749_s3 + $0x20] ss:$16 sps:$4 sm:$0xff]  }
 0x139   :  { %4059 = vmatprep.subr.bf16.mxu0 %v8046_v9  ;;  %4102 = vmatprep.subr.bf16.mxu1 %v8049_v35  ;;  %v8136_v9 = vld [vmem:[%s10749_s3 + $0x1e4] ss:$16 sps:$4 sm:$0xff]   ;;  %v8139_v35 = vld [vmem:[%s10749_s3 + $0x1ec] ss:$16 sps:$4 sm:$0xff]  }
 0x13e   :  { %3359 = vmatmul.mubr.bf16.vlgmr.msra.gmra.mrb[0].mxu0 %v9516_v36  ;;  %3472 = vmatmul.mubr.bf16.vlgmr.msra.gmra.mrb[0].mxu1 %v9516_v36  ;;  %v8061_v36 = vld [vmem:[%s10749_s3 + $0x4c] ss:$16 sps:$4 sm:$0xff]  }
 0x13f   :  { %6712 = vmatprep.mubr.msk.bf16.mxu0 %vm538_vm0, %v9533_v41  ;;  %6720 = vmatprep.mubr.msk.bf16.mxu1 %vm538_vm0, %v9533_v41  ;;  %v8059_v41 = vld [vmem:[%s10749_s3 + $0x48] ss:$16 sps:$4 sm:$0xff]  }
 0x140   :  { %4060 = vmatpush1.bf16.msra.mxu0 %v8044_v37  ;;  %4103 = vmatpush1.bf16.msra.mxu1 %v8047_v14  ;;  %v8134_v37 = vld [vmem:[%s10749_s3 + $0x1e0] ss:$16 sps:$4 sm:$0xff]   ;;  %v8137_v14 = vld [vmem:[%s10749_s3 + $0x1e8] ss:$16 sps:$4 sm:$0xff]  }
 0x141   :  { %4061 = vmatprep.subr.bf16.mxu0 %v8052_v38  ;;  %4104 = vmatprep.subr.bf16.mxu1 %v8055_v40  ;;  %v8142_v38 = vld [vmem:[%s10749_s3 + $0x204] ss:$16 sps:$4 sm:$0xff]   ;;  %v8145_v40 = vld [vmem:[%s10749_s3 + $0x20c] ss:$16 sps:$4 sm:$0xff]  }
 0x144   :  { %4062 = vmatpush1.bf16.msra.mxu0 %v8050_v4  ;;  %4105 = vmatpush1.bf16.msra.mxu1 %v8053_v19  ;;  %v3655_v4 = vlaneseq }
 0x145   :  { %4063 = vmatprep.subr.bf16.mxu0 %v8058_v43  ;;  %4106 = vmatprep.subr.bf16.mxu1 %v8061_v36 }
 0x146   :  { %3369 = vmatmul.mubr.bf16.gmra.mrb[4].mxu0 %v9556_v24  ;;  %3482 = vmatmul.mubr.bf16.gmra.mrb[4].mxu1 %v9556_v24  ;;  %v8073_v24 = vld [vmem:[%s10749_s3 + $0x8c] ss:$16 sps:$4 sm:$0xff]  }
 0x147   :  { %6713 = vmatprep.mubr.msk.bf16.mxu0 %vm538_vm0, %v9573_v51  ;;  %6721 = vmatprep.mubr.msk.bf16.mxu1 %vm538_vm0, %v9573_v51  ;;  %v8071_v51 = vld [vmem:[%s10749_s3 + $0x88] ss:$16 sps:$4 sm:$0xff]  }
 0x148   :  { %4064 = vmatpush1.bf16.msra.mxu0 %v8056_v44  ;;  %4107 = vmatpush1.bf16.msra.mxu1 %v8059_v41 }
 0x149   :  { %4065 = vmatprep.subr.bf16.mxu0 %v8064_v46  ;;  %4108 = vmatprep.subr.bf16.mxu1 %v8067_v47  ;;  %v10006_v46 = vshrl.u32 %v3655_v4, 7  ;;  %v8149_v4 = vld [vmem:[%s10749_s3 + $0x228] ss:$16 sps:$4 sm:$0xff]  }
 0x14c   :  { %4066 = vmatpush1.bf16.msra.mxu0 %v8062_v48  ;;  %4109 = vmatpush1.bf16.msra.mxu1 %v8065_v49 }
 0x14d   :  { %4067 = vmatprep.subr.bf16.mxu0 %v8070_v29  ;;  %4110 = vmatprep.subr.bf16.mxu1 %v8073_v24 }
 0x14e   :  { %3379 = vmatmul.mubr.bf16.gmra.mrb[8].mxu0 %v9596_v56  ;;  %3492 = vmatmul.mubr.bf16.gmra.mrb[8].mxu1 %v9596_v56  ;;  %v8085_v56 = vld [vmem:[%s10749_s3 + $0xcc] ss:$16 sps:$4 sm:$0xff]  }
 0x14f   :  { %6714 = vmatprep.mubr.msk.bf16.mxu0 %vm538_vm0, %v9613_v61  ;;  %6722 = vmatprep.mubr.msk.bf16.mxu1 %vm538_vm0, %v9613_v61  ;;  %v8088_v61 = vld [vmem:[%s10749_s3 + $0xe4] ss:$16 sps:$4 sm:$0xff]  }
 0x150   :  { %4068 = vmatpush1.bf16.msra.mxu0 %v8068_v52  ;;  %4111 = vmatpush1.bf16.msra.mxu1 %v8071_v51 }
 0x151   :  { %4069 = vmatprep.subr.bf16.mxu0 %v8076_v54  ;;  %4112 = vmatprep.subr.bf16.mxu1 %v8079_v34  ;;  %v3657_v54 = vsub.s32 0, %v10006_v46  ;;  %v3648_v34 = vld [vmem:[%s10750_s2] sm:$0x3] }
 0x154   :  { %4070 = vmatpush1.bf16.msra.mxu0 %v8074_v55  ;;  %4113 = vmatpush1.bf16.msra.mxu1 %v8077_v57  ;;  %v3661_v55 = vsub.s32 1, %v10006_v46 }
 0x155   :  { %4071 = vmatprep.subr.bf16.mxu0 %v8082_v39  ;;  %4114 = vmatprep.subr.bf16.mxu1 %v8085_v56 }
 0x156   :  { %3389 = vmatmul.mubr.bf16.gmra.mrb[12].mxu0 %v9632_v2  ;;  %3502 = vmatmul.mubr.bf16.gmra.mrb[12].mxu1 %v9632_v2  ;;  %v8097_v2 = vld [vmem:[%s10749_s3 + $0x10c] ss:$16 sps:$4 sm:$0xff]  }
 0x157   :  { %6715 = vmatprep.mubr.msk.bf16.mxu0 %vm538_vm0, %v9647_v5  ;;  %6723 = vmatprep.mubr.msk.bf16.mxu1 %vm538_vm0, %v9647_v5  ;;  %v8100_v5 = vld [vmem:[%s10749_s3 + $0x124] ss:$16 sps:$4 sm:$0xff]  }
 0x158   :  { %4072 = vmatpush1.bf16.msra.mxu0 %v8080_v58  ;;  %4115 = vmatpush1.bf16.msra.mxu1 %v8083_v59  ;;  %v10015_v58 = vrot.slane %v3648_v34, %v3657_v54 }
 0x159   :  { %4073 = vmatprep.subr.bf16.mxu0 %v8088_v61  ;;  %4116 = vmatprep.subr.bf16.mxu1 %v8091_v42 }
 0x15c   :  { %4074 = vmatpush1.bf16.msra.mxu0 %v8086_v62  ;;  %4117 = vmatpush1.bf16.msra.mxu1 %v8089_v1  ;;  %v10019_v62 = vrot.slane %v3648_v34, %v3661_v55 }
 0x15d   :  { %4075 = vmatprep.subr.bf16.mxu0 %v8094_v50  ;;  %4118 = vmatprep.subr.bf16.mxu1 %v8097_v2 }
 0x15e   :  { %3399 = vmatmul.mubr.bf16.gmra.mrb[16].mxu0 %v9676_v0  ;;  %3512 = vmatmul.mubr.bf16.gmra.mrb[16].mxu1 %v9676_v0  ;;  %v8104_v0 = vld [vmem:[%s10749_s3 + $0x140] ss:$16 sps:$4 sm:$0xff]  }
 0x15f   :  { %6716 = vmatprep.mubr.msk.bf16.mxu0 %vm538_vm0, %v8468_v7  ;;  %6724 = vmatprep.mubr.msk.bf16.mxu1 %vm538_vm0, %v8468_v7 }
 0x160   :  { %4076 = vmatpush1.bf16.msra.mxu0 %v8092_v3  ;;  %4119 = vmatpush1.bf16.msra.mxu1 %v8095_v53 }
 0x161   :  { %4077 = vmatprep.subr.bf16.mxu0 %v8100_v5  ;;  %4120 = vmatprep.subr.bf16.mxu1 %v8103_v6 }
 0x164   :  { %4078 = vmatpush1.bf16.msra.mxu0 %v8098_v10  ;;  %4121 = vmatpush1.bf16.msra.mxu1 %v8101_v60 }
 0x165   :  { %4079 = vmatprep.subr.bf16.mxu0 %v8106_v11  ;;  %4122 = vmatprep.subr.bf16.mxu1 %v8109_v12 }
 0x166   :  { %3409 = vmatmul.mubr.bf16.gmra.mrb[20].mxu0 %v8469_v16  ;;  %3522 = vmatmul.mubr.bf16.gmra.mrb[20].mxu1 %v8469_v16 }
 0x167   :  { %6717 = vmatprep.mubr.msk.bf16.mxu0 %vm538_vm0, %v9717_v27  ;;  %6725 = vmatprep.mubr.msk.bf16.mxu1 %vm538_vm0, %v9717_v27  ;;  %v8119_v27 = vld [vmem:[%s10749_s3 + $0x188] ss:$16 sps:$4 sm:$0xff]  }
 0x168   :  { %4080 = vmatpush1.bf16.msra.mxu0 %v8104_v0  ;;  %4123 = vmatpush1.bf16.msra.mxu1 %v8107_v15 }
 0x169   :  { %4081 = vmatprep.subr.bf16.mxu0 %v8112_v8  ;;  %4124 = vmatprep.subr.bf16.mxu1 %v8115_v20 }
 0x16c   :  { %4082 = vmatpush1.bf16.msra.mxu0 %v8110_v22  ;;  %4125 = vmatpush1.bf16.msra.mxu1 %v8113_v23 }
 0x16d   :  { %4083 = vmatprep.subr.bf16.mxu0 %v8118_v26  ;;  %4126 = vmatprep.subr.bf16.mxu1 %v8121_v13 }
 0x16e   :  { %3419 = vmatmul.mubr.bf16.gmra.mrb[24].mxu0 %v9746_v21  ;;  %3532 = vmatmul.mubr.bf16.gmra.mrb[24].mxu1 %v9746_v21  ;;  %v8133_v21 = vld [vmem:[%s10749_s3 + $0x1cc] ss:$16 sps:$4 sm:$0xff]  }
 0x16f   :  { %6718 = vmatprep.mubr.msk.bf16.mxu0 %vm538_vm0, %v8041_v17  ;;  %6726 = vmatprep.mubr.msk.bf16.mxu1 %vm538_vm0, %v8041_v17 }
 0x170   :  { %4084 = vmatpush1.bf16.msra.mxu0 %v8116_v25  ;;  %4127 = vmatpush1.bf16.msra.mxu1 %v8119_v27 }
 0x171   :  { %4085 = vmatprep.subr.bf16.mxu0 %v8124_v28  ;;  %4128 = vmatprep.subr.bf16.mxu1 %v8127_v30 }
 0x174   :  { %4086 = vmatpush1.bf16.msra.mxu0 %v8122_v45  ;;  %4129 = vmatpush1.bf16.msra.mxu1 %v8125_v31 }
 0x175   :  { %4087 = vmatprep.subr.bf16.mxu0 %v8130_v32  ;;  %4130 = vmatprep.subr.bf16.mxu1 %v8133_v21 }
 0x176   :  { %3429 = vmatmul.mubr.bf16.gmra.mrb[28].mxu0 %v8043_v18  ;;  %3542 = vmatmul.mubr.bf16.gmra.mrb[28].mxu1 %v8043_v18 }
 0x178   :  { %4088 = vmatpush1.bf16.msra.mxu0 %v8128_v33  ;;  %4131 = vmatpush1.bf16.msra.mxu1 %v8131_v63  ;;  %v8140_v63 = vld [vmem:[%s10749_s3 + $0x200] ss:$16 sps:$4 sm:$0xff]  }
 0x179   :  { %4089 = vmatprep.subr.bf16.mxu0 %v8136_v9  ;;  %4132 = vmatprep.subr.bf16.mxu1 %v8139_v35  ;;  %v8143_v9 = vld [vmem:[%s10749_s3 + $0x208] ss:$16 sps:$4 sm:$0xff]   ;;  %v8148_v35 = vld [vmem:[%s10749_s3 + $0x224] ss:$16 sps:$4 sm:$0xff]  }
 0x17c   :  { %4090 = vmatpush1.bf16.msra.mxu0 %v8134_v37  ;;  %4133 = vmatpush1.bf16.msra.mxu1 %v8137_v14  ;;  %v8151_v37 = vld [vmem:[%s10749_s3 + $0x22c] ss:$16 sps:$4 sm:$0xff]  }
 0x17d   :  { %4573 = vmatprep.subr.bf16.mxu0 %v8142_v38  ;;  %4616 = vmatprep.subr.bf16.mxu1 %v8145_v40  ;;  %v8146_v40 = vld [vmem:[%s10749_s3 + $0x220] ss:$16 sps:$4 sm:$0xff]  }
 0x211   :  { %v3360_v19 = vpop.f32.mrb[0].mxu0  ;;  %v3473_v43 = vpop.f32.mrb[0].mxu1 }
 0x212   :  { %v3616_v36 = vmax.f32 %v3360_v19, %v3473_v43  ;;  %v3362_v44 = vpop.f32.mrb[1].mxu0  ;;  %v3475_v41 = vpop.f32.mrb[1].mxu1 }
 0x213   :  { %v3617_v47 = vmax.f32 %v3362_v44, %v3475_v41  ;;  %v3364_v48 = vpop.f32.mrb[2].mxu0  ;;  %v3477_v49 = vpop.f32.mrb[2].mxu1  ;;  %v8154_v44 = vld [vmem:[%s10749_s3 + $0x244] ss:$16 sps:$4 sm:$0xff]   ;;  %v8157_v41 = vld [vmem:[%s10749_s3 + $0x24c] ss:$16 sps:$4 sm:$0xff]  }
 0x214   :  { %v3618_v29 = vmax.f32 %v3364_v48, %v3477_v49  ;;  %v3366_v24 = vpop.f32.mrb[3].mxu0  ;;  %v3479_v52 = vpop.f32.mrb[3].mxu1 }
 0x215   :  { %v3619_v51 = vmax.f32 %v3366_v24, %v3479_v52 }
 0x219   :  { %v3370_v57 = vpop.f32.mrb[4].mxu0  ;;  %v3483_v39 = vpop.f32.mrb[4].mxu1 }
 0x21a   :  { %v3620_v56 = vmax.f32 %v3370_v57, %v3483_v39  ;;  %v3372_v59 = vpop.f32.mrb[5].mxu0  ;;  %v3485_v61 = vpop.f32.mrb[5].mxu1  ;;  %v8152_v39 = vld [vmem:[%s10749_s3 + $0x240] ss:$16 sps:$4 sm:$0xff]  }
 0x21b   :  { %v3621_v42 = vmax.f32 %v3372_v59, %v3485_v61  ;;  %v3374_v1 = vpop.f32.mrb[6].mxu0  ;;  %v3487_v50 = vpop.f32.mrb[6].mxu1 }
 0x21c   :  { %v3650_v2 = vmax.f32 %v3616_v36, %v3620_v56  ;;  %v3622_v3 = vmax.f32 %v3374_v1, %v3487_v50  ;;  %v3376_v53 = vpop.f32.mrb[7].mxu0  ;;  %v3489_v5 = vpop.f32.mrb[7].mxu1  ;;  %v8155_v56 = vld [vmem:[%s10749_s3 + $0x248] ss:$16 sps:$4 sm:$0xff]   ;;  %v8163_v1 = vld [vmem:[%s10749_s3 + $0x26c] ss:$16 sps:$4 sm:$0xff]  }
 0x21d   :  { %v3651_v6 = vmax.f32 %v3617_v47, %v3621_v42  ;;  %v3623_v7 = vmax.f32 %v3376_v53, %v3489_v5  ;;  %v8160_v42 = vld [vmem:[%s10749_s3 + $0x264] ss:$16 sps:$4 sm:$0xff]   ;;  %v8158_v53 = vld [vmem:[%s10749_s3 + $0x260] ss:$16 sps:$4 sm:$0xff]  }
 0x21e   :  { %v3665_v10 = vadd.f32 %v10015_v58, %v3650_v2  ;;  %v3652_v60 = vmax.f32 %v3618_v29, %v3622_v3 }
 0x21f   :  { %v3666_v11 = vadd.f32 %v10019_v62, %v3651_v6  ;;  %v3653_v12 = vmax.f32 %v3619_v51, %v3623_v7 }
 0x220   :  { %v3667_v0 = vadd.f32 %v10015_v58, %v3652_v60  ;;  %v3669_v18 = vmax.f32 %v3665_v10, 0.0  ;;  %v8161_v10 = vld [vmem:[%s10749_s3 + $0x268] ss:$16 sps:$4 sm:$0xff]   ;;  %v8166_v60 = vld [vmem:[%s10749_s3 + $0x284] ss:$16 sps:$4 sm:$0xff]  }
 0x221   :  { %v3668_v15 = vadd.f32 %v10019_v62, %v3653_v12  ;;  %v3380_v16 = vpop.f32.mrb[8].mxu0  ;;  %v3493_v17 = vpop.f32.mrb[8].mxu1  ;;  %v3670_v25 = vmax.f32 %v3666_v11, 0.0 }
 0x222   :  { %v3671_v8 = vmax.f32 %v3667_v0, 0.0  ;;  %v3624_v20 = vmax.f32 %v3380_v16, %v3493_v17  ;;  %v3382_v22 = vpop.f32.mrb[9].mxu0  ;;  %v3495_v23 = vpop.f32.mrb[9].mxu1  ;;  %v8169_v17 = vld [vmem:[%s10749_s3 + $0x28c] ss:$16 sps:$4 sm:$0xff]  }
 0x223   :  { %v3672_v26 = vmax.f32 %v3668_v15, 0.0  ;;  %v3625_v27 = vmax.f32 %v3382_v22, %v3495_v23  ;;  %v3384_v13 = vpop.f32.mrb[10].mxu0  ;;  %v3497_v28 = vpop.f32.mrb[10].mxu1 }
 0x224   :  { %v3673_v30 = vpack.c.bf16 %v3671_v8, %v3669_v18  ;;  %v3626_v45 = vmax.f32 %v3384_v13, %v3497_v28  ;;  %v3386_v31 = vpop.f32.mrb[11].mxu0  ;;  %v3499_v32 = vpop.f32.mrb[11].mxu1 }
 0x225   :  { %v3627_v21 = vmax.f32 %v3386_v31, %v3499_v32  ;;  %v3674_v33 = vpack.c.bf16 %v3672_v26, %v3670_v25  ;;  %v8167_v31 = vld [vmem:[%s10749_s3 + $0x288] ss:$16 sps:$4 sm:$0xff]   ;;  %v8172_v32 = vld [vmem:[%s10749_s3 + $0x2a4] ss:$16 sps:$4 sm:$0xff]  }
 0x227   :  { %4091 = vmatprep.mubr.bf16.mxu0 %v3674_v33  ;;  %4134 = vmatprep.mubr.bf16.mxu1 %v3674_v33 }
 0x228   :  { %4092 = vmatmul.mubr.bf16.vlgmr.msra.gmra.mrb[32].mxu0 %v3673_v30  ;;  %4135 = vmatmul.mubr.bf16.vlgmr.msra.gmra.mrb[32].mxu1 %v3673_v30  ;;  %v8164_v30 = vld [vmem:[%s10749_s3 + $0x280] ss:$16 sps:$4 sm:$0xff]  }
 0x229   :  { %4574 = vmatpush1.bf16.msra.mxu0 %v8140_v63  ;;  %4617 = vmatpush1.bf16.msra.mxu1 %v8143_v9  ;;  %v3390_v14 = vpop.f32.mrb[12].mxu0  ;;  %v3503_v38 = vpop.f32.mrb[12].mxu1  ;;  %v8170_v9 = vld [vmem:[%s10749_s3 + $0x2a0] ss:$16 sps:$4 sm:$0xff]  }
 0x22a   :  { %v3628_v19 = vmax.f32 %v3390_v14, %v3503_v38  ;;  %v3392_v43 = vpop.f32.mrb[13].mxu0  ;;  %v3505_v36 = vpop.f32.mrb[13].mxu1  ;;  %4575 = vmatprep.subr.bf16.mxu0 %v8148_v35  ;;  %4618 = vmatprep.subr.bf16.mxu1 %v8151_v37  ;;  %v8173_v35 = vld [vmem:[%s10749_s3 + $0x2a8] ss:$16 sps:$4 sm:$0xff]  }
 0x22b   :  { %v3629_v47 = vmax.f32 %v3392_v43, %v3505_v36  ;;  %v3394_v48 = vpop.f32.mrb[14].mxu0  ;;  %v3507_v49 = vpop.f32.mrb[14].mxu1 }
 0x22c   :  { %v4174_v29 = vmax.f32 %v3624_v20, %v3628_v19  ;;  %v3630_v24 = vmax.f32 %v3394_v48, %v3507_v49  ;;  %v3396_v52 = vpop.f32.mrb[15].mxu0  ;;  %v3509_v51 = vpop.f32.mrb[15].mxu1 }
 0x22d   :  { %v4175_v34 = vmax.f32 %v3625_v27, %v3629_v47  ;;  %v3631_v57 = vmax.f32 %v3396_v52, %v3509_v51  ;;  %4576 = vmatpush1.bf16.msra.mxu0 %v8146_v40  ;;  %4619 = vmatpush1.bf16.msra.mxu1 %v8149_v4  ;;  %v8178_v40 = vld [vmem:[%s10749_s3 + $0x2c4] ss:$16 sps:$4 sm:$0xff]   ;;  %v8181_v4 = vld [vmem:[%s10749_s3 + $0x2cc] ss:$16 sps:$4 sm:$0xff]   ;;  %v8179_v52 = vld [vmem:[%s10749_s3 + $0x2c8] ss:$16 sps:$4 sm:$0xff]  }
 0x22e   :  { %v4178_v59 = vadd.f32 %v4174_v29, %v10015_v58  ;;  %v4176_v61 = vmax.f32 %v3626_v45, %v3630_v24  ;;  %4577 = vmatprep.subr.bf16.mxu0 %v8154_v44  ;;  %4620 = vmatprep.subr.bf16.mxu1 %v8157_v41  ;;  %v8176_v24 = vld [vmem:[%s10749_s3 + $0x2c0] ss:$16 sps:$4 sm:$0xff]  }
 0x22f   :  { %v4179_v50 = vadd.f32 %v4175_v34, %v10019_v62  ;;  %v4177_v2 = vmax.f32 %v3627_v21, %v3631_v57  ;;  %v8175_v21 = vld [vmem:[%s10749_s3 + $0x2ac] ss:$16 sps:$4 sm:$0xff]   ;;  %v8184_v57 = vld [vmem:[%s10749_s3 + $0x2e4] ss:$16 sps:$4 sm:$0xff]  }
 0x230   :  { %v4180_v3 = vadd.f32 %v4176_v61, %v10015_v58  ;;  %v4182_v11 = vmax.f32 %v4178_v59, 0.0 }
 0x231   :  { %v4181_v5 = vadd.f32 %v4177_v2, %v10019_v62  ;;  %4578 = vmatpush1.bf16.msra.mxu0 %v8152_v39  ;;  %4621 = vmatpush1.bf16.msra.mxu1 %v8155_v56  ;;  %v3400_v6 = vpop.f32.mrb[16].mxu0  ;;  %v3513_v7 = vpop.f32.mrb[16].mxu1  ;;  %v4183_v18 = vmax.f32 %v4179_v50, 0.0  ;;  %v8187_v39 = vld [vmem:[%s10749_s3 + $0x2ec] ss:$16 sps:$4 sm:$0xff]  }
 0x232   :  { %v4184_v12 = vmax.f32 %v4180_v3, 0.0  ;;  %v3632_v0 = vmax.f32 %v3400_v6, %v3513_v7  ;;  %v3402_v15 = vpop.f32.mrb[17].mxu0  ;;  %v3515_v16 = vpop.f32.mrb[17].mxu1  ;;  %4579 = vmatprep.subr.bf16.mxu0 %v8160_v42  ;;  %4622 = vmatprep.subr.bf16.mxu1 %v8163_v1  ;;  %v8182_v42 = vld [vmem:[%s10749_s3 + $0x2e0] ss:$16 sps:$4 sm:$0xff]  }
 0x233   :  { %v4185_v8 = vmax.f32 %v4181_v5, 0.0  ;;  %v3633_v20 = vmax.f32 %v3402_v15, %v3515_v16  ;;  %v3404_v22 = vpop.f32.mrb[18].mxu0  ;;  %v3517_v23 = vpop.f32.mrb[18].mxu1  ;;  %v8185_v3 = vld [vmem:[%s10749_s3 + $0x2e8] ss:$16 sps:$4 sm:$0xff]  }
 0x234   :  { %v10077_v25 = vpack.c.bf16 %v4184_v12, %v4182_v11  ;;  %v3634_v26 = vmax.f32 %v3404_v22, %v3517_v23  ;;  %v3406_v27 = vpop.f32.mrb[19].mxu0  ;;  %v3519_v13 = vpop.f32.mrb[19].mxu1  ;;  %v8193_v11 = vld [vmem:[%s10749_s3 + $0x30c] ss:$16 sps:$4 sm:$0xff]  }
 0x235   :  { %v3635_v28 = vmax.f32 %v3406_v27, %v3519_v13  ;;  %4580 = vmatpush1.bf16.msra.mxu0 %v8158_v53  ;;  %4623 = vmatpush1.bf16.msra.mxu1 %v8161_v10  ;;  %v4187_v45 = vpack.c.bf16 %v4185_v8, %v4183_v18  ;;  %v8190_v53 = vld [vmem:[%s10749_s3 + $0x304] ss:$16 sps:$4 sm:$0xff]   ;;  %v8191_v27 = vld [vmem:[%s10749_s3 + $0x308] ss:$16 sps:$4 sm:$0xff]  }
 0x236   :  { %4581 = vmatprep.subr.bf16.mxu0 %v8166_v60  ;;  %4624 = vmatprep.subr.bf16.mxu1 %v8169_v17 }
 0x237   :  { %4605 = vmatprep.mubr.bf16.mxu0 %v4187_v45  ;;  %4648 = vmatprep.mubr.bf16.mxu1 %v4187_v45 }
 0x239   :  { %4582 = vmatpush1.bf16.msra.mxu0 %v8164_v30  ;;  %4625 = vmatpush1.bf16.msra.mxu1 %v8167_v31  ;;  %v3410_v33 = vpop.f32.mrb[20].mxu0  ;;  %v3523_v63 = vpop.f32.mrb[20].mxu1  ;;  %v8199_v30 = vld [vmem:[%s10749_s3 + $0x32c] ss:$16 sps:$4 sm:$0xff]  }
 0x23a   :  { %v3636_v37 = vmax.f32 %v3410_v33, %v3523_v63  ;;  %v3412_v14 = vpop.f32.mrb[21].mxu0  ;;  %v3525_v38 = vpop.f32.mrb[21].mxu1  ;;  %4583 = vmatprep.subr.bf16.mxu0 %v8172_v32  ;;  %4626 = vmatprep.subr.bf16.mxu1 %v8175_v21  ;;  %v8194_v32 = vld [vmem:[%s10749_s3 + $0x320] ss:$16 sps:$4 sm:$0xff]   ;;  %v8197_v21 = vld [vmem:[%s10749_s3 + $0x328] ss:$16 sps:$4 sm:$0xff]  }
 0x23b   :  { %v3637_v19 = vmax.f32 %v3412_v14, %v3525_v38  ;;  %v3414_v43 = vpop.f32.mrb[22].mxu0  ;;  %v3527_v36 = vpop.f32.mrb[22].mxu1 }
 0x23c   :  { %v4667_v44 = vmax.f32 %v3632_v0, %v3636_v37  ;;  %v3638_v41 = vmax.f32 %v3414_v43, %v3527_v36  ;;  %v3416_v47 = vpop.f32.mrb[23].mxu0  ;;  %v3529_v48 = vpop.f32.mrb[23].mxu1  ;;  %v8205_v37 = vld [vmem:[%s10749_s3 + $0x34c] ss:$16 sps:$4 sm:$0xff]  }
 0x23d   :  { %v4668_v49 = vmax.f32 %v3633_v20, %v3637_v19  ;;  %v3639_v29 = vmax.f32 %v3416_v47, %v3529_v48  ;;  %4584 = vmatpush1.bf16.msra.mxu0 %v8170_v9  ;;  %4627 = vmatpush1.bf16.msra.mxu1 %v8173_v35  ;;  %v8202_v35 = vld [vmem:[%s10749_s3 + $0x344] ss:$16 sps:$4 sm:$0xff]   ;;  %v8200_v47 = vld [vmem:[%s10749_s3 + $0x340] ss:$16 sps:$4 sm:$0xff]   ;;  %v8203_v48 = vld [vmem:[%s10749_s3 + $0x348] ss:$16 sps:$4 sm:$0xff]  }
 0x23e   :  { %v4671_v51 = vadd.f32 %v4667_v44, %v10015_v58  ;;  %v4669_v34 = vmax.f32 %v3634_v26, %v3638_v41  ;;  %4585 = vmatprep.subr.bf16.mxu0 %v8178_v40  ;;  %4628 = vmatprep.subr.bf16.mxu1 %v8181_v4  ;;  %v8188_v26 = vld [vmem:[%s10749_s3 + $0x300] ss:$16 sps:$4 sm:$0xff]  }
 0x23f   :  { %v4672_v56 = vadd.f32 %v4668_v49, %v10019_v62  ;;  %v4670_v59 = vmax.f32 %v3635_v28, %v3639_v29  ;;  %v8196_v28 = vld [vmem:[%s10749_s3 + $0x324] ss:$16 sps:$4 sm:$0xff]  }
 0x240   :  { %v4673_v61 = vadd.f32 %v4669_v34, %v10015_v58  ;;  %v4675_v5 = vmax.f32 %v4671_v51, 0.0 }
 0x241   :  { %v4674_v1 = vadd.f32 %v4670_v59, %v10019_v62  ;;  %4586 = vmatpush1.bf16.msra.mxu0 %v8176_v24  ;;  %4629 = vmatpush1.bf16.msra.mxu1 %v8179_v52  ;;  %v3420_v50 = vpop.f32.mrb[24].mxu0  ;;  %v3533_v2 = vpop.f32.mrb[24].mxu1  ;;  %v4676_v12 = vmax.f32 %v4672_v56, 0.0  ;;  %v8208_v24 = vld [vmem:[%s10749_s3 + $0x364] ss:$16 sps:$4 sm:$0xff]  }
 0x242   :  { %v4677_v6 = vmax.f32 %v4673_v61, 0.0  ;;  %v3640_v7 = vmax.f32 %v3420_v50, %v3533_v2  ;;  %v3422_v10 = vpop.f32.mrb[25].mxu0  ;;  %v3535_v60 = vpop.f32.mrb[25].mxu1  ;;  %4587 = vmatprep.subr.bf16.mxu0 %v8184_v57  ;;  %4630 = vmatprep.subr.bf16.mxu1 %v8187_v39  ;;  %v8211_v52 = vld [vmem:[%s10749_s3 + $0x36c] ss:$16 sps:$4 sm:$0xff]  }
 0x243   :  { %v4678_v0 = vmax.f32 %v4674_v1, 0.0  ;;  %v3641_v15 = vmax.f32 %v3422_v10, %v3535_v60  ;;  %v3424_v16 = vpop.f32.mrb[26].mxu0  ;;  %v3537_v17 = vpop.f32.mrb[26].mxu1  ;;  %v8206_v56 = vld [vmem:[%s10749_s3 + $0x360] ss:$16 sps:$4 sm:$0xff]  }
 0x244   :  { %v10131_v18 = vpack.c.bf16 %v4677_v6, %v4675_v5  ;;  %v3642_v8 = vmax.f32 %v3424_v16, %v3537_v17  ;;  %v3426_v20 = vpop.f32.mrb[27].mxu0  ;;  %v3539_v22 = vpop.f32.mrb[27].mxu1  ;;  %v8209_v59 = vld [vmem:[%s10749_s3 + $0x368] ss:$16 sps:$4 sm:$0xff]   ;;  %v8220_v6 = vld [vmem:[%s10749_s3 + $0x3a4] ss:$16 sps:$4 sm:$0xff]  }
 0x245   :  { %v3643_v23 = vmax.f32 %v3426_v20, %v3539_v22  ;;  %4588 = vmatpush1.bf16.msra.mxu0 %v8182_v42  ;;  %4631 = vmatpush1.bf16.msra.mxu1 %v8185_v3  ;;  %v10139_v13 = vpack.c.bf16 %v4678_v0, %v4676_v12  ;;  %v8212_v3 = vld [vmem:[%s10749_s3 + $0x380] ss:$16 sps:$4 sm:$0xff]   ;;  %v8221_v60 = vld [vmem:[%s10749_s3 + $0x3a8] ss:$16 sps:$4 sm:$0xff]   ;;  %v8229_v12 = vld [vmem:[%s10749_s3 + $0x3cc] ss:$16 sps:$4 sm:$0xff]  }
 0x246   :  { %4589 = vmatprep.subr.bf16.mxu0 %v8190_v53  ;;  %4632 = vmatprep.subr.bf16.mxu1 %v8193_v11  ;;  %v8215_v53 = vld [vmem:[%s10749_s3 + $0x388] ss:$16 sps:$4 sm:$0xff]   ;;  %v8218_v10 = vld [vmem:[%s10749_s3 + $0x3a0] ss:$16 sps:$4 sm:$0xff]   ;;  %v8226_v11 = vld [vmem:[%s10749_s3 + $0x3c4] ss:$16 sps:$4 sm:$0xff]  }
 0x247   :  { %v8224_v0 = vld [vmem:[%s10749_s3 + $0x3c0] ss:$16 sps:$4 sm:$0xff]   ;;  %v8232_v16 = vld [vmem:[%s10749_s3 + $0x3e4] ss:$16 sps:$4 sm:$0xff]   ;;  %v8235_v17 = vld [vmem:[%s10749_s3 + $0x3ec] ss:$16 sps:$4 sm:$0xff]  }
 0x248   :  { %v8233_v20 = vld [vmem:[%s10749_s3 + $0x3e8] ss:$16 sps:$4 sm:$0xff]   ;;  %v8238_v22 = vld [vmem:[%s10749_s3 + $0x404] ss:$16 sps:$4 sm:$0xff]  }
 0x249   :  { %4590 = vmatpush1.bf16.msra.mxu0 %v8188_v26  ;;  %4633 = vmatpush1.bf16.msra.mxu1 %v8191_v27  ;;  %v3430_v45 = vpop.f32.mrb[28].mxu0  ;;  %v3543_v31 = vpop.f32.mrb[28].mxu1  ;;  %v8236_v26 = vld [vmem:[%s10749_s3 + $0x400] ss:$16 sps:$4 sm:$0xff]   ;;  %v8239_v27 = vld [vmem:[%s10749_s3 + $0x408] ss:$16 sps:$4 sm:$0xff]  }
 0x24a   :  { %v3644_v33 = vmax.f32 %v3430_v45, %v3543_v31  ;;  %v3432_v63 = vpop.f32.mrb[29].mxu0  ;;  %v3545_v9 = vpop.f32.mrb[29].mxu1  ;;  %4591 = vmatprep.subr.bf16.mxu0 %v8196_v28  ;;  %4634 = vmatprep.subr.bf16.mxu1 %v8199_v30  ;;  %v8244_v28 = vld [vmem:[%s10749_s3 + $0x424] ss:$16 sps:$4 sm:$0xff]   ;;  %v8247_v30 = vld [vmem:[%s10749_s3 + $0x42c] ss:$16 sps:$4 sm:$0xff]  }
 0x24b   :  { %v3645_v14 = vmax.f32 %v3432_v63, %v3545_v9  ;;  %v3434_v38 = vpop.f32.mrb[30].mxu0  ;;  %v3547_v40 = vpop.f32.mrb[30].mxu1  ;;  %v8242_v45 = vld [vmem:[%s10749_s3 + $0x420] ss:$16 sps:$4 sm:$0xff]   ;;  %v8245_v31 = vld [vmem:[%s10749_s3 + $0x428] ss:$16 sps:$4 sm:$0xff]  }
 0x24c   :  { %v5160_v4 = vmax.f32 %v3640_v7, %v3644_v33  ;;  %v3646_v19 = vmax.f32 %v3434_v38, %v3547_v40  ;;  %v3436_v43 = vpop.f32.mrb[31].mxu0  ;;  %v3549_v36 = vpop.f32.mrb[31].mxu1  ;;  %v8223_v7 = vld [vmem:[%s10749_s3 + $0x3ac] ss:$16 sps:$4 sm:$0xff]   ;;  %v8251_v33 = vld [vmem:[%s10749_s3 + $0x448] ss:$16 sps:$4 sm:$0xff]  }
 0x24d   :  { %v5161_v44 = vmax.f32 %v3641_v15, %v3645_v14  ;;  %v3647_v41 = vmax.f32 %v3436_v43, %v3549_v36  ;;  %4592 = vmatpush1.bf16.msra.mxu0 %v8194_v32  ;;  %4635 = vmatpush1.bf16.msra.mxu1 %v8197_v21  ;;  %v8227_v15 = vld [vmem:[%s10749_s3 + $0x3c8] ss:$16 sps:$4 sm:$0xff]   ;;  %v8250_v32 = vld [vmem:[%s10749_s3 + $0x444] ss:$16 sps:$4 sm:$0xff]   ;;  %v8248_v21 = vld [vmem:[%s10749_s3 + $0x440] ss:$16 sps:$4 sm:$0xff]  }
 0x24e   :  { %v5164_v49 = vadd.f32 %v5160_v4, %v10015_v58  ;;  %v5162_v29 = vmax.f32 %v3642_v8, %v3646_v19  ;;  %4593 = vmatprep.subr.bf16.mxu0 %v8202_v35  ;;  %4636 = vmatprep.subr.bf16.mxu1 %v8205_v37  ;;  %v8230_v8 = vld [vmem:[%s10749_s3 + $0x3e0] ss:$16 sps:$4 sm:$0xff]   ;;  %v8259_v63 = vld [vmem:[%s10749_s3 + $0x46c] ss:$16 sps:$4 sm:$0xff]   ;;  %v8257_v35 = vld [vmem:[%s10749_s3 + $0x468] ss:$16 sps:$4 sm:$0xff]  }
 0x24f   :  { %v5165_v51 = vadd.f32 %v5161_v44, %v10019_v62  ;;  %v5163_v34 = vmax.f32 %v3643_v23, %v3647_v41  ;;  %v8241_v23 = vld [vmem:[%s10749_s3 + $0x40c] ss:$16 sps:$4 sm:$0xff]   ;;  %v8254_v9 = vld [vmem:[%s10749_s3 + $0x460] ss:$16 sps:$4 sm:$0xff]   ;;  %v8262_v37 = vld [vmem:[%s10749_s3 + $0x484] ss:$16 sps:$4 sm:$0xff]  }
 0x250   :  { %v5166_v57 = vadd.f32 %v5162_v29, %v10015_v58  ;;  %v5168_v61 = vmax.f32 %v5164_v49, 0.0  ;;  %v8214_v58 = vld [vmem:[%s10749_s3 + $0x384] ss:$16 sps:$4 sm:$0xff]   ;;  %v8265_v14 = vld [vmem:[%s10749_s3 + $0x48c] ss:$16 sps:$4 sm:$0xff]  }
 0x251   :  { %v5167_v39 = vadd.f32 %v5163_v34, %v10019_v62  ;;  %4594 = vmatpush1.bf16.msra.mxu0 %v8200_v47  ;;  %4637 = vmatpush1.bf16.msra.mxu1 %v8203_v48  ;;  %v8217_v62 = vld [vmem:[%s10749_s3 + $0x38c] ss:$16 sps:$4 sm:$0xff]   ;;  %v5169_v1 = vmax.f32 %v5165_v51, 0.0  ;;  %v8260_v38 = vld [vmem:[%s10749_s3 + $0x480] ss:$16 sps:$4 sm:$0xff]  }
 0x252   :  { %v5170_v42 = vmax.f32 %v5166_v57, 0.0  ;;  %4595 = vmatprep.subr.bf16.mxu0 %v8208_v24  ;;  %4638 = vmatprep.subr.bf16.mxu1 %v8211_v52  ;;  %v8263_v40 = vld [vmem:[%s10749_s3 + $0x488] ss:$16 sps:$4 sm:$0xff]   ;;  %v8268_v4 = vld [vmem:[%s10749_s3 + $0x4a4] ss:$16 sps:$4 sm:$0xff]  }
 0x253   :  { %v5171_v50 = vmax.f32 %v5167_v39, 0.0  ;;  %v8271_v19 = vld [vmem:[%s10749_s3 + $0x4ac] ss:$16 sps:$4 sm:$0xff]   ;;  %v8266_v43 = vld [vmem:[%s10749_s3 + $0x4a0] ss:$16 sps:$4 sm:$0xff]  }
 0x254   :  { %v10187_v2 = vpack.c.bf16 %v5170_v42, %v5168_v61  ;;  %v8269_v36 = vld [vmem:[%s10749_s3 + $0x4a8] ss:$16 sps:$4 sm:$0xff]   ;;  %v8274_v44 = vld [vmem:[%s10749_s3 + $0x4c4] ss:$16 sps:$4 sm:$0xff]   ;;  %v8277_v41 = vld [vmem:[%s10749_s3 + $0x4cc] ss:$16 sps:$4 sm:$0xff]  }
 0x255   :  { %4596 = vmatpush1.bf16.msra.mxu0 %v8206_v56  ;;  %4639 = vmatpush1.bf16.msra.mxu1 %v8209_v59  ;;  %v10195_v5 = vpack.c.bf16 %v5171_v50, %v5169_v1  ;;  %v8272_v47 = vld [vmem:[%s10749_s3 + $0x4c0] ss:$16 sps:$4 sm:$0xff]   ;;  %v8275_v48 = vld [vmem:[%s10749_s3 + $0x4c8] ss:$16 sps:$4 sm:$0xff]   ;;  %v8280_v49 = vld [vmem:[%s10749_s3 + $0x4e4] ss:$16 sps:$4 sm:$0xff]  }
 0x256   :  { %4597 = vmatprep.subr.bf16.mxu0 %v8214_v58  ;;  %4640 = vmatprep.subr.bf16.mxu1 %v8217_v62  ;;  %v8278_v29 = vld [vmem:[%s10749_s3 + $0x4e0] ss:$16 sps:$4 sm:$0xff]   ;;  %v8283_v24 = vld [vmem:[%s10749_s3 + $0x4ec] ss:$16 sps:$4 sm:$0xff]   ;;  %v8281_v52 = vld [vmem:[%s10749_s3 + $0x4e8] ss:$16 sps:$4 sm:$0xff]  }
 0x257   :  { %v8286_v51 = vld [vmem:[%s10749_s3 + $0x504] ss:$16 sps:$4 sm:$0xff]   ;;  %v8289_v34 = vld [vmem:[%s10749_s3 + $0x50c] ss:$16 sps:$4 sm:$0xff]   ;;  %v8284_v57 = vld [vmem:[%s10749_s3 + $0x500] ss:$16 sps:$4 sm:$0xff]  }
 0x258   :  { %v8287_v39 = vld [vmem:[%s10749_s3 + $0x508] ss:$16 sps:$4 sm:$0xff]   ;;  %v8292_v56 = vld [vmem:[%s10749_s3 + $0x524] ss:$16 sps:$4 sm:$0xff]   ;;  %v8295_v59 = vld [vmem:[%s10749_s3 + $0x52c] ss:$16 sps:$4 sm:$0xff]  }
 0x259   :  { %4598 = vmatpush1.bf16.msra.mxu0 %v8212_v3  ;;  %4641 = vmatpush1.bf16.msra.mxu1 %v8215_v53  ;;  %v8290_v61 = vld [vmem:[%s10749_s3 + $0x520] ss:$16 sps:$4 sm:$0xff]   ;;  %v8293_v42 = vld [vmem:[%s10749_s3 + $0x528] ss:$16 sps:$4 sm:$0xff]   ;;  %v8298_v58 = vld [vmem:[%s10749_s3 + $0x544] ss:$16 sps:$4 sm:$0xff]  }
 0x25a   :  { %4599 = vmatprep.subr.bf16.mxu0 %v8220_v6  ;;  %4642 = vmatprep.subr.bf16.mxu1 %v8223_v7  ;;  %v8301_v62 = vld [vmem:[%s10749_s3 + $0x54c] ss:$16 sps:$4 sm:$0xff]   ;;  %v8296_v1 = vld [vmem:[%s10749_s3 + $0x540] ss:$16 sps:$4 sm:$0xff]   ;;  %v8299_v50 = vld [vmem:[%s10749_s3 + $0x548] ss:$16 sps:$4 sm:$0xff]  }
 0x25b   :  { %v8304_v3 = vld [vmem:[%s10749_s3 + $0x564] ss:$16 sps:$4 sm:$0xff]   ;;  %v8307_v53 = vld [vmem:[%s10749_s3 + $0x56c] ss:$16 sps:$4 sm:$0xff]   ;;  %v8302_v6 = vld [vmem:[%s10749_s3 + $0x560] ss:$16 sps:$4 sm:$0xff]  }
 0x25c   :  { %v8305_v7 = vld [vmem:[%s10749_s3 + $0x568] ss:$16 sps:$4 sm:$0xff]  }
 0x25d   :  { %4600 = vmatpush1.bf16.msra.mxu0 %v8218_v10  ;;  %4643 = vmatpush1.bf16.msra.mxu1 %v8221_v60  ;;  %v8310_v10 = vld [vmem:[%s10749_s3 + $0x584] ss:$16 sps:$4 sm:$0xff]   ;;  %v8313_v60 = vld [vmem:[%s10749_s3 + $0x58c] ss:$16 sps:$4 sm:$0xff]  }
 0x25e   :  { %4601 = vmatprep.subr.bf16.mxu0 %v8226_v11  ;;  %4644 = vmatprep.subr.bf16.mxu1 %v8229_v12  ;;  %v8308_v11 = vld [vmem:[%s10749_s3 + $0x580] ss:$16 sps:$4 sm:$0xff]   ;;  %v8311_v12 = vld [vmem:[%s10749_s3 + $0x588] ss:$16 sps:$4 sm:$0xff]  }
 0x261   :  { %4602 = vmatpush1.bf16.msra.mxu0 %v8224_v0  ;;  %4645 = vmatpush1.bf16.msra.mxu1 %v8227_v15  ;;  %v8316_v0 = vld [vmem:[%s10749_s3 + $0x5a4] ss:$16 sps:$4 sm:$0xff]   ;;  %v8319_v15 = vld [vmem:[%s10749_s3 + $0x5ac] ss:$16 sps:$4 sm:$0xff]  }
 0x262   :  { %4603 = vmatprep.subr.bf16.mxu0 %v8232_v16  ;;  %4646 = vmatprep.subr.bf16.mxu1 %v8235_v17  ;;  %v8314_v16 = vld [vmem:[%s10749_s3 + $0x5a0] ss:$16 sps:$4 sm:$0xff]   ;;  %v8317_v17 = vld [vmem:[%s10749_s3 + $0x5a8] ss:$16 sps:$4 sm:$0xff]  }
 0x265   :  { %4604 = vmatpush1.bf16.msra.mxu0 %v8230_v8  ;;  %4647 = vmatpush1.bf16.msra.mxu1 %v8233_v20  ;;  %v8322_v8 = vld [vmem:[%s10749_s3 + $0x5c4] ss:$16 sps:$4 sm:$0xff]   ;;  %v8325_v20 = vld [vmem:[%s10749_s3 + $0x5cc] ss:$16 sps:$4 sm:$0xff]  }
 0x266   :  { %5066 = vmatprep.subr.bf16.mxu0 %v8238_v22  ;;  %5109 = vmatprep.subr.bf16.mxu1 %v8241_v23  ;;  %v8320_v22 = vld [vmem:[%s10749_s3 + $0x5c0] ss:$16 sps:$4 sm:$0xff]   ;;  %v8323_v23 = vld [vmem:[%s10749_s3 + $0x5c8] ss:$16 sps:$4 sm:$0xff]  }
 0x268   :  { %4606 = vmatmul.mubr.bf16.vlgmr.msra.gmra.mrb[32].mxu0 %v10077_v25  ;;  %4649 = vmatmul.mubr.bf16.vlgmr.msra.gmra.mrb[32].mxu1 %v10077_v25  ;;  %v8253_v25 = vld [vmem:[%s10749_s3 + $0x44c] ss:$16 sps:$4 sm:$0xff]  }
 0x269   :  { %5067 = vmatpush1.bf16.msra.mxu0 %v8236_v26  ;;  %5098 = vmatprep.mubr.bf16.mxu0 %v10139_v13  ;;  %v8328_v26 = vld [vmem:[%s10749_s3 + $0x5e4] ss:$16 sps:$4 sm:$0xff]  }
 0x26a   :  { %5110 = vmatpush1.bf16.msra.mxu1 %v8239_v27  ;;  %5141 = vmatprep.mubr.bf16.mxu1 %v10139_v13  ;;  %v8256_v13 = vld [vmem:[%s10749_s3 + $0x464] ss:$16 sps:$4 sm:$0xff]   ;;  %v8331_v27 = vld [vmem:[%s10749_s3 + $0x5ec] ss:$16 sps:$4 sm:$0xff]  }
 0x26b   :  { %5068 = vmatprep.subr.bf16.mxu0 %v8244_v28  ;;  %5111 = vmatprep.subr.bf16.mxu1 %v8247_v30  ;;  %v8326_v28 = vld [vmem:[%s10749_s3 + $0x5e0] ss:$16 sps:$4 sm:$0xff]   ;;  %v8329_v30 = vld [vmem:[%s10749_s3 + $0x5e8] ss:$16 sps:$4 sm:$0xff]  }
 0x26d   :  { %5069 = vmatpush1.bf16.msra.mxu0 %v8242_v45  ;;  %v8334_v45 = vld [vmem:[%s10749_s3 + $0x604] ss:$16 sps:$4 sm:$0xff]  }
 0x26e   :  { %5112 = vmatpush1.bf16.msra.mxu1 %v8245_v31  ;;  %5070 = vmatprep.subr.bf16.mxu0 %v8250_v32  ;;  %v8337_v31 = vld [vmem:[%s10749_s3 + $0x60c] ss:$16 sps:$4 sm:$0xff]   ;;  %v8332_v32 = vld [vmem:[%s10749_s3 + $0x600] ss:$16 sps:$4 sm:$0xff]  }
 0x26f   :  { %5113 = vmatprep.subr.bf16.mxu1 %v8253_v25  ;;  %v8335_v25 = vld [vmem:[%s10749_s3 + $0x608] ss:$16 sps:$4 sm:$0xff]  }
 0x271   :  { %5071 = vmatpush1.bf16.msra.mxu0 %v8248_v21  ;;  %v8340_v21 = vld [vmem:[%s10749_s3 + $0x624] ss:$16 sps:$4 sm:$0xff]  }
 0x272   :  { %5114 = vmatpush1.bf16.msra.mxu1 %v8251_v33  ;;  %5072 = vmatprep.subr.bf16.mxu0 %v8256_v13  ;;  %v8343_v33 = vld [vmem:[%s10749_s3 + $0x62c] ss:$16 sps:$4 sm:$0xff]   ;;  %v8338_v13 = vld [vmem:[%s10749_s3 + $0x620] ss:$16 sps:$4 sm:$0xff]  }
 0x273   :  { %5115 = vmatprep.subr.bf16.mxu1 %v8259_v63  ;;  %v8341_v63 = vld [vmem:[%s10749_s3 + $0x628] ss:$16 sps:$4 sm:$0xff]  }
 0x275   :  { %5073 = vmatpush1.bf16.msra.mxu0 %v8254_v9  ;;  %v8346_v9 = vld [vmem:[%s10749_s3 + $0x644] ss:$16 sps:$4 sm:$0xff]  }
 0x276   :  { %5116 = vmatpush1.bf16.msra.mxu1 %v8257_v35  ;;  %5074 = vmatprep.subr.bf16.mxu0 %v8262_v37  ;;  %v8344_v35 = vld [vmem:[%s10749_s3 + $0x640] ss:$16 sps:$4 sm:$0xff]   ;;  %v8347_v37 = vld [vmem:[%s10749_s3 + $0x648] ss:$16 sps:$4 sm:$0xff]  }
 0x277   :  { %5117 = vmatprep.subr.bf16.mxu1 %v8265_v14  ;;  %v8355_v14 = vld [vmem:[%s10749_s3 + $0x66c] ss:$16 sps:$4 sm:$0xff]  }
 0x279   :  { %5075 = vmatpush1.bf16.msra.mxu0 %v8260_v38  ;;  %v8350_v38 = vld [vmem:[%s10749_s3 + $0x660] ss:$16 sps:$4 sm:$0xff]  }
 0x27a   :  { %5118 = vmatpush1.bf16.msra.mxu1 %v8263_v40  ;;  %5076 = vmatprep.subr.bf16.mxu0 %v8268_v4  ;;  %v8353_v40 = vld [vmem:[%s10749_s3 + $0x668] ss:$16 sps:$4 sm:$0xff]   ;;  %v8358_v4 = vld [vmem:[%s10749_s3 + $0x684] ss:$16 sps:$4 sm:$0xff]  }
 0x27b   :  { %5119 = vmatprep.subr.bf16.mxu1 %v8271_v19  ;;  %v8361_v19 = vld [vmem:[%s10749_s3 + $0x68c] ss:$16 sps:$4 sm:$0xff]  }
 0x27d   :  { %5077 = vmatpush1.bf16.msra.mxu0 %v8266_v43  ;;  %v8356_v43 = vld [vmem:[%s10749_s3 + $0x680] ss:$16 sps:$4 sm:$0xff]  }
 0x27e   :  { %5120 = vmatpush1.bf16.msra.mxu1 %v8269_v36  ;;  %5078 = vmatprep.subr.bf16.mxu0 %v8274_v44  ;;  %v8359_v36 = vld [vmem:[%s10749_s3 + $0x688] ss:$16 sps:$4 sm:$0xff]   ;;  %v8364_v44 = vld [vmem:[%s10749_s3 + $0x6a4] ss:$16 sps:$4 sm:$0xff]  }
 0x27f   :  { %5121 = vmatprep.subr.bf16.mxu1 %v8277_v41  ;;  %v8367_v41 = vld [vmem:[%s10749_s3 + $0x6ac] ss:$16 sps:$4 sm:$0xff]  }
 0x281   :  { %5079 = vmatpush1.bf16.msra.mxu0 %v8272_v47  ;;  %v8362_v47 = vld [vmem:[%s10749_s3 + $0x6a0] ss:$16 sps:$4 sm:$0xff]  }
 0x282   :  { %5122 = vmatpush1.bf16.msra.mxu1 %v8275_v48  ;;  %5080 = vmatprep.subr.bf16.mxu0 %v8280_v49  ;;  %v8365_v48 = vld [vmem:[%s10749_s3 + $0x6a8] ss:$16 sps:$4 sm:$0xff]   ;;  %v8370_v49 = vld [vmem:[%s10749_s3 + $0x6c4] ss:$16 sps:$4 sm:$0xff]  }
 0x283   :  { %5123 = vmatprep.subr.bf16.mxu1 %v8283_v24  ;;  %v8368_v24 = vld [vmem:[%s10749_s3 + $0x6c0] ss:$16 sps:$4 sm:$0xff]  }
 0x285   :  { %5081 = vmatpush1.bf16.msra.mxu0 %v8278_v29  ;;  %v8373_v29 = vld [vmem:[%s10749_s3 + $0x6cc] ss:$16 sps:$4 sm:$0xff]  }
 0x286   :  { %5124 = vmatpush1.bf16.msra.mxu1 %v8281_v52  ;;  %5082 = vmatprep.subr.bf16.mxu0 %v8286_v51  ;;  %v8371_v52 = vld [vmem:[%s10749_s3 + $0x6c8] ss:$16 sps:$4 sm:$0xff]   ;;  %v8376_v51 = vld [vmem:[%s10749_s3 + $0x6e4] ss:$16 sps:$4 sm:$0xff]  }
 0x287   :  { %5125 = vmatprep.subr.bf16.mxu1 %v8289_v34  ;;  %v8379_v34 = vld [vmem:[%s10749_s3 + $0x6ec] ss:$16 sps:$4 sm:$0xff]  }
 0x289   :  { %5083 = vmatpush1.bf16.msra.mxu0 %v8284_v57  ;;  %v8374_v57 = vld [vmem:[%s10749_s3 + $0x6e0] ss:$16 sps:$4 sm:$0xff]  }
 0x28a   :  { %5126 = vmatpush1.bf16.msra.mxu1 %v8287_v39  ;;  %5084 = vmatprep.subr.bf16.mxu0 %v8292_v56  ;;  %v8377_v39 = vld [vmem:[%s10749_s3 + $0x6e8] ss:$16 sps:$4 sm:$0xff]   ;;  %v8382_v56 = vld [vmem:[%s10749_s3 + $0x704] ss:$16 sps:$4 sm:$0xff]  }
 0x28b   :  { %5127 = vmatprep.subr.bf16.mxu1 %v8295_v59  ;;  %v8385_v59 = vld [vmem:[%s10749_s3 + $0x70c] ss:$16 sps:$4 sm:$0xff]  }
 0x28d   :  { %5085 = vmatpush1.bf16.msra.mxu0 %v8290_v61  ;;  %v8380_v61 = vld [vmem:[%s10749_s3 + $0x700] ss:$16 sps:$4 sm:$0xff]  }
 0x28e   :  { %5128 = vmatpush1.bf16.msra.mxu1 %v8293_v42  ;;  %5086 = vmatprep.subr.bf16.mxu0 %v8298_v58  ;;  %v8383_v42 = vld [vmem:[%s10749_s3 + $0x708] ss:$16 sps:$4 sm:$0xff]   ;;  %v8388_v58 = vld [vmem:[%s10749_s3 + $0x724] ss:$16 sps:$4 sm:$0xff]  }
 0x28f   :  { %5129 = vmatprep.subr.bf16.mxu1 %v8301_v62  ;;  %v8391_v62 = vld [vmem:[%s10749_s3 + $0x72c] ss:$16 sps:$4 sm:$0xff]  }
 0x291   :  { %5087 = vmatpush1.bf16.msra.mxu0 %v8296_v1  ;;  %v8386_v1 = vld [vmem:[%s10749_s3 + $0x720] ss:$16 sps:$4 sm:$0xff]  }
 0x292   :  { %5130 = vmatpush1.bf16.msra.mxu1 %v8299_v50  ;;  %5088 = vmatprep.subr.bf16.mxu0 %v8304_v3  ;;  %v8389_v50 = vld [vmem:[%s10749_s3 + $0x728] ss:$16 sps:$4 sm:$0xff]   ;;  %v8394_v3 = vld [vmem:[%s10749_s3 + $0x744] ss:$16 sps:$4 sm:$0xff]  }
 0x293   :  { %5131 = vmatprep.subr.bf16.mxu1 %v8307_v53  ;;  %v8397_v53 = vld [vmem:[%s10749_s3 + $0x74c] ss:$16 sps:$4 sm:$0xff]  }
 0x295   :  { %5089 = vmatpush1.bf16.msra.mxu0 %v8302_v6  ;;  %v8392_v6 = vld [vmem:[%s10749_s3 + $0x740] ss:$16 sps:$4 sm:$0xff]  }
 0x296   :  { %5132 = vmatpush1.bf16.msra.mxu1 %v8305_v7  ;;  %5090 = vmatprep.subr.bf16.mxu0 %v8310_v10  ;;  %v8395_v7 = vld [vmem:[%s10749_s3 + $0x748] ss:$16 sps:$4 sm:$0xff]   ;;  %v8400_v10 = vld [vmem:[%s10749_s3 + $0x764] ss:$16 sps:$4 sm:$0xff]  }
 0x297   :  { %5133 = vmatprep.subr.bf16.mxu1 %v8313_v60  ;;  %v8403_v60 = vld [vmem:[%s10749_s3 + $0x76c] ss:$16 sps:$4 sm:$0xff]  }
 0x299   :  { %5091 = vmatpush1.bf16.msra.mxu0 %v8308_v11  ;;  %v8398_v11 = vld [vmem:[%s10749_s3 + $0x760] ss:$16 sps:$4 sm:$0xff]  }
 0x29a   :  { %5134 = vmatpush1.bf16.msra.mxu1 %v8311_v12  ;;  %5092 = vmatprep.subr.bf16.mxu0 %v8316_v0  ;;  %v8401_v12 = vld [vmem:[%s10749_s3 + $0x768] ss:$16 sps:$4 sm:$0xff]   ;;  %v8406_v0 = vld [vmem:[%s10749_s3 + $0x784] ss:$16 sps:$4 sm:$0xff]  }
 0x29b   :  { %5135 = vmatprep.subr.bf16.mxu1 %v8319_v15  ;;  %v8409_v15 = vld [vmem:[%s10749_s3 + $0x78c] ss:$16 sps:$4 sm:$0xff]  }
 0x29d   :  { %5093 = vmatpush1.bf16.msra.mxu0 %v8314_v16  ;;  %v8404_v16 = vld [vmem:[%s10749_s3 + $0x780] ss:$16 sps:$4 sm:$0xff]  }
 0x29e   :  { %5136 = vmatpush1.bf16.msra.mxu1 %v8317_v17  ;;  %5094 = vmatprep.subr.bf16.mxu0 %v8322_v8  ;;  %v8407_v17 = vld [vmem:[%s10749_s3 + $0x788] ss:$16 sps:$4 sm:$0xff]   ;;  %v8412_v8 = vld [vmem:[%s10749_s3 + $0x7a4] ss:$16 sps:$4 sm:$0xff]  }
 0x29f   :  { %5137 = vmatprep.subr.bf16.mxu1 %v8325_v20  ;;  %v8415_v20 = vld [vmem:[%s10749_s3 + $0x7ac] ss:$16 sps:$4 sm:$0xff]  }
 0x2a1   :  { %5095 = vmatpush1.bf16.msra.mxu0 %v8320_v22  ;;  %v8410_v22 = vld [vmem:[%s10749_s3 + $0x7a0] ss:$16 sps:$4 sm:$0xff]  }
 0x2a2   :  { %5138 = vmatpush1.bf16.msra.mxu1 %v8323_v23  ;;  %5096 = vmatprep.subr.bf16.mxu0 %v8328_v26  ;;  %v8413_v23 = vld [vmem:[%s10749_s3 + $0x7a8] ss:$16 sps:$4 sm:$0xff]   ;;  %v8418_v26 = vld [vmem:[%s10749_s3 + $0x7c4] ss:$16 sps:$4 sm:$0xff]  }
 0x2a3   :  { %5139 = vmatprep.subr.bf16.mxu1 %v8331_v27  ;;  %v8421_v27 = vld [vmem:[%s10749_s3 + $0x7cc] ss:$16 sps:$4 sm:$0xff]  }
 0x2a5   :  { %5097 = vmatpush1.bf16.msra.mxu0 %v8326_v28  ;;  %v8416_v28 = vld [vmem:[%s10749_s3 + $0x7c0] ss:$16 sps:$4 sm:$0xff]  }
 0x2a6   :  { %5140 = vmatpush1.bf16.msra.mxu1 %v8329_v30  ;;  %5559 = vmatprep.subr.bf16.mxu0 %v8334_v45  ;;  %v8419_v30 = vld [vmem:[%s10749_s3 + $0x7c8] ss:$16 sps:$4 sm:$0xff]   ;;  %v8424_v45 = vld [vmem:[%s10749_s3 + $0x7e4] ss:$16 sps:$4 sm:$0xff]  }
 0x2a7   :  { %5602 = vmatprep.subr.bf16.mxu1 %v8337_v31  ;;  %v8427_v31 = vld [vmem:[%s10749_s3 + $0x7ec] ss:$16 sps:$4 sm:$0xff]  }
 0x2a8   :  { %5099 = vmatmul.mubr.bf16.vlgmr.msra.gmra.mrb[32].mxu0 %v10131_v18 }
 0x2a9   :  { %5142 = vmatmul.mubr.bf16.vlgmr.msra.gmra.mrb[32].mxu1 %v10131_v18  ;;  %5560 = vmatpush1.bf16.msra.mxu0 %v8332_v32  ;;  %v8349_v18 = vld [vmem:[%s10749_s3 + $0x64c] ss:$16 sps:$4 sm:$0xff]   ;;  %v8422_v32 = vld [vmem:[%s10749_s3 + $0x7e0] ss:$16 sps:$4 sm:$0xff]  }
 0x2aa   :  { %5591 = vmatprep.mubr.bf16.mxu0 %v10195_v5  ;;  %5603 = vmatpush1.bf16.msra.mxu1 %v8335_v25  ;;  %v8425_v25 = vld [vmem:[%s10749_s3 + $0x7e8] ss:$16 sps:$4 sm:$0xff]  }
 0x2ab   :  { %5634 = vmatprep.mubr.bf16.mxu1 %v10195_v5  ;;  %5561 = vmatprep.subr.bf16.mxu0 %v8340_v21  ;;  %v8352_v5 = vld [vmem:[%s10749_s3 + $0x664] ss:$16 sps:$4 sm:$0xff]  }
 0x2ac   :  { %5604 = vmatprep.subr.bf16.mxu1 %v8343_v33  ;;  %v8428_v21 = vld [vmem:[%s10751_s5 + $0x40] sm:$0xff]  }
 0x2ad   :  { %5562 = vmatpush1.bf16.msra.mxu0 %v8338_v13  ;;  %v8429_v33 = vld [vmem:[%s10751_s5 + $0xc0] sm:$0xff]  }
 0x2ae   :  { %5605 = vmatpush1.bf16.msra.mxu1 %v8341_v63  ;;  %5563 = vmatprep.subr.bf16.mxu0 %v8346_v9  ;;  %v8430_v13 = vld [vmem:[%s10751_s5] sm:$0xff]   ;;  %v8432_v9 = vld [vmem:[%s10751_s5 + $0x48] sm:$0xff]  }
 0x2af   :  { %5606 = vmatprep.subr.bf16.mxu1 %v8349_v18  ;;  %v8431_v63 = vld [vmem:[%s10751_s5 + $0x80] sm:$0xff]   ;;  %v8433_v18 = vld [vmem:[%s10751_s5 + $0xc8] sm:$0xff]  }
 0x2b1   :  { %5564 = vmatpush1.bf16.msra.mxu0 %v8344_v35  ;;  %v8434_v35 = vld [vmem:[%s10751_s5 + $0x8] sm:$0xff]  }
 0x2b2   :  { %5607 = vmatpush1.bf16.msra.mxu1 %v8347_v37  ;;  %5565 = vmatprep.subr.bf16.mxu0 %v8352_v5  ;;  %v8435_v37 = vld [vmem:[%s10751_s5 + $0x88] sm:$0xff]   ;;  %v8436_v5 = vld [vmem:[%s10751_s5 + $0x50] sm:$0xff]  }
 0x2b3   :  { %5608 = vmatprep.subr.bf16.mxu1 %v8355_v14  ;;  %v8438_v14 = vld [vmem:[%s10751_s5 + $0x10] sm:$0xff]  }
 0x2b5   :  { %5566 = vmatpush1.bf16.msra.mxu0 %v8350_v38  ;;  %v8439_v38 = vld [vmem:[%s10751_s5 + $0x90] sm:$0xff]  }
 0x2b6   :  { %5609 = vmatpush1.bf16.msra.mxu1 %v8353_v40  ;;  %5567 = vmatprep.subr.bf16.mxu0 %v8358_v4  ;;  %v8440_v40 = vld [vmem:[%s10751_s5 + $0x58] sm:$0xff]  }
 0x2b7   :  { %5610 = vmatprep.subr.bf16.mxu1 %v8361_v19  ;;  %v8441_v4 = vld [vmem:[%s10751_s5 + $0xd8] sm:$0xff]  }
 0x2b8   :  { %v8442_v19 = vld [vmem:[%s10751_s5 + $0x18] sm:$0xff]  }
 0x2b9   :  { %5568 = vmatpush1.bf16.msra.mxu0 %v8356_v43  ;;  %v8443_v43 = vld [vmem:[%s10751_s5 + $0x98] sm:$0xff]  }
 0x2ba   :  { %5611 = vmatpush1.bf16.msra.mxu1 %v8359_v36  ;;  %5569 = vmatprep.subr.bf16.mxu0 %v8364_v44  ;;  %v8444_v36 = vld [vmem:[%s10751_s5 + $0x60] sm:$0xff]  }
 0x2bb   :  { %5612 = vmatprep.subr.bf16.mxu1 %v8367_v41  ;;  %v8445_v44 = vld [vmem:[%s10751_s5 + $0xe0] sm:$0xff]  }
 0x2bc   :  { %v8446_v41 = vld [vmem:[%s10751_s5 + $0x20] sm:$0xff]  }
 0x2bd   :  { %5570 = vmatpush1.bf16.msra.mxu0 %v8362_v47  ;;  %v8447_v47 = vld [vmem:[%s10751_s5 + $0xa0] sm:$0xff]  }
 0x2be   :  { %5613 = vmatpush1.bf16.msra.mxu1 %v8365_v48  ;;  %5571 = vmatprep.subr.bf16.mxu0 %v8370_v49  ;;  %v8448_v48 = vld [vmem:[%s10751_s5 + $0x68] sm:$0xff]  }
 0x2bf   :  { %5614 = vmatprep.subr.bf16.mxu1 %v8373_v29  ;;  %v8449_v49 = vld [vmem:[%s10751_s5 + $0xe8] sm:$0xff]  }
 0x2c0   :  { %v8450_v29 = vld [vmem:[%s10751_s5 + $0x28] sm:$0xff]  }
 0x2c1   :  { %5572 = vmatpush1.bf16.msra.mxu0 %v8368_v24  ;;  %v8451_v24 = vld [vmem:[%s10751_s5 + $0xa8] sm:$0xff]  }
 0x2c2   :  { %5615 = vmatpush1.bf16.msra.mxu1 %v8371_v52  ;;  %5573 = vmatprep.subr.bf16.mxu0 %v8376_v51  ;;  %v8452_v52 = vld [vmem:[%s10751_s5 + $0x70] sm:$0xff]  }
 0x2c3   :  { %5616 = vmatprep.subr.bf16.mxu1 %v8379_v34  ;;  %v8453_v51 = vld [vmem:[%s10751_s5 + $0xf0] sm:$0xff]  }
 0x2c4   :  { %v8454_v34 = vld [vmem:[%s10751_s5 + $0x30] sm:$0xff]  }
 0x2c5   :  { %5574 = vmatpush1.bf16.msra.mxu0 %v8374_v57  ;;  %v8455_v57 = vld [vmem:[%s10751_s5 + $0xb0] sm:$0xff]  }
 0x2c6   :  { %5617 = vmatpush1.bf16.msra.mxu1 %v8377_v39  ;;  %5575 = vmatprep.subr.bf16.mxu0 %v8382_v56  ;;  %v8456_v39 = vld [vmem:[%s10751_s5 + $0x78] sm:$0xff]  }
 0x2c7   :  { %5618 = vmatprep.subr.bf16.mxu1 %v8385_v59  ;;  %v8457_v56 = vld [vmem:[%s10751_s5 + $0xf8] sm:$0xff]  }
 0x2c8   :  { %v8458_v59 = vld [vmem:[%s10751_s5 + $0x38] sm:$0xff]  }
 0x2c9   :  { %5576 = vmatpush1.bf16.msra.mxu0 %v8380_v61  ;;  %v8459_v61 = vld [vmem:[%s10751_s5 + $0xb8] sm:$0xff]  }
 0x2ca   :  { %5619 = vmatpush1.bf16.msra.mxu1 %v8383_v42  ;;  %5577 = vmatprep.subr.bf16.mxu0 %v8388_v58  ;;  %v3649_v42 = vld [vmem:[%s10752_s4] sm:$0xf]  ;;  %v4156_v58 = vsub.s32 2, %v10006_v46 }
 0x2cb   :  { %5620 = vmatprep.subr.bf16.mxu1 %v8391_v62  ;;  %v4160_v62 = vsub.s32 3, %v10006_v46 }
 0x2cd   :  { %5578 = vmatpush1.bf16.msra.mxu0 %v8386_v1  ;;  %v4149_v1 = vrot.slane %v3649_v42, %v3657_v54 }
 0x2ce   :  { %5621 = vmatpush1.bf16.msra.mxu1 %v8389_v50  ;;  %5579 = vmatprep.subr.bf16.mxu0 %v8394_v3  ;;  %v4157_v50 = vrot.slane %v3649_v42, %v4156_v58  ;;  %v4153_v3 = vrot.slane %v3649_v42, %v3661_v55 }
 0x2cf   :  { %5622 = vmatprep.subr.bf16.mxu1 %v8397_v53  ;;  %v4161_v53 = vrot.slane %v3649_v42, %v4160_v62 }
 0x2d1   :  { %5580 = vmatpush1.bf16.msra.mxu0 %v8392_v6 }
 0x2d2   :  { %5623 = vmatpush1.bf16.msra.mxu1 %v8395_v7  ;;  %5581 = vmatprep.subr.bf16.mxu0 %v8400_v10 }
 0x2d3   :  { %5624 = vmatprep.subr.bf16.mxu1 %v8403_v60 }
 0x2d5   :  { %5582 = vmatpush1.bf16.msra.mxu0 %v8398_v11 }
 0x2d6   :  { %5625 = vmatpush1.bf16.msra.mxu1 %v8401_v12  ;;  %5583 = vmatprep.subr.bf16.mxu0 %v8406_v0 }
 0x2d7   :  { %5626 = vmatprep.subr.bf16.mxu1 %v8409_v15 }
 0x2d9   :  { %5584 = vmatpush1.bf16.msra.mxu0 %v8404_v16 }
 0x2da   :  { %5627 = vmatpush1.bf16.msra.mxu1 %v8407_v17  ;;  %5585 = vmatprep.subr.bf16.mxu0 %v8412_v8 }
 0x2db   :  { %5628 = vmatprep.subr.bf16.mxu1 %v8415_v20 }
 0x2dd   :  { %5586 = vmatpush1.bf16.msra.mxu0 %v8410_v22 }
 0x2de   :  { %5629 = vmatpush1.bf16.msra.mxu1 %v8413_v23  ;;  %5587 = vmatprep.subr.bf16.mxu0 %v8418_v26 }
 0x2df   :  { %5630 = vmatprep.subr.bf16.mxu1 %v8421_v27 }
 0x2e1   :  { %5588 = vmatpush1.bf16.msra.mxu0 %v8416_v28 }
 0x2e2   :  { %5631 = vmatpush1.bf16.msra.mxu1 %v8419_v30  ;;  %5589 = vmatprep.subr.bf16.mxu0 %v8424_v45 }
 0x2e3   :  { %5632 = vmatprep.subr.bf16.mxu1 %v8427_v31 }
 0x2e5   :  { %5590 = vmatpush1.bf16.msra.mxu0 %v8422_v32 }
 0x2e6   :  { %5633 = vmatpush1.bf16.msra.mxu1 %v8425_v25  ;;  %7208 = vmatprep.subr.bf16.mxu0 %v8428_v21 }
 0x2e7   :  { %7230 = vmatprep.subr.bf16.mxu1 %v8429_v33 }
 0x2e8   :  { %5592 = vmatmul.mubr.bf16.vlgmr.msra.gmra.mrb[32].mxu0 %v10187_v2 }
 0x2e9   :  { %5635 = vmatmul.mubr.bf16.vlgmr.msra.gmra.mrb[32].mxu1 %v10187_v2  ;;  %7209 = vmatpush3.bf16.msra.mxu0 %v8430_v13  ;;  %v8437_v2 = vld [vmem:[%s10751_s5 + $0xd0] sm:$0xff]  }
 0x2ea   :  { %7231 = vmatpush3.bf16.msra.mxu1 %v8431_v63  ;;  %7210 = vmatprep.subr.bf16.mxu0 %v8432_v9 }
 0x2eb   :  { %7232 = vmatprep.subr.bf16.mxu1 %v8433_v18  ;;  %v7175_v18 = vld [vmem:[%s10753_s6] ss:$0 sm:$0xff] }
 0x2ed   :  { %7211 = vmatpush3.bf16.msra.mxu0 %v8434_v35 }
 0x2ee   :  { %7233 = vmatpush3.bf16.msra.mxu1 %v8435_v37  ;;  %7212 = vmatprep.subr.bf16.mxu0 %v8436_v5 }
 0x2ef   :  { %7234 = vmatprep.subr.bf16.mxu1 %v8437_v2 }
 0x2f1   :  { %7213 = vmatpush3.bf16.msra.mxu0 %v8438_v14 }
 0x2f2   :  { %7235 = vmatpush3.bf16.msra.mxu1 %v8439_v38  ;;  %7214 = vmatprep.subr.bf16.mxu0 %v8440_v40 }
 0x2f3   :  { %7236 = vmatprep.subr.bf16.mxu1 %v8441_v4 }
 0x2f5   :  { %7215 = vmatpush3.bf16.msra.mxu0 %v8442_v19 }
 0x2f6   :  { %7237 = vmatpush3.bf16.msra.mxu1 %v8443_v43  ;;  %7216 = vmatprep.subr.bf16.mxu0 %v8444_v36 }
 0x2f7   :  { %7238 = vmatprep.subr.bf16.mxu1 %v8445_v44 }
 0x2f9   :  { %7217 = vmatpush3.bf16.msra.mxu0 %v8446_v41 }
 0x2fa   :  { %7239 = vmatpush3.bf16.msra.mxu1 %v8447_v47  ;;  %7218 = vmatprep.subr.bf16.mxu0 %v8448_v48 }
 0x2fb   :  { %7240 = vmatprep.subr.bf16.mxu1 %v8449_v49 }
 0x2fd   :  { %7219 = vmatpush3.bf16.msra.mxu0 %v8450_v29 }
 0x2fe   :  { %7241 = vmatpush3.bf16.msra.mxu1 %v8451_v24  ;;  %7220 = vmatprep.subr.bf16.mxu0 %v8452_v52 }
 0x2ff   :  { %7242 = vmatprep.subr.bf16.mxu1 %v8453_v51 }
 0x301   :  { %7221 = vmatpush3.bf16.msra.mxu0 %v8454_v34 }
 0x302   :  { %7243 = vmatpush3.bf16.msra.mxu1 %v8455_v57  ;;  %7222 = vmatprep.subr.bf16.mxu0 %v8456_v39 }
 0x303   :  { %7244 = vmatprep.subr.bf16.mxu1 %v8457_v56 }
 0x305   :  { %7223 = vmatpush3.bf16.msra.mxu0 %v8458_v59 }
 0x306   :  { %7245 = vmatpush3.bf16.msra.mxu1 %v8459_v61 }
 0x3bb   :  { %v5593_v6 = vpop.f32.mrb[32].mxu0 }
 0x3bc   :  { %v7252_v7 = vadd.f32 %v5593_v6, %v4149_v1  ;;  %v5636_v10 = vpop.f32.mrb[32].mxu1  ;;  %v5595_v60 = vpop.f32.mrb[33].mxu0 }
 0x3bd   :  { %v7256_v11 = vadd.f32 %v5636_v10, %v4157_v50  ;;  %v7253_v12 = vadd.f32 %v5595_v60, %v4153_v3  ;;  %v5638_v0 = vpop.f32.mrb[33].mxu1  ;;  %v5597_v15 = vpop.f32.mrb[34].mxu0 }
 0x3be   :  { %v7257_v16 = vadd.f32 %v5638_v0, %v4161_v53  ;;  %v7254_v17 = vadd.f32 %v5597_v15, %v4149_v1  ;;  %v5640_v8 = vpop.f32.mrb[34].mxu1  ;;  %v5599_v20 = vpop.f32.mrb[35].mxu0  ;;  %v5653_v26 = vmax.f32 %v7252_v7, 0.0 }
 0x3bf   :  { %v7258_v22 = vadd.f32 %v5640_v8, %v4157_v50  ;;  %v7255_v23 = vadd.f32 %v5599_v20, %v4153_v3  ;;  %v5642_v54 = vpop.f32.mrb[35].mxu1  ;;  %v5655_v55 = vmax.f32 %v7256_v11, 0.0  ;;  %v5654_v28 = vmax.f32 %v7253_v12, 0.0 }
 0x3c0   :  { %v5657_v27 = vmax.f32 %v7254_v17, 0.0  ;;  %v7259_v46 = vadd.f32 %v5642_v54, %v4161_v53  ;;  %v5656_v31 = vmax.f32 %v7257_v16, 0.0 }
 0x3c1   :  { %v5659_v30 = vmax.f32 %v7258_v22, 0.0  ;;  %v5658_v45 = vmax.f32 %v7255_v23, 0.0 }
 0x3c2   :  { %v5661_v32 = vpack.c.bf16 %v5657_v27, %v5653_v26  ;;  %v5660_v25 = vmax.f32 %v7259_v46, 0.0 }
 0x3c3   :  { %v5663_v21 = vpack.c.bf16 %v5659_v30, %v5655_v55  ;;  %v5662_v33 = vpack.c.bf16 %v5658_v45, %v5654_v28 }
 0x3c4   :  { %v5664_v13 = vpack.c.bf16 %v5660_v25, %v5656_v31 }
 0x3c5   :  { %5960 = vmatprep.mubr.bf16.mxu0 %v5662_v33 }
 0x3c6   :  { %6001 = vmatprep.mubr.bf16.mxu1 %v5664_v13  ;;  %5961 = vmatmul.mubr.bf16.vlgmr.msra.gmra.mrb[36].mxu0 %v5661_v32 }
 0x3c7   :  { %6002 = vmatmul.mubr.bf16.vlgmr.msra.gmra.mrb[36].mxu1 %v5663_v21 }
 0x499   :  { %v7224_v63 = vpop.f32.mrb[36].mxu0 }
 0x49a   :  { %v7246_v9 = vpop.f32.mrb[36].mxu1  ;;  %v7225_v35 = vpop.f32.mrb[37].mxu0 }
 0x49b   :  { %v7226_v37 = vadd.f32 %v7225_v35, %v7224_v63  ;;  %v7247_v5 = vpop.f32.mrb[37].mxu1  ;;  %v7227_v2 = vpop.f32.mrb[38].mxu0 }
 0x49c   :  { %v7248_v14 = vadd.f32 %v7247_v5, %v7246_v9  ;;  %v7249_v38 = vpop.f32.mrb[38].mxu1  ;;  %v7228_v40 = vpop.f32.mrb[39].mxu0 }
 0x49d   :  { %v5963_v4 = vadd.f32 %v7226_v37, %v7175_v18  ;;  %v7229_v19 = vadd.f32 %v7228_v40, %v7227_v2  ;;  %v7250_v43 = vpop.f32.mrb[39].mxu1 }
 0x49e   :  { %v7251_v36 = vadd.f32 %v7250_v43, %v7249_v38 }
 0x49f   :  { %v5966_v44 = vadd.f32 %v7229_v19, %v7175_v18  ;;  %v6004_v41 = vadd.f32 %v7248_v14, %v5963_v4 }
 0x4a1   :  { %v6011_v47 = vsel %vm6010_vm1, %v6004_v41, -inf  ;;  %v6007_v48 = vadd.f32 %v7251_v36, %v5966_v44 }
 0x4a2   :  { %6012 = vmax.xlane.f32.xlu0 %v6011_v47 }
 0x4a3   :  { %v6014_v49 = vsel %vm6010_vm1, %v6007_v48, -inf }
 0x4a6   :  { %6015 = vmax.xlane.f32.xlu0 %v6014_v49 }
 0x52f   :  { %v6013_v29 = vpop.xlane.xlu0 %6012 }
 0x530   :  { %v6017_v24 = vsub.f32 %v6004_v41, %v6013_v29 }
 0x532   :  { %v6019_v52 = vmul.f32 1.442695, %v6017_v24 }
 0x533   :  { %v6016_v51 = vpop.xlane.xlu0 %6015 }
 0x534   :  { %8460 = vpow2.f32 %v6019_v52  ;;  %v6018_v34 = vsub.f32 %v6007_v48, %v6016_v51 }
 0x536   :  { %v6021_v57 = vmul.f32 1.442695, %v6018_v34 }
 0x538   :  { %8462 = vpow2.f32 %v6021_v57 }
 0x53e   :  { %v8461_v39 = vpop.eup %8460 }
 0x53f   :  { %v6023_v56 = vsel %vm6010_vm1, %v8461_v39, 0.0 }
 0x540   :  { %6024 = vadd.xlane.f32.xlu1 %v6023_v56 }
 0x542   :  { %v8463_v59 = vpop.eup %8462 }
 0x543   :  { %v6026_v61 = vsel %vm6010_vm1, %v8463_v59, 0.0 }
 0x544   :  { %6027 = vadd.xlane.f32.xlu1 %v6026_v61 }
 0x5cd   :  { %v6025_v42 = vpop.xlane.xlu1 %6024 }
 0x5ce   :  { %8464 = vlog2.f32 %v6025_v42 }
 0x5d1   :  { %v6028_v58 = vpop.xlane.xlu1 %6027 }
 0x5d2   :  { %8466 = vlog2.f32 %v6028_v58 }
 0x5d8   :  { %v8465_v62 = vpop.eup %8464 }
 0x5d9   :  { %v6030_v1 = vmul.f32 0.6931472, %v8465_v62 }
 0x5db   :  { %v6033_v50 = vsub.f32 %v6017_v24, %v6030_v1 }
 0x5dc   :  { %v8467_v3 = vpop.eup %8466 }
 0x5dd   :  { %6035 = vst.msk [vmem:[%s10754_s7] sm:$0xff] %vm6010_vm1, %v6033_v50  ;;  %v6032_v53 = vmul.f32 0.6931472, %v8467_v3 }
 0x5df   :  { %v6034_v6 = vsub.f32 %v6018_v34, %v6032_v53 }
 0x5e1   :  { %6036 = vst.msk [vmem:[%s10754_s7 + $0x8] sm:$0xff] %vm6010_vm1, %v6034_v6 }

</bundles_post_ra>
